<compile_context>
chip_gen: v7x
topology: tpu7x:2x2x1
jax: 0.10.0
libtpu: 0.0.40
codegen_flags: <defaults>
</compile_context>

<pallas_src>
import functools

import numpy as np
import jax
import jax.numpy as jnp
from jax.experimental import pallas as pl
from jax.experimental.pallas import tpu as pltpu

F32 = jnp.float32
BF16 = jnp.bfloat16
BN_EPS = 1e-5
EXPANSION = 4  # BottleNeck.expansion


def _rup(n, m):
    return ((n + m - 1) // m) * m


def _pick_tile(dim, candidates):
    return next(t for t in candidates if dim % t == 0)


# ---------------------------------------------------------------------------
# Kernel 1: tiled matmul (1x1 conv) with fused BN prologue on the input tile,
# conv bias, and fused BN batch statistics as resident extra outputs.
# Grid is (j, i, k): the per-j stats block stays VMEM-resident over the whole
# (i, k) sweep, so statistics cost no extra HBM pass.
# ---------------------------------------------------------------------------
def _mm_bn_kernel(a_ref, b_ref, bias_ref, sc_ref, sh_ref,
                  o_ref, sum_ref, sq_ref, acc_ref,
                  *, relu_in, mask_rows, m_true, tm):
    i = pl.program_id(1)
    k = pl.program_id(2)

    @pl.when(k == 0)
    def _():
        acc_ref[...] = jnp.zeros_like(acc_ref)

    a = a_ref[...] * sc_ref[...] + sh_ref[...]          # fused BN affine prologue
    if relu_in:
        a = jnp.maximum(a, 0.0)
    acc_ref[...] += jnp.dot(a.astype(BF16), b_ref[...],
                            preferred_element_type=jnp.float32)

    @pl.when(jnp.logical_and(i == 0, k == 0))
    def _():
        sum_ref[...] = jnp.zeros_like(sum_ref)
        sq_ref[...] = jnp.zeros_like(sq_ref)

    @pl.when(k == pl.num_programs(2) - 1)
    def _():
        y = acc_ref[...] + bias_ref[...]
        o_ref[...] = y
        if mask_rows:   # row padding only ever contributes to the stats
            rows = jax.lax.broadcasted_iota(jnp.int32, y.shape, 0) + i * tm
            y = jnp.where(rows < m_true, y, 0.0)
        sum_ref[...] += jnp.sum(y, axis=0, keepdims=True)
        sq_ref[...] += jnp.sum(y * y, axis=0, keepdims=True)


def matmul_bn_stats(x, w, bias, scale=None, shift=None, relu_in=False):
    """y = relu_in(x * scale + shift) @ w + bias, plus per-column sum / sum-sq.

    x: [M, Kp] f32 (Kp % 128 == 0), w: [Kp, Np] bf16, bias/scale/shift: [1, *].
    Returns (y [Mp, Np] f32, colsum [1, Np], colsumsq [1, Np]).
    """
    M, K = x.shape
    Kw, N = w.shape
    assert K == Kw and K % 128 == 0 and N % 128 == 0
    Mp = _rup(M, 128)
    if Mp != M:
        x = jnp.pad(x, ((0, Mp - M), (0, 0)))
    if scale is None:
        scale = jnp.ones((1, K), F32)
        shift = jnp.zeros((1, K), F32)
    tm = _pick_tile(Mp, (512, 256, 128))
    tn = _pick_tile(N, (256, 128))
    tk = _pick_tile(K, (512, 256, 128))
    kernel = functools.partial(_mm_bn_kernel, relu_in=relu_in,
                               mask_rows=(Mp != M), m_true=M, tm=tm)
    return pl.pallas_call(
        kernel,
        out_shape=(jax.ShapeDtypeStruct((Mp, N), F32),
                   jax.ShapeDtypeStruct((1, N), F32),
                   jax.ShapeDtypeStruct((1, N), F32)),
        grid=(N // tn, Mp // tm, K // tk),
        in_specs=[pl.BlockSpec((tm, tk), lambda j, i, k: (i, k)),
                  pl.BlockSpec((tk, tn), lambda j, i, k: (k, j)),
                  pl.BlockSpec((1, tn), lambda j, i, k: (0, j)),
                  pl.BlockSpec((1, tk), lambda j, i, k: (0, k)),
                  pl.BlockSpec((1, tk), lambda j, i, k: (0, k))],
        out_specs=(pl.BlockSpec((tm, tn), lambda j, i, k: (i, j)),
                   pl.BlockSpec((1, tn), lambda j, i, k: (0, j)),
                   pl.BlockSpec((1, tn), lambda j, i, k: (0, j))),
        scratch_shapes=[pltpu.VMEM((tm, tn), jnp.float32)],
        compiler_params=pltpu.CompilerParams(
            dimension_semantics=("parallel", "arbitrary", "arbitrary")),
    )(x, w, bias, scale, shift)


# ---------------------------------------------------------------------------
# Kernel 2: 3x3 conv (stride s, padding 1) with fused bn1+ReLU prologue, conv
# bias, and fused bn2 statistics.  Taps are accumulated in-kernel over a
# (n, out_row, dh) grid -- no im2col blow-up; weights stay resident in VMEM.
# Column access inside the kernel is always a contiguous static slice: for
# stride > 1 the wrapper pre-gathers the 3 tap phases into one contiguous
# row layout (tap_starts gives the static offset of each tap).
# ---------------------------------------------------------------------------
def _conv3x3_bn_kernel(x_ref, w_ref, b_ref, sc_ref, sh_ref,
                       o_ref, sum_ref, sq_ref, acc_ref,
                       *, stride, H, W, Wo, tap_starts):
    n = pl.program_id(0)
    ho = pl.program_id(1)
    dh = pl.program_id(2)
    r = ho * stride + dh          # row index of the spatially zero-padded input

    @pl.when(jnp.logical_and(jnp.logical_and(n == 0, ho == 0), dh == 0))
    def _():
        sum_ref[...] = jnp.zeros_like(sum_ref)
        sq_ref[...] = jnp.zeros_like(sq_ref)

    @pl.when(dh == 0)
    def _():
        acc_ref[...] = jnp.broadcast_to(b_ref[...], acc_ref.shape)

    scale = sc_ref[...]
    shift = sh_ref[...]
    row_ok = jnp.logical_and(r >= 1, r <= H)
    for dw in range(3):
        raw = x_ref[0, 0, pl.ds(tap_starts[dw], Wo), :]
        a = jnp.maximum(raw * scale + shift, 0.0)        # fused bn1 + ReLU prologue
        # conv zero-padding applies to the *normalized* activation -> mask halo.
        # Padded-coordinate column of output position wo is wo*stride + dw.
        cols = jax.lax.broadcasted_iota(jnp.int32, (Wo, 1), 0) * stride + dw
        col_ok = jnp.logical_and(cols >= 1, cols <= W)
        a = jnp.where(jnp.logical_and(row_ok, col_ok), a, 0.0)
        acc_ref[...] += jnp.dot(a.astype(BF16), w_ref[dh, dw],
                                preferred_element_type=jnp.float32)

    @pl.when(dh == 2)
    def _():
        y = acc_ref[...]
        o_ref[...] = y[None, None]
        sum_ref[...] += jnp.sum(y, axis=0, keepdims=True)
        sq_ref[...] += jnp.sum(y * y, axis=0, keepdims=True)


def conv3x3_bn_stats(x_sp, w, bias, scale, shift, *, stride, H, W):
    """x_sp: [N, H+2, W+2, Cp] f32 (raw conv1 output, zero spatial halo).

    Returns (y [N, Ho, Wo, Cop] f32, colsum [1, Cop], colsumsq [1, Cop]).
    """
    N, Hp, Wp, Cp = x_sp.shape
    Cop = w.shape[-1]
    Ho = (H - 1) // stride + 1
    Wo = (W - 1) // stride + 1

    if stride == 1:
        x_rows = x_sp                                   # taps overlap; slice in-kernel
        tap_starts = (0, 1, 2)
        Wblk = Wp
    else:
        # Pre-gather the three tap phases once (pure XLA); kernel reads are
        # contiguous.  Padded-coord column for (wo, dw) is wo*stride + dw.
        taps = [x_sp[:, :, dw: dw + (Wo - 1) * stride + 1: stride, :]
                for dw in range(3)]
        x_rows = jnp.concatenate(taps, axis=2)          # [N, Hp, 3*Wo, Cp]
        tap_starts = (0, Wo, 2 * Wo)
        Wblk = 3 * Wo

    kernel = functools.partial(_conv3x3_bn_kernel, stride=stride, H=H, W=W,
                               Wo=Wo, tap_starts=tap_starts)
    return pl.pallas_call(
        kernel,
        out_shape=(jax.ShapeDtypeStruct((N, Ho, Wo, Cop), F32),
                   jax.ShapeDtypeStruct((1, Cop), F32),
                   jax.ShapeDtypeStruct((1, Cop), F32)),
        grid=(N, Ho, 3),
        in_specs=[pl.BlockSpec((1, 1, Wblk, Cp),
                               lambda n, h, d: (n, h * stride + d, 0, 0)),
                  pl.BlockSpec((3, 3, Cp, Cop), lambda n, h, d: (0, 0, 0, 0)),
                  pl.BlockSpec((1, Cop), lambda n, h, d: (0, 0)),
                  pl.BlockSpec((1, Cp), lambda n, h, d: (0, 0)),
                  pl.BlockSpec((1, Cp), lambda n, h, d: (0, 0))],
        out_specs=(pl.BlockSpec((1, 1, Wo, Cop), lambda n, h, d: (n, h, 0, 0)),
                   pl.BlockSpec((1, Cop), lambda n, h, d: (0, 0)),
                   pl.BlockSpec((1, Cop), lambda n, h, d: (0, 0))),
        scratch_shapes=[pltpu.VMEM((Wo, Cop), jnp.float32)],
        compiler_params=pltpu.CompilerParams(
            dimension_semantics=("arbitrary", "arbitrary", "arbitrary")),
    )(x_rows, w, bias, scale, shift)


# ---------------------------------------------------------------------------
# Kernel 3: fused bn3 affine + (downsample-BN affine or identity) residual add
# + final ReLU.
# ---------------------------------------------------------------------------
def _bn_add_relu_kernel(y_ref, sy_ref, ty_ref, id_ref, si_ref, ti_ref, o_ref):
    o_ref[...] = jnp.maximum(
        y_ref[...] * sy_ref[...] + ty_ref[...]
        + id_ref[...] * si_ref[...] + ti_ref[...], 0.0)


def bn_add_relu(y, sy, ty, idr, si, ti):
    M, C = y.shape
    assert idr.shape == (M, C) and C % 128 == 0
    Mp = _rup(M, 128)
    if Mp != M:
        y = jnp.pad(y, ((0, Mp - M), (0, 0)))
        idr = jnp.pad(idr, ((0, Mp - M), (0, 0)))
    tm = _pick_tile(Mp, (512, 256, 128))
    out = pl.pallas_call(
        _bn_add_relu_kernel,
        out_shape=jax.ShapeDtypeStruct((Mp, C), F32),
        grid=(Mp // tm,),
        in_specs=[pl.BlockSpec((tm, C), lambda i: (i, 0)),
                  pl.BlockSpec((1, C), lambda i: (0, 0)),
                  pl.BlockSpec((1, C), lambda i: (0, 0)),
                  pl.BlockSpec((tm, C), lambda i: (i, 0)),
                  pl.BlockSpec((1, C), lambda i: (0, 0)),
                  pl.BlockSpec((1, C), lambda i: (0, 0))],
        out_specs=pl.BlockSpec((tm, C), lambda i: (i, 0)),
        compiler_params=pltpu.CompilerParams(
            dimension_semantics=("parallel",)),
    )(y, sy, ty, idr, si, ti)
    return out if Mp == M else out[:M]


# ---------------------------------------------------------------------------
# JAX glue: BN scale/shift from fused statistics, parameters, block forward.
# ---------------------------------------------------------------------------
def bn_scale_shift(ssum, ssq, count, gamma, beta):
    mean = ssum / count
    var = jnp.maximum(ssq / count - mean * mean, 0.0)
    # TODO(synk): one-pass E[x^2]-E[x]^2 can cancel for very large activation
    # means; a two-pass reduction would be safer if magnitudes grow.
    inv = jax.lax.rsqrt(var + BN_EPS)
    scale = gamma * inv
    shift = beta - mean * scale
    return scale, shift


def _pad_w(w, cinp, coutp):
    kh, kw, cin, cout = w.shape
    return jnp.zeros((kh, kw, cinp, coutp), F32).at[:, :, :cin, :cout].set(w)


def init_bottleneck_params(key, in_channels, channels, stride=1,
                           downsample=False, basic_width=64, groups=1):
    assert groups == 1  # TODO(synk): grouped 3x3 conv (groups > 1) not implemented
    width = channels * int(basic_width / 64) * groups
    out_c = channels * EXPANSION
    cin_p = _rup(in_channels, 128)
    cw_p = _rup(width, 128)
    cout_p = _rup(out_c, 128)
    ks = jax.random.split(key, 4)

    def conv_wb(k, kh, kw, cin, cout):
        bound = 1.0 / np.sqrt(cin * kh * kw)
        w = jax.random.uniform(k, (kh, kw, cin, cout), F32, -bound, bound)
        b = jax.random.uniform(jax.random.fold_in(k, 1), (cout,), F32,
                               -bound, bound)
        return w, b

    def bn_gb(c, cp):
        return jnp.zeros((1, cp), F32).at[0, :c].set(1.0), jnp.zeros((1, cp), F32)

    w1, b1 = conv_wb(ks[0], 1, 1, in_channels, width)
    w2, b2 = conv_wb(ks[1], 3, 3, width, width)
    w3, b3 = conv_wb(ks[2], 1, 1, width, out_c)
    raw = {"w1": w1, "b1": b1, "w2": w2, "b2": b2, "w3": w3, "b3": b3}

    g1, be1 = bn_gb(width, cw_p)
    g2, be2 = bn_gb(width, cw_p)
    g3, be3 = bn_gb(out_c, cout_p)

    params = {
        "w1": _pad_w(w1, cin_p, cw_p).reshape(cin_p, cw_p).astype(BF16),
        "b1": jnp.zeros((1, cw_p), F32).at[0, :width].set(b1),
        "g1": g1, "be1": be1,
        "w2": _pad_w(w2, cw_p, cw_p).astype(BF16),
        "b2": jnp.zeros((1, cw_p), F32).at[0, :width].set(b2),
        "g2": g2, "be2": be2,
        "w3": _pad_w(w3, cw_p, cout_p).reshape(cw_p, cout_p).astype(BF16),
        "b3": jnp.zeros((1, cout_p), F32).at[0, :out_c].set(b3),
        "g3": g3, "be3": be3,
    }
    if downsample:
        wd, bd = conv_wb(ks[3], 1, 1, in_channels, out_c)
        gd, bed = bn_gb(out_c, cout_p)
        raw.update({"wd": wd, "bd": bd})
        params.update({
            "wd": _pad_w(wd, cin_p, cout_p).reshape(cin_p, cout_p).astype(BF16),
            "bd": jnp.zeros((1, cout_p), F32).at[0, :out_c].set(bd),
            "gd": gd, "bed": bed,
        })
    return params, raw


def bottleneck_forward(params, x_nchw, *, stride, downsample, out_channels):
    N, Cin, H, W = x_nchw.shape
    cin_p = params["w1"].shape[0]
    cw_p = params["w1"].shape[1]
    cout_p = params["w3"].shape[1]

    # entry: NCHW -> NHWC, pad channels once to a lane-aligned width
    x = jnp.transpose(x_nchw.astype(F32), (0, 2, 3, 1))
    if cin_p != Cin:
        x = jnp.pad(x, ((0, 0), (0, 0), (0, 0), (0, cin_p - Cin)))
    M0 = N * H * W
    x2d = x.reshape(M0, cin_p)

    # conv1 (1x1) -- bn1 batch statistics fused into the matmul
    y1, s1, q1 = matmul_bn_stats(x2d, params["w1"], params["b1"])
    sc1, sh1 = bn_scale_shift(s1, q1, float(M0), params["g1"], params["be1"])

    # conv2 (3x3, stride, pad=1) -- bn1+ReLU fused as prologue, bn2 stats fused
    Ho = (H - 1) // stride + 1
    Wo = (W - 1) // stride + 1
    y1_4d = (y1 if y1.shape[0] == M0 else y1[:M0]).reshape(N, H, W, cw_p)
    y1_sp = jnp.pad(y1_4d, ((0, 0), (1, 1), (1, 1), (0, 0)))
    y2, s2, q2 = conv3x3_bn_stats(y1_sp, params["w2"], params["b2"], sc1, sh1,
                                  stride=stride, H=H, W=W)
    M2 = N * Ho * Wo
    sc2, sh2 = bn_scale_shift(s2, q2, float(M2), params["g2"], params["be2"])

    # conv3 (1x1) -- bn2+ReLU fused as prologue, bn3 stats fused
    y2_2d = y2.reshape(M2, cw_p)
    y3, s3, q3 = matmul_bn_stats(y2_2d, params["w3"], params["b3"],
                                 scale=sc2, shift=sh2, relu_in=True)
    sc3, sh3 = bn_scale_shift(s3, q3, float(M2), params["g3"], params["be3"])
    y3 = y3 if y3.shape[0] == M2 else y3[:M2]

    # identity / downsample path
    if downsample:
        xd = x[:, ::stride, ::stride, :].reshape(M2, cin_p)
        yd, sd, qd = matmul_bn_stats(xd, params["wd"], params["bd"])
        sci, shi = bn_scale_shift(sd, qd, float(M2), params["gd"], params["bed"])
        idr = yd if yd.shape[0] == M2 else yd[:M2]
    else:
        assert stride == 1 and cin_p == cout_p, \
            "identity shortcut requires stride=1 and in_channels == channels*4"
        idr = x2d
        sci = jnp.ones((1, cout_p), F32)
        shi = jnp.zeros((1, cout_p), F32)

    # bn3 affine + (downsample-BN affine) residual add + ReLU, fused
    out2d = bn_add_relu(y3, sc3, sh3, idr, sci, shi)
    out = out2d[:M2, :out_channels].reshape(N, Ho, Wo, out_channels)
    return jnp.transpose(out, (0, 3, 1, 2))      # back to NCHW


# ---------------------------------------------------------------------------
# Pure-JAX reference (f32) for a numerical cross-check.
# ---------------------------------------------------------------------------
def bottleneck_reference(raw, x_nchw, *, stride, downsample):
    x = jnp.transpose(x_nchw.astype(F32), (0, 2, 3, 1))

    def conv(h, w, b, s, pad):
        y = jax.lax.conv_general_dilated(
            h, w, window_strides=(s, s), padding=[(pad, pad), (pad, pad)],
            dimension_numbers=("NHWC", "HWIO", "NHWC"))
        return y + b

    def bn(h):
        m = jnp.mean(h, axis=(0, 1, 2))
        v = jnp.mean((h - m) ** 2, axis=(0, 1, 2))
        return (h - m) * jax.lax.rsqrt(v + BN_EPS)

    idn = x
    h = jax.nn.relu(bn(conv(x, raw["w1"], raw["b1"], 1, 0)))
    h = jax.nn.relu(bn(conv(h, raw["w2"], raw["b2"], stride, 1)))
    h = bn(conv(h, raw["w3"], raw["b3"], 1, 0))
    if downsample:
        idn = bn(conv(x, raw["wd"], raw["bd"], stride, 0))
    return jnp.transpose(jax.nn.relu(h + idn), (0, 3, 1, 2))


if __name__ == "__main__":
    key = jax.random.PRNGKey(0)
    kp1, kp2, kx1, kx2 = jax.random.split(key, 4)
    N, H, W = 2, 16, 16

    # Case A: default BottleNeck (stride=1, downsample=None); identity shortcut
    # requires in_channels == channels * expansion.
    channels_a = 4
    in_c_a = channels_a * EXPANSION                       # 16
    params_a, raw_a = init_bottleneck_params(kp1, in_c_a, channels_a,
                                             stride=1, downsample=False)
    x_a = jax.random.normal(kx1, (N, in_c_a, H, W), F32)
    fwd_a = jax.jit(functools.partial(bottleneck_forward, stride=1,
                                      downsample=False,
                                      out_channels=channels_a * EXPANSION))
    out_a = jax.block_until_ready(fwd_a(params_a, x_a))
    assert out_a.shape == (N, channels_a * EXPANSION, H, W), out_a.shape
    ref_a = bottleneck_reference(raw_a, x_a, stride=1, downsample=False)
    np.testing.assert_allclose(np.asarray(out_a), np.asarray(ref_a),
                               rtol=0.1, atol=0.1)

    # Case B: stride-2 block with a (conv1x1 stride-2 + BN) downsample shortcut.
    channels_b = 8
    in_c_b = 16
    params_b, raw_b = init_bottleneck_params(kp2, in_c_b, channels_b,
                                             stride=2, downsample=True)
    x_b = jax.random.normal(kx2, (N, in_c_b, H, W), F32)
    fwd_b = jax.jit(functools.partial(bottleneck_forward, stride=2,
                                      downsample=True,
                                      out_channels=channels_b * EXPANSION))
    out_b = jax.block_until_ready(fwd_b(params_b, x_b))
    assert out_b.shape == (N, channels_b * EXPANSION, H // 2, W // 2), out_b.shape
    ref_b = bottleneck_reference(raw_b, x_b, stride=2, downsample=True)
    np.testing.assert_allclose(np.asarray(out_b), np.asarray(ref_b),
                               rtol=0.1, atol=0.1)

    assert bool(jnp.all(jnp.isfinite(out_a))) and bool(jnp.all(jnp.isfinite(out_b)))
    print("KERNEL_OK")
</pallas_src>

<mosaic_0001>
module attributes {stable_mosaic.version = 11 : i64} {
  func.func @_mm_bn_kernel(%arg0: i32, %arg1: i32, %arg2: i32, %arg3: memref<512x128xf32, #tpu.memory_space<vmem>>, %arg4: memref<128x128xbf16, #tpu.memory_space<vmem>>, %arg5: memref<1x128xf32, #tpu.memory_space<vmem>>, %arg6: memref<1x128xf32, #tpu.memory_space<vmem>>, %arg7: memref<1x128xf32, #tpu.memory_space<vmem>>, %arg8: memref<512x128xf32, #tpu.memory_space<vmem>>, %arg9: memref<1x128xf32, #tpu.memory_space<vmem>>, %arg10: memref<1x128xf32, #tpu.memory_space<vmem>>, %arg11: memref<512x128xf32, #tpu.memory_space<vmem>>) attributes {dimension_semantics = [#tpu.dimension_semantics<parallel>, #tpu.dimension_semantics<arbitrary>, #tpu.dimension_semantics<arbitrary>], iteration_bounds = array<i64: 1, 1, 1>, scalar_prefetch = 0 : i64, scratch_operands = 1 : i64, tpu.core_type = #tpu.core_type<tc>, window_params = [{transform_indices = @transform_0, window_bounds = array<i64: 512, 128>}, {transform_indices = @transform_1, window_bounds = array<i64: 128, 128>}, {transform_indices = @transform_2, window_bounds = array<i64: 1, 128>}, {transform_indices = @transform_3, window_bounds = array<i64: 1, 128>}, {transform_indices = @transform_4, window_bounds = array<i64: 1, 128>}, {transform_indices = @transform_5, window_bounds = array<i64: 512, 128>}, {transform_indices = @transform_6, window_bounds = array<i64: 1, 128>}, {transform_indices = @transform_7, window_bounds = array<i64: 1, 128>}]} {
    %c0_i32 = arith.constant 0 : i32
    %0 = arith.cmpi eq, %arg2, %c0_i32 : i32
    %1 = arith.extui %0 : i1 to i32
    %c0_i32_0 = arith.constant 0 : i32
    %2 = arith.cmpi ne, %1, %c0_i32_0 : i32
    scf.if %2 {
      %cst_17 = arith.constant 0.000000e+00 : f32
      %24 = vector.broadcast %cst_17 : f32 to vector<512x128xf32>
      %c0_18 = arith.constant 0 : index
      %c0_19 = arith.constant 0 : index
      %25 = vector.load %arg11[%c0_18, %c0_19] : memref<512x128xf32, #tpu.memory_space<vmem>>, vector<512x128xf32>
      tpu.vector_store %arg11[%c0_18, %c0_19], %24 {strides = array<i32>} : memref<512x128xf32, #tpu.memory_space<vmem>>, vector<512x128xf32>,
    } else {
    }
    %c0 = arith.constant 0 : index
    %c0_1 = arith.constant 0 : index
    %3 = vector.load %arg3[%c0, %c0_1] : memref<512x128xf32, #tpu.memory_space<vmem>>, vector<512x128xf32>
    %c0_2 = arith.constant 0 : index
    %c0_3 = arith.constant 0 : index
    %4 = vector.load %arg6[%c0_2, %c0_3] : memref<1x128xf32, #tpu.memory_space<vmem>>, vector<1x128xf32>
    %5 = vector.broadcast %4 : vector<1x128xf32> to vector<512x128xf32>
    %6 = arith.mulf %3, %5 : vector<512x128xf32>
    %c0_4 = arith.constant 0 : index
    %c0_5 = arith.constant 0 : index
    %7 = vector.load %arg7[%c0_4, %c0_5] : memref<1x128xf32, #tpu.memory_space<vmem>>, vector<1x128xf32>
    %8 = vector.broadcast %7 : vector<1x128xf32> to vector<512x128xf32>
    %9 = arith.addf %6, %8 : vector<512x128xf32>
    %c0_6 = arith.constant 0 : index
    %c0_7 = arith.constant 0 : index
    %10 = vector.load %arg11[%c0_6, %c0_7] : memref<512x128xf32, #tpu.memory_space<vmem>>, vector<512x128xf32>
    %11 = arith.truncf %9 : vector<512x128xf32> to vector<512x128xbf16>
    %c0_8 = arith.constant 0 : index
    %c0_9 = arith.constant 0 : index
    %12 = vector.load %arg4[%c0_8, %c0_9] : memref<128x128xbf16, #tpu.memory_space<vmem>>, vector<128x128xbf16>
    %cst = arith.constant dense<0.000000e+00> : vector<512x128xf32>
    %13 = tpu.matmul %11, %12, %cst {dimension_numbers = #tpu.dot_dimension_numbers<[1], [0], [0], [1], [0, 0, 1, 1], [], []>} : vector<512x128xbf16>, vector<128x128xbf16>, vector<512x128xf32> -> vector<512x128xf32>
    %14 = arith.addf %10, %13 : vector<512x128xf32>
    %c0_10 = arith.constant 0 : index
    %c0_11 = arith.constant 0 : index
    %15 = vector.load %arg11[%c0_10, %c0_11] : memref<512x128xf32, #tpu.memory_space<vmem>>, vector<512x128xf32>
    tpu.vector_store %arg11[%c0_10, %c0_11], %14 {strides = array<i32>} : memref<512x128xf32, #tpu.memory_space<vmem>>, vector<512x128xf32>,
    %c0_i32_12 = arith.constant 0 : i32
    %16 = arith.cmpi eq, %arg1, %c0_i32_12 : i32
    %c0_i32_13 = arith.constant 0 : i32
    %17 = arith.cmpi eq, %arg2, %c0_i32_13 : i32
    %18 = arith.andi %16, %17 : i1
    %19 = arith.extui %18 : i1 to i32
    %c0_i32_14 = arith.constant 0 : i32
    %20 = arith.cmpi ne, %19, %c0_i32_14 : i32
    scf.if %20 {
      %cst_17 = arith.constant 0.000000e+00 : f32
      %24 = vector.broadcast %cst_17 : f32 to vector<1x128xf32>
      %c0_18 = arith.constant 0 : index
      %c0_19 = arith.constant 0 : index
      %25 = vector.load %arg9[%c0_18, %c0_19] : memref<1x128xf32, #tpu.memory_space<vmem>>, vector<1x128xf32>
      tpu.vector_store %arg9[%c0_18, %c0_19], %24 {strides = array<i32>} : memref<1x128xf32, #tpu.memory_space<vmem>>, vector<1x128xf32>,
      %cst_20 = arith.constant 0.000000e+00 : f32
      %26 = vector.broadcast %cst_20 : f32 to vector<1x128xf32>
      %c0_21 = arith.constant 0 : index
      %c0_22 = arith.constant 0 : index
      %27 = vector.load %arg10[%c0_21, %c0_22] : memref<1x128xf32, #tpu.memory_space<vmem>>, vector<1x128xf32>
      tpu.vector_store %arg10[%c0_21, %c0_22], %26 {strides = array<i32>} : memref<1x128xf32, #tpu.memory_space<vmem>>, vector<1x128xf32>,
    } else {
    }
    %c0_i32_15 = arith.constant 0 : i32
    %21 = arith.cmpi eq, %arg2, %c0_i32_15 : i32
    %22 = arith.extui %21 : i1 to i32
    %c0_i32_16 = arith.constant 0 : i32
    %23 = arith.cmpi ne, %22, %c0_i32_16 : i32
    scf.if %23 {
      %c0_17 = arith.constant 0 : index
      %c0_18 = arith.constant 0 : index
      %24 = vector.load %arg11[%c0_17, %c0_18] : memref<512x128xf32, #tpu.memory_space<vmem>>, vector<512x128xf32>
      %c0_19 = arith.constant 0 : index
      %c0_20 = arith.constant 0 : index
      %25 = vector.load %arg5[%c0_19, %c0_20] : memref<1x128xf32, #tpu.memory_space<vmem>>, vector<1x128xf32>
      %26 = vector.broadcast %25 : vector<1x128xf32> to vector<512x128xf32>
      %27 = arith.addf %24, %26 : vector<512x128xf32>
      %c0_21 = arith.constant 0 : index
      %c0_22 = arith.constant 0 : index
      %28 = vector.load %arg8[%c0_21, %c0_22] : memref<512x128xf32, #tpu.memory_space<vmem>>, vector<512x128xf32>
      tpu.vector_store %arg8[%c0_21, %c0_22], %27 {strides = array<i32>} : memref<512x128xf32, #tpu.memory_space<vmem>>, vector<512x128xf32>,
      %c0_23 = arith.constant 0 : index
      %c0_24 = arith.constant 0 : index
      %29 = vector.load %arg9[%c0_23, %c0_24] : memref<1x128xf32, #tpu.memory_space<vmem>>, vector<1x128xf32>
      %cst_25 = arith.constant dense<0.000000e+00> : vector<128xf32>
      %30 = vector.multi_reduction <add>, %27, %cst_25 [0] : vector<512x128xf32> to vector<128xf32>
      %31 = vector.shape_cast %30 : vector<128xf32> to vector<1x128xf32>
      %32 = arith.addf %29, %31 : vector<1x128xf32>
      %c0_26 = arith.constant 0 : index
      %c0_27 = arith.constant 0 : index
      %33 = vector.load %arg9[%c0_26, %c0_27] : memref<1x128xf32, #tpu.memory_space<vmem>>, vector<1x128xf32>
      tpu.vector_store %arg9[%c0_26, %c0_27], %32 {strides = array<i32>} : memref<1x128xf32, #tpu.memory_space<vmem>>, vector<1x128xf32>,
      %c0_28 = arith.constant 0 : index
      %c0_29 = arith.constant 0 : index
      %34 = vector.load %arg10[%c0_28, %c0_29] : memref<1x128xf32, #tpu.memory_space<vmem>>, vector<1x128xf32>
      %35 = arith.mulf %27, %27 : vector<512x128xf32>
      %cst_30 = arith.constant dense<0.000000e+00> : vector<128xf32>
      %36 = vector.multi_reduction <add>, %35, %cst_30 [0] : vector<512x128xf32> to vector<128xf32>
      %37 = vector.shape_cast %36 : vector<128xf32> to vector<1x128xf32>
      %38 = arith.addf %34, %37 : vector<1x128xf32>
      %c0_31 = arith.constant 0 : index
      %c0_32 = arith.constant 0 : index
      %39 = vector.load %arg10[%c0_31, %c0_32] : memref<1x128xf32, #tpu.memory_space<vmem>>, vector<1x128xf32>
      tpu.vector_store %arg10[%c0_31, %c0_32], %38 {strides = array<i32>} : memref<1x128xf32, #tpu.memory_space<vmem>>, vector<1x128xf32>,
    } else {
    }
    return
  }
  func.func @transform_0(%arg0: i32, %arg1: i32, %arg2: i32) -> (i32, i32) {
    %c0_i32 = arith.constant 0 : i32
    return %arg1, %arg2 : i32, i32
  }
  func.func @transform_1(%arg0: i32, %arg1: i32, %arg2: i32) -> (i32, i32) {
    %c0_i32 = arith.constant 0 : i32
    return %arg2, %arg0 : i32, i32
  }
  func.func @transform_2(%arg0: i32, %arg1: i32, %arg2: i32) -> (i32, i32) {
    %c0_i32 = arith.constant 0 : i32
    %c0_i32_0 = arith.constant 0 : i32
    return %c0_i32, %arg0 : i32, i32
  }
  func.func @transform_3(%arg0: i32, %arg1: i32, %arg2: i32) -> (i32, i32) {
    %c0_i32 = arith.constant 0 : i32
    %c0_i32_0 = arith.constant 0 : i32
    return %c0_i32, %arg2 : i32, i32
  }
  func.func @transform_4(%arg0: i32, %arg1: i32, %arg2: i32) -> (i32, i32) {
    %c0_i32 = arith.constant 0 : i32
    %c0_i32_0 = arith.constant 0 : i32
    return %c0_i32, %arg2 : i32, i32
  }
  func.func @transform_5(%arg0: i32, %arg1: i32, %arg2: i32) -> (i32, i32) {
    %c0_i32 = arith.constant 0 : i32
    return %arg1, %arg0 : i32, i32
  }
  func.func @transform_6(%arg0: i32, %arg1: i32, %arg2: i32) -> (i32, i32) {
    %c0_i32 = arith.constant 0 : i32
    %c0_i32_0 = arith.constant 0 : i32
    return %c0_i32, %arg0 : i32, i32
  }
  func.func @transform_7(%arg0: i32, %arg1: i32, %arg2: i32) -> (i32, i32) {
    %c0_i32 = arith.constant 0 : i32
    %c0_i32_0 = arith.constant 0 : i32
    return %c0_i32, %arg0 : i32, i32
  }
}

module attributes {stable_mosaic.version = 11 : i64} {
  func.func @_mm_bn_kernel(%arg0: i32, %arg1: i32, %arg2: i32, %arg3: memref<512x128xf32, #tpu.memory_space<vmem>>, %arg4: memref<128x128xbf16, #tpu.memory_space<vmem>>, %arg5: memref<1x128xf32, #tpu.memory_space<vmem>>, %arg6: memref<1x128xf32, #tpu.memory_space<vmem>>, %arg7: memref<1x128xf32, #tpu.memory_space<vmem>>, %arg8: memref<512x128xf32, #tpu.memory_space<vmem>>, %arg9: memref<1x128xf32, #tpu.memory_space<vmem>>, %arg10: memref<1x128xf32, #tpu.memory_space<vmem>>, %arg11: memref<512x128xf32, #tpu.memory_space<vmem>>) attributes {dimension_semantics = [#tpu.dimension_semantics<parallel>, #tpu.dimension_semantics<arbitrary>, #tpu.dimension_semantics<arbitrary>], iteration_bounds = array<i64: 1, 1, 1>, scalar_prefetch = 0 : i64, scratch_operands = 1 : i64, tpu.core_type = #tpu.core_type<tc>, window_params = [{transform_indices = @transform_0, window_bounds = array<i64: 512, 128>}, {transform_indices = @transform_1, window_bounds = array<i64: 128, 128>}, {transform_indices = @transform_2, window_bounds = array<i64: 1, 128>}, {transform_indices = @transform_3, window_bounds = array<i64: 1, 128>}, {transform_indices = @transform_4, window_bounds = array<i64: 1, 128>}, {transform_indices = @transform_5, window_bounds = array<i64: 512, 128>}, {transform_indices = @transform_6, window_bounds = array<i64: 1, 128>}, {transform_indices = @transform_7, window_bounds = array<i64: 1, 128>}]} {
    %c0_i32 = arith.constant 0 : i32
    %0 = arith.cmpi eq, %arg2, %c0_i32 : i32
    %1 = arith.extui %0 : i1 to i32
    %c0_i32_0 = arith.constant 0 : i32
    %2 = arith.cmpi ne, %1, %c0_i32_0 : i32
    scf.if %2 {
      %cst_18 = arith.constant 0.000000e+00 : f32
      %26 = vector.broadcast %cst_18 : f32 to vector<512x128xf32>
      %c0_19 = arith.constant 0 : index
      %c0_20 = arith.constant 0 : index
      %27 = vector.load %arg11[%c0_19, %c0_20] : memref<512x128xf32, #tpu.memory_space<vmem>>, vector<512x128xf32>
      tpu.vector_store %arg11[%c0_19, %c0_20], %26 {strides = array<i32>} : memref<512x128xf32, #tpu.memory_space<vmem>>, vector<512x128xf32>,
    } else {
    }
    %c0 = arith.constant 0 : index
    %c0_1 = arith.constant 0 : index
    %3 = vector.load %arg3[%c0, %c0_1] : memref<512x128xf32, #tpu.memory_space<vmem>>, vector<512x128xf32>
    %c0_2 = arith.constant 0 : index
    %c0_3 = arith.constant 0 : index
    %4 = vector.load %arg6[%c0_2, %c0_3] : memref<1x128xf32, #tpu.memory_space<vmem>>, vector<1x128xf32>
    %5 = vector.broadcast %4 : vector<1x128xf32> to vector<512x128xf32>
    %6 = arith.mulf %3, %5 : vector<512x128xf32>
    %c0_4 = arith.constant 0 : index
    %c0_5 = arith.constant 0 : index
    %7 = vector.load %arg7[%c0_4, %c0_5] : memref<1x128xf32, #tpu.memory_space<vmem>>, vector<1x128xf32>
    %8 = vector.broadcast %7 : vector<1x128xf32> to vector<512x128xf32>
    %9 = arith.addf %6, %8 : vector<512x128xf32>
    %cst = arith.constant 0.000000e+00 : f32
    %10 = vector.broadcast %cst : f32 to vector<512x128xf32>
    %11 = arith.maximumf %9, %10 : vector<512x128xf32>
    %c0_6 = arith.constant 0 : index
    %c0_7 = arith.constant 0 : index
    %12 = vector.load %arg11[%c0_6, %c0_7] : memref<512x128xf32, #tpu.memory_space<vmem>>, vector<512x128xf32>
    %13 = arith.truncf %11 : vector<512x128xf32> to vector<512x128xbf16>
    %c0_8 = arith.constant 0 : index
    %c0_9 = arith.constant 0 : index
    %14 = vector.load %arg4[%c0_8, %c0_9] : memref<128x128xbf16, #tpu.memory_space<vmem>>, vector<128x128xbf16>
    %cst_10 = arith.constant dense<0.000000e+00> : vector<512x128xf32>
    %15 = tpu.matmul %13, %14, %cst_10 {dimension_numbers = #tpu.dot_dimension_numbers<[1], [0], [0], [1], [0, 0, 1, 1], [], []>} : vector<512x128xbf16>, vector<128x128xbf16>, vector<512x128xf32> -> vector<512x128xf32>
    %16 = arith.addf %12, %15 : vector<512x128xf32>
    %c0_11 = arith.constant 0 : index
    %c0_12 = arith.constant 0 : index
    %17 = vector.load %arg11[%c0_11, %c0_12] : memref<512x128xf32, #tpu.memory_space<vmem>>, vector<512x128xf32>
    tpu.vector_store %arg11[%c0_11, %c0_12], %16 {strides = array<i32>} : memref<512x128xf32, #tpu.memory_space<vmem>>, vector<512x128xf32>,
    %c0_i32_13 = arith.constant 0 : i32
    %18 = arith.cmpi eq, %arg1, %c0_i32_13 : i32
    %c0_i32_14 = arith.constant 0 : i32
    %19 = arith.cmpi eq, %arg2, %c0_i32_14 : i32
    %20 = arith.andi %18, %19 : i1
    %21 = arith.extui %20 : i1 to i32
    %c0_i32_15 = arith.constant 0 : i32
    %22 = arith.cmpi ne, %21, %c0_i32_15 : i32
    scf.if %22 {
      %cst_18 = arith.constant 0.000000e+00 : f32
      %26 = vector.broadcast %cst_18 : f32 to vector<1x128xf32>
      %c0_19 = arith.constant 0 : index
      %c0_20 = arith.constant 0 : index
      %27 = vector.load %arg9[%c0_19, %c0_20] : memref<1x128xf32, #tpu.memory_space<vmem>>, vector<1x128xf32>
      tpu.vector_store %arg9[%c0_19, %c0_20], %26 {strides = array<i32>} : memref<1x128xf32, #tpu.memory_space<vmem>>, vector<1x128xf32>,
      %cst_21 = arith.constant 0.000000e+00 : f32
      %28 = vector.broadcast %cst_21 : f32 to vector<1x128xf32>
      %c0_22 = arith.constant 0 : index
      %c0_23 = arith.constant 0 : index
      %29 = vector.load %arg10[%c0_22, %c0_23] : memref<1x128xf32, #tpu.memory_space<vmem>>, vector<1x128xf32>
      tpu.vector_store %arg10[%c0_22, %c0_23], %28 {strides = array<i32>} : memref<1x128xf32, #tpu.memory_space<vmem>>, vector<1x128xf32>,
    } else {
    }
    %c0_i32_16 = arith.constant 0 : i32
    %23 = arith.cmpi eq, %arg2, %c0_i32_16 : i32
    %24 = arith.extui %23 : i1 to i32
    %c0_i32_17 = arith.constant 0 : i32
    %25 = arith.cmpi ne, %24, %c0_i32_17 : i32
    scf.if %25 {
      %c0_18 = arith.constant 0 : index
      %c0_19 = arith.constant 0 : index
      %26 = vector.load %arg11[%c0_18, %c0_19] : memref<512x128xf32, #tpu.memory_space<vmem>>, vector<512x128xf32>
      %c0_20 = arith.constant 0 : index
      %c0_21 = arith.constant 0 : index
      %27 = vector.load %arg5[%c0_20, %c0_21] : memref<1x128xf32, #tpu.memory_space<vmem>>, vector<1x128xf32>
      %28 = vector.broadcast %27 : vector<1x128xf32> to vector<512x128xf32>
      %29 = arith.addf %26, %28 : vector<512x128xf32>
      %c0_22 = arith.constant 0 : index
      %c0_23 = arith.constant 0 : index
      %30 = vector.load %arg8[%c0_22, %c0_23] : memref<512x128xf32, #tpu.memory_space<vmem>>, vector<512x128xf32>
      tpu.vector_store %arg8[%c0_22, %c0_23], %29 {strides = array<i32>} : memref<512x128xf32, #tpu.memory_space<vmem>>, vector<512x128xf32>,
      %c0_24 = arith.constant 0 : index
      %c0_25 = arith.constant 0 : index
      %31 = vector.load %arg9[%c0_24, %c0_25] : memref<1x128xf32, #tpu.memory_space<vmem>>, vector<1x128xf32>
      %cst_26 = arith.constant dense<0.000000e+00> : vector<128xf32>
      %32 = vector.multi_reduction <add>, %29, %cst_26 [0] : vector<512x128xf32> to vector<128xf32>
      %33 = vector.shape_cast %32 : vector<128xf32> to vector<1x128xf32>
      %34 = arith.addf %31, %33 : vector<1x128xf32>
      %c0_27 = arith.constant 0 : index
      %c0_28 = arith.constant 0 : index
      %35 = vector.load %arg9[%c0_27, %c0_28] : memref<1x128xf32, #tpu.memory_space<vmem>>, vector<1x128xf32>
      tpu.vector_store %arg9[%c0_27, %c0_28], %34 {strides = array<i32>} : memref<1x128xf32, #tpu.memory_space<vmem>>, vector<1x128xf32>,
      %c0_29 = arith.constant 0 : index
      %c0_30 = arith.constant 0 : index
      %36 = vector.load %arg10[%c0_29, %c0_30] : memref<1x128xf32, #tpu.memory_space<vmem>>, vector<1x128xf32>
      %37 = arith.mulf %29, %29 : vector<512x128xf32>
      %cst_31 = arith.constant dense<0.000000e+00> : vector<128xf32>
      %38 = vector.multi_reduction <add>, %37, %cst_31 [0] : vector<512x128xf32> to vector<128xf32>
      %39 = vector.shape_cast %38 : vector<128xf32> to vector<1x128xf32>
      %40 = arith.addf %36, %39 : vector<1x128xf32>
      %c0_32 = arith.constant 0 : index
      %c0_33 = arith.constant 0 : index
      %41 = vector.load %arg10[%c0_32, %c0_33] : memref<1x128xf32, #tpu.memory_space<vmem>>, vector<1x128xf32>
      tpu.vector_store %arg10[%c0_32, %c0_33], %40 {strides = array<i32>} : memref<1x128xf32, #tpu.memory_space<vmem>>, vector<1x128xf32>,
    } else {
    }
    return
  }
  func.func @transform_0(%arg0: i32, %arg1: i32, %arg2: i32) -> (i32, i32) {
    %c0_i32 = arith.constant 0 : i32
    return %arg1, %arg2 : i32, i32
  }
  func.func @transform_1(%arg0: i32, %arg1: i32, %arg2: i32) -> (i32, i32) {
    %c0_i32 = arith.constant 0 : i32
    return %arg2, %arg0 : i32, i32
  }
  func.func @transform_2(%arg0: i32, %arg1: i32, %arg2: i32) -> (i32, i32) {
    %c0_i32 = arith.constant 0 : i32
    %c0_i32_0 = arith.constant 0 : i32
    return %c0_i32, %arg0 : i32, i32
  }
  func.func @transform_3(%arg0: i32, %arg1: i32, %arg2: i32) -> (i32, i32) {
    %c0_i32 = arith.constant 0 : i32
    %c0_i32_0 = arith.constant 0 : i32
    return %c0_i32, %arg2 : i32, i32
  }
  func.func @transform_4(%arg0: i32, %arg1: i32, %arg2: i32) -> (i32, i32) {
    %c0_i32 = arith.constant 0 : i32
    %c0_i32_0 = arith.constant 0 : i32
    return %c0_i32, %arg2 : i32, i32
  }
  func.func @transform_5(%arg0: i32, %arg1: i32, %arg2: i32) -> (i32, i32) {
    %c0_i32 = arith.constant 0 : i32
    return %arg1, %arg0 : i32, i32
  }
  func.func @transform_6(%arg0: i32, %arg1: i32, %arg2: i32) -> (i32, i32) {
    %c0_i32 = arith.constant 0 : i32
    %c0_i32_0 = arith.constant 0 : i32
    return %c0_i32, %arg0 : i32, i32
  }
  func.func @transform_7(%arg0: i32, %arg1: i32, %arg2: i32) -> (i32, i32) {
    %c0_i32 = arith.constant 0 : i32
    %c0_i32_0 = arith.constant 0 : i32
    return %c0_i32, %arg0 : i32, i32
  }
}

module attributes {stable_mosaic.version = 11 : i64} {
  func.func @_conv3x3_bn_kernel(%arg0: i32, %arg1: i32, %arg2: i32, %arg3: memref<1x1x18x128xf32, #tpu.memory_space<vmem>>, %arg4: memref<3x3x128x128xbf16, #tpu.memory_space<vmem>>, %arg5: memref<1x128xf32, #tpu.memory_space<vmem>>, %arg6: memref<1x128xf32, #tpu.memory_space<vmem>>, %arg7: memref<1x128xf32, #tpu.memory_space<vmem>>, %arg8: memref<1x1x16x128xf32, #tpu.memory_space<vmem>>, %arg9: memref<1x128xf32, #tpu.memory_space<vmem>>, %arg10: memref<1x128xf32, #tpu.memory_space<vmem>>, %arg11: memref<16x128xf32, #tpu.memory_space<vmem>>) attributes {dimension_semantics = [#tpu.dimension_semantics<arbitrary>, #tpu.dimension_semantics<arbitrary>, #tpu.dimension_semantics<arbitrary>], iteration_bounds = array<i64: 2, 16, 3>, scalar_prefetch = 0 : i64, scratch_operands = 1 : i64, tpu.core_type = #tpu.core_type<tc>, window_params = [{transform_indices = @transform_0, window_bounds = array<i64: 1, 1, 18, 128>}, {pipeline_mode = #tpu.pipeline_mode<synchronous>, transform_indices = @transform_1, window_bounds = array<i64: 3, 3, 128, 128>}, {pipeline_mode = #tpu.pipeline_mode<synchronous>, transform_indices = @transform_2, window_bounds = array<i64: 1, 128>}, {pipeline_mode = #tpu.pipeline_mode<synchronous>, transform_indices = @transform_3, window_bounds = array<i64: 1, 128>}, {pipeline_mode = #tpu.pipeline_mode<synchronous>, transform_indices = @transform_4, window_bounds = array<i64: 1, 128>}, {transform_indices = @transform_5, window_bounds = array<i64: 1, 1, 16, 128>}, {pipeline_mode = #tpu.pipeline_mode<synchronous>, transform_indices = @transform_6, window_bounds = array<i64: 1, 128>}, {pipeline_mode = #tpu.pipeline_mode<synchronous>, transform_indices = @transform_7, window_bounds = array<i64: 1, 128>}]} {
    %c1_i32 = arith.constant 1 : i32
    %0 = arith.muli %arg1, %c1_i32 : i32
    %1 = arith.addi %0, %arg2 : i32
    %c0_i32 = arith.constant 0 : i32
    %2 = arith.cmpi eq, %arg0, %c0_i32 : i32
    %c0_i32_0 = arith.constant 0 : i32
    %3 = arith.cmpi eq, %arg1, %c0_i32_0 : i32
    %4 = arith.andi %2, %3 : i1
    %c0_i32_1 = arith.constant 0 : i32
    %5 = arith.cmpi eq, %arg2, %c0_i32_1 : i32
    %6 = arith.andi %4, %5 : i1
    %7 = arith.extui %6 : i1 to i32
    %c0_i32_2 = arith.constant 0 : i32
    %8 = arith.cmpi ne, %7, %c0_i32_2 : i32
    scf.if %8 {
      %cst_61 = arith.constant 0.000000e+00 : f32
      %116 = vector.broadcast %cst_61 : f32 to vector<1x128xf32>
      %c0_62 = arith.constant 0 : index
      %c0_63 = arith.constant 0 : index
      %117 = vector.load %arg9[%c0_62, %c0_63] : memref<1x128xf32, #tpu.memory_space<vmem>>, vector<1x128xf32>
      tpu.vector_store %arg9[%c0_62, %c0_63], %116 {strides = array<i32>} : memref<1x128xf32, #tpu.memory_space<vmem>>, vector<1x128xf32>,
      %cst_64 = arith.constant 0.000000e+00 : f32
      %118 = vector.broadcast %cst_64 : f32 to vector<1x128xf32>
      %c0_65 = arith.constant 0 : index
      %c0_66 = arith.constant 0 : index
      %119 = vector.load %arg10[%c0_65, %c0_66] : memref<1x128xf32, #tpu.memory_space<vmem>>, vector<1x128xf32>
      tpu.vector_store %arg10[%c0_65, %c0_66], %118 {strides = array<i32>} : memref<1x128xf32, #tpu.memory_space<vmem>>, vector<1x128xf32>,
    } else {
    }
    %c0_i32_3 = arith.constant 0 : i32
    %9 = arith.cmpi eq, %arg2, %c0_i32_3 : i32
    %10 = arith.extui %9 : i1 to i32
    %c0_i32_4 = arith.constant 0 : i32
    %11 = arith.cmpi ne, %10, %c0_i32_4 : i32
    scf.if %11 {
      %c0_61 = arith.constant 0 : index
      %c0_62 = arith.constant 0 : index
      %116 = vector.load %arg5[%c0_61, %c0_62] : memref<1x128xf32, #tpu.memory_space<vmem>>, vector<1x128xf32>
      %117 = vector.shape_cast %116 : vector<1x128xf32> to vector<1x128xf32>
      %118 = vector.broadcast %117 : vector<1x128xf32> to vector<16x128xf32>
      %c0_63 = arith.constant 0 : index
      %c0_64 = arith.constant 0 : index
      %119 = vector.load %arg11[%c0_63, %c0_64] : memref<16x128xf32, #tpu.memory_space<vmem>>, vector<16x128xf32>
      tpu.vector_store %arg11[%c0_63, %c0_64], %118 {strides = array<i32>} : memref<16x128xf32, #tpu.memory_space<vmem>>, vector<16x128xf32>,
    } else {
    }
    %c0 = arith.constant 0 : index
    %c0_5 = arith.constant 0 : index
    %12 = vector.load %arg6[%c0, %c0_5] : memref<1x128xf32, #tpu.memory_space<vmem>>, vector<1x128xf32>
    %c0_6 = arith.constant 0 : index
    %c0_7 = arith.constant 0 : index
    %13 = vector.load %arg7[%c0_6, %c0_7] : memref<1x128xf32, #tpu.memory_space<vmem>>, vector<1x128xf32>
    %c1_i32_8 = arith.constant 1 : i32
    %14 = arith.cmpi sge, %1, %c1_i32_8 : i32
    %c16_i32 = arith.constant 16 : i32
    %15 = arith.cmpi sle, %1, %c16_i32 : i32
    %16 = arith.andi %14, %15 : i1
    %c0_9 = arith.constant 0 : index
    %c0_10 = arith.constant 0 : index
    %c0_11 = arith.constant 0 : index
    %c0_12 = arith.constant 0 : index
    %17 = vector.load %arg3[%c0_9, %c0_10, %c0_11, %c0_12] : memref<1x1x18x128xf32, #tpu.memory_space<vmem>>, vector<1x1x16x128xf32>
    %18 = vector.shape_cast %17 : vector<1x1x16x128xf32> to vector<16x128xf32>
    %19 = vector.broadcast %12 : vector<1x128xf32> to vector<16x128xf32>
    %20 = arith.mulf %18, %19 : vector<16x128xf32>
    %21 = vector.broadcast %13 : vector<1x128xf32> to vector<16x128xf32>
    %22 = arith.addf %20, %21 : vector<16x128xf32>
    %cst = arith.constant 0.000000e+00 : f32
    %23 = vector.broadcast %cst : f32 to vector<16x128xf32>
    %24 = arith.maximumf %22, %23 : vector<16x128xf32>
    %25 = tpu.iota {dimensions = array<i32: 0>} : vector<16x1xi32>
    %c1_i32_13 = arith.constant 1 : i32
    %26 = vector.broadcast %c1_i32_13 : i32 to vector<16x1xi32>
    %27 = arith.muli %25, %26 : vector<16x1xi32>
    %c0_i32_14 = arith.constant 0 : i32
    %28 = vector.broadcast %c0_i32_14 : i32 to vector<16x1xi32>
    %29 = arith.addi %27, %28 : vector<16x1xi32>
    %c1_i32_15 = arith.constant 1 : i32
    %30 = vector.broadcast %c1_i32_15 : i32 to vector<16x1xi32>
    %31 = arith.cmpi sge, %29, %30 : vector<16x1xi32>
    %c16_i32_16 = arith.constant 16 : i32
    %32 = vector.broadcast %c16_i32_16 : i32 to vector<16x1xi32>
    %33 = arith.cmpi sle, %29, %32 : vector<16x1xi32>
    %34 = arith.andi %31, %33 : vector<16x1xi1>
    %35 = vector.broadcast %16 : i1 to vector<16x1xi1>
    %36 = arith.andi %35, %34 : vector<16x1xi1>
    %cst_17 = arith.constant 0.000000e+00 : f32
    %37 = vector.shape_cast %36 : vector<16x1xi1> to vector<16x1xi1>
    %38 = vector.broadcast %37 : vector<16x1xi1> to vector<16x128xi1>
    %39 = vector.broadcast %cst_17 : f32 to vector<16x128xf32>
    %40 = arith.select %38, %24, %39 : vector<16x128xi1>, vector<16x128xf32>
    %c0_18 = arith.constant 0 : index
    %c0_19 = arith.constant 0 : index
    %41 = vector.load %arg11[%c0_18, %c0_19] : memref<16x128xf32, #tpu.memory_space<vmem>>, vector<16x128xf32>
    %42 = arith.truncf %40 : vector<16x128xf32> to vector<16x128xbf16>
    %43 = arith.index_cast %arg2 : i32 to index
    %c0_20 = arith.constant 0 : index
    %c0_21 = arith.constant 0 : index
    %c0_22 = arith.constant 0 : index
    %44 = vector.load %arg4[%43, %c0_20, %c0_21, %c0_22] : memref<3x3x128x128xbf16, #tpu.memory_space<vmem>>, vector<1x1x128x128xbf16>
    %45 = vector.shape_cast %44 : vector<1x1x128x128xbf16> to vector<128x128xbf16>
    %cst_23 = arith.constant dense<0.000000e+00> : vector<16x128xf32>
    %46 = tpu.matmul %42, %45, %cst_23 {dimension_numbers = #tpu.dot_dimension_numbers<[1], [0], [0], [1], [0, 0, 1, 1], [], []>} : vector<16x128xbf16>, vector<128x128xbf16>, vector<16x128xf32> -> vector<16x128xf32>
    %47 = arith.addf %41, %46 : vector<16x128xf32>
    %c0_24 = arith.constant 0 : index
    %c0_25 = arith.constant 0 : index
    %48 = vector.load %arg11[%c0_24, %c0_25] : memref<16x128xf32, #tpu.memory_space<vmem>>, vector<16x128xf32>
    tpu.vector_store %arg11[%c0_24, %c0_25], %47 {strides = array<i32>} : memref<16x128xf32, #tpu.memory_space<vmem>>, vector<16x128xf32>,
    %c0_26 = arith.constant 0 : index
    %c0_27 = arith.constant 0 : index
    %c1 = arith.constant 1 : index
    %c0_28 = arith.constant 0 : index
    %49 = vector.load %arg3[%c0_26, %c0_27, %c1, %c0_28] : memref<1x1x18x128xf32, #tpu.memory_space<vmem>>, vector<1x1x16x128xf32>
    %50 = vector.shape_cast %49 : vector<1x1x16x128xf32> to vector<16x128xf32>
    %51 = vector.broadcast %12 : vector<1x128xf32> to vector<16x128xf32>
    %52 = arith.mulf %50, %51 : vector<16x128xf32>
    %53 = vector.broadcast %13 : vector<1x128xf32> to vector<16x128xf32>
    %54 = arith.addf %52, %53 : vector<16x128xf32>
    %cst_29 = arith.constant 0.000000e+00 : f32
    %55 = vector.broadcast %cst_29 : f32 to vector<16x128xf32>
    %56 = arith.maximumf %54, %55 : vector<16x128xf32>
    %57 = tpu.iota {dimensions = array<i32: 0>} : vector<16x1xi32>
    %c1_i32_30 = arith.constant 1 : i32
    %58 = vector.broadcast %c1_i32_30 : i32 to vector<16x1xi32>
    %59 = arith.muli %57, %58 : vector<16x1xi32>
    %c1_i32_31 = arith.constant 1 : i32
    %60 = vector.broadcast %c1_i32_31 : i32 to vector<16x1xi32>
    %61 = arith.addi %59, %60 : vector<16x1xi32>
    %c1_i32_32 = arith.constant 1 : i32
    %62 = vector.broadcast %c1_i32_32 : i32 to vector<16x1xi32>
    %63 = arith.cmpi sge, %61, %62 : vector<16x1xi32>
    %c16_i32_33 = arith.constant 16 : i32
    %64 = vector.broadcast %c16_i32_33 : i32 to vector<16x1xi32>
    %65 = arith.cmpi sle, %61, %64 : vector<16x1xi32>
    %66 = arith.andi %63, %65 : vector<16x1xi1>
    %67 = vector.broadcast %16 : i1 to vector<16x1xi1>
    %68 = arith.andi %67, %66 : vector<16x1xi1>
    %cst_34 = arith.constant 0.000000e+00 : f32
    %69 = vector.shape_cast %68 : vector<16x1xi1> to vector<16x1xi1>
    %70 = vector.broadcast %69 : vector<16x1xi1> to vector<16x128xi1>
    %71 = vector.broadcast %cst_34 : f32 to vector<16x128xf32>
    %72 = arith.select %70, %56, %71 : vector<16x128xi1>, vector<16x128xf32>
    %c0_35 = arith.constant 0 : index
    %c0_36 = arith.constant 0 : index
    %73 = vector.load %arg11[%c0_35, %c0_36] : memref<16x128xf32, #tpu.memory_space<vmem>>, vector<16x128xf32>
    %74 = arith.truncf %72 : vector<16x128xf32> to vector<16x128xbf16>
    %75 = arith.index_cast %arg2 : i32 to index
    %c1_37 = arith.constant 1 : index
    %c0_38 = arith.constant 0 : index
    %c0_39 = arith.constant 0 : index
    %76 = vector.load %arg4[%75, %c1_37, %c0_38, %c0_39] : memref<3x3x128x128xbf16, #tpu.memory_space<vmem>>, vector<1x1x128x128xbf16>
    %77 = vector.shape_cast %76 : vector<1x1x128x128xbf16> to vector<128x128xbf16>
    %cst_40 = arith.constant dense<0.000000e+00> : vector<16x128xf32>
    %78 = tpu.matmul %74, %77, %cst_40 {dimension_numbers = #tpu.dot_dimension_numbers<[1], [0], [0], [1], [0, 0, 1, 1], [], []>} : vector<16x128xbf16>, vector<128x128xbf16>, vector<16x128xf32> -> vector<16x128xf32>
    %79 = arith.addf %73, %78 : vector<16x128xf32>
    %c0_41 = arith.constant 0 : index
    %c0_42 = arith.constant 0 : index
    %80 = vector.load %arg11[%c0_41, %c0_42] : memref<16x128xf32, #tpu.memory_space<vmem>>, vector<16x128xf32>
    tpu.vector_store %arg11[%c0_41, %c0_42], %79 {strides = array<i32>} : memref<16x128xf32, #tpu.memory_space<vmem>>, vector<16x128xf32>,
    %c0_43 = arith.constant 0 : index
    %c0_44 = arith.constant 0 : index
    %c2 = arith.constant 2 : index
    %c0_45 = arith.constant 0 : index
    %81 = vector.load %arg3[%c0_43, %c0_44, %c2, %c0_45] : memref<1x1x18x128xf32, #tpu.memory_space<vmem>>, vector<1x1x16x128xf32>
    %82 = vector.shape_cast %81 : vector<1x1x16x128xf32> to vector<16x128xf32>
    %83 = vector.broadcast %12 : vector<1x128xf32> to vector<16x128xf32>
    %84 = arith.mulf %82, %83 : vector<16x128xf32>
    %85 = vector.broadcast %13 : vector<1x128xf32> to vector<16x128xf32>
    %86 = arith.addf %84, %85 : vector<16x128xf32>
    %cst_46 = arith.constant 0.000000e+00 : f32
    %87 = vector.broadcast %cst_46 : f32 to vector<16x128xf32>
    %88 = arith.maximumf %86, %87 : vector<16x128xf32>
    %89 = tpu.iota {dimensions = array<i32: 0>} : vector<16x1xi32>
    %c1_i32_47 = arith.constant 1 : i32
    %90 = vector.broadcast %c1_i32_47 : i32 to vector<16x1xi32>
    %91 = arith.muli %89, %90 : vector<16x1xi32>
    %c2_i32 = arith.constant 2 : i32
    %92 = vector.broadcast %c2_i32 : i32 to vector<16x1xi32>
    %93 = arith.addi %91, %92 : vector<16x1xi32>
    %c1_i32_48 = arith.constant 1 : i32
    %94 = vector.broadcast %c1_i32_48 : i32 to vector<16x1xi32>
    %95 = arith.cmpi sge, %93, %94 : vector<16x1xi32>
    %c16_i32_49 = arith.constant 16 : i32
    %96 = vector.broadcast %c16_i32_49 : i32 to vector<16x1xi32>
    %97 = arith.cmpi sle, %93, %96 : vector<16x1xi32>
    %98 = arith.andi %95, %97 : vector<16x1xi1>
    %99 = vector.broadcast %16 : i1 to vector<16x1xi1>
    %100 = arith.andi %99, %98 : vector<16x1xi1>
    %cst_50 = arith.constant 0.000000e+00 : f32
    %101 = vector.shape_cast %100 : vector<16x1xi1> to vector<16x1xi1>
    %102 = vector.broadcast %101 : vector<16x1xi1> to vector<16x128xi1>
    %103 = vector.broadcast %cst_50 : f32 to vector<16x128xf32>
    %104 = arith.select %102, %88, %103 : vector<16x128xi1>, vector<16x128xf32>
    %c0_51 = arith.constant 0 : index
    %c0_52 = arith.constant 0 : index
    %105 = vector.load %arg11[%c0_51, %c0_52] : memref<16x128xf32, #tpu.memory_space<vmem>>, vector<16x128xf32>
    %106 = arith.truncf %104 : vector<16x128xf32> to vector<16x128xbf16>
    %107 = arith.index_cast %arg2 : i32 to index
    %c2_53 = arith.constant 2 : index
    %c0_54 = arith.constant 0 : index
    %c0_55 = arith.constant 0 : index
    %108 = vector.load %arg4[%107, %c2_53, %c0_54, %c0_55] : memref<3x3x128x128xbf16, #tpu.memory_space<vmem>>, vector<1x1x128x128xbf16>
    %109 = vector.shape_cast %108 : vector<1x1x128x128xbf16> to vector<128x128xbf16>
    %cst_56 = arith.constant dense<0.000000e+00> : vector<16x128xf32>
    %110 = tpu.matmul %106, %109, %cst_56 {dimension_numbers = #tpu.dot_dimension_numbers<[1], [0], [0], [1], [0, 0, 1, 1], [], []>} : vector<16x128xbf16>, vector<128x128xbf16>, vector<16x128xf32> -> vector<16x128xf32>
    %111 = arith.addf %105, %110 : vector<16x128xf32>
    %c0_57 = arith.constant 0 : index
    %c0_58 = arith.constant 0 : index
    %112 = vector.load %arg11[%c0_57, %c0_58] : memref<16x128xf32, #tpu.memory_space<vmem>>, vector<16x128xf32>
    tpu.vector_store %arg11[%c0_57, %c0_58], %111 {strides = array<i32>} : memref<16x128xf32, #tpu.memory_space<vmem>>, vector<16x128xf32>,
    %c2_i32_59 = arith.constant 2 : i32
    %113 = arith.cmpi eq, %arg2, %c2_i32_59 : i32
    %114 = arith.extui %113 : i1 to i32
    %c0_i32_60 = arith.constant 0 : i32
    %115 = arith.cmpi ne, %114, %c0_i32_60 : i32
    scf.if %115 {
      %c0_61 = arith.constant 0 : index
      %c0_62 = arith.constant 0 : index
      %116 = vector.load %arg11[%c0_61, %c0_62] : memref<16x128xf32, #tpu.memory_space<vmem>>, vector<16x128xf32>
      %117 = vector.shape_cast %116 : vector<16x128xf32> to vector<1x1x16x128xf32>
      %c0_63 = arith.constant 0 : index
      %c0_64 = arith.constant 0 : index
      %c0_65 = arith.constant 0 : index
      %c0_66 = arith.constant 0 : index
      %118 = vector.load %arg8[%c0_63, %c0_64, %c0_65, %c0_66] : memref<1x1x16x128xf32, #tpu.memory_space<vmem>>, vector<1x1x16x128xf32>
      tpu.vector_store %arg8[%c0_63, %c0_64, %c0_65, %c0_66], %117 {strides = array<i32>} : memref<1x1x16x128xf32, #tpu.memory_space<vmem>>, vector<1x1x16x128xf32>,
      %c0_67 = arith.constant 0 : index
      %c0_68 = arith.constant 0 : index
      %119 = vector.load %arg9[%c0_67, %c0_68] : memref<1x128xf32, #tpu.memory_space<vmem>>, vector<1x128xf32>
      %cst_69 = arith.constant dense<0.000000e+00> : vector<128xf32>
      %120 = vector.multi_reduction <add>, %116, %cst_69 [0] : vector<16x128xf32> to vector<128xf32>
      %121 = vector.shape_cast %120 : vector<128xf32> to vector<1x128xf32>
      %122 = arith.addf %119, %121 : vector<1x128xf32>
      %c0_70 = arith.constant 0 : index
      %c0_71 = arith.constant 0 : index
      %123 = vector.load %arg9[%c0_70, %c0_71] : memref<1x128xf32, #tpu.memory_space<vmem>>, vector<1x128xf32>
      tpu.vector_store %arg9[%c0_70, %c0_71], %122 {strides = array<i32>} : memref<1x128xf32, #tpu.memory_space<vmem>>, vector<1x128xf32>,
      %c0_72 = arith.constant 0 : index
      %c0_73 = arith.constant 0 : index
      %124 = vector.load %arg10[%c0_72, %c0_73] : memref<1x128xf32, #tpu.memory_space<vmem>>, vector<1x128xf32>
      %125 = arith.mulf %116, %116 : vector<16x128xf32>
      %cst_74 = arith.constant dense<0.000000e+00> : vector<128xf32>
      %126 = vector.multi_reduction <add>, %125, %cst_74 [0] : vector<16x128xf32> to vector<128xf32>
      %127 = vector.shape_cast %126 : vector<128xf32> to vector<1x128xf32>
      %128 = arith.addf %124, %127 : vector<1x128xf32>
      %c0_75 = arith.constant 0 : index
      %c0_76 = arith.constant 0 : index
      %129 = vector.load %arg10[%c0_75, %c0_76] : memref<1x128xf32, #tpu.memory_space<vmem>>, vector<1x128xf32>
      tpu.vector_store %arg10[%c0_75, %c0_76], %128 {strides = array<i32>} : memref<1x128xf32, #tpu.memory_space<vmem>>, vector<1x128xf32>,
    } else {
    }
    return
  }
  func.func @transform_0(%arg0: i32, %arg1: i32, %arg2: i32) -> (i32, i32, i32, i32) {
    %c1_i32 = arith.constant 1 : i32
    %0 = arith.muli %arg1, %c1_i32 : i32
    %1 = arith.addi %0, %arg2 : i32
    %c0_i32 = arith.constant 0 : i32
    %c0_i32_0 = arith.constant 0 : i32
    %c0_i32_1 = arith.constant 0 : i32
    return %arg0, %1, %c0_i32, %c0_i32_0 : i32, i32, i32, i32
  }
  func.func @transform_1(%arg0: i32, %arg1: i32, %arg2: i32) -> (i32, i32, i32, i32) {
    %c0_i32 = arith.constant 0 : i32
    %c0_i32_0 = arith.constant 0 : i32
    %c0_i32_1 = arith.constant 0 : i32
    %c0_i32_2 = arith.constant 0 : i32
    %c0_i32_3 = arith.constant 0 : i32
    return %c0_i32, %c0_i32_0, %c0_i32_1, %c0_i32_2 : i32, i32, i32, i32
  }
  func.func @transform_2(%arg0: i32, %arg1: i32, %arg2: i32) -> (i32, i32) {
    %c0_i32 = arith.constant 0 : i32
    %c0_i32_0 = arith.constant 0 : i32
    %c0_i32_1 = arith.constant 0 : i32
    return %c0_i32, %c0_i32_0 : i32, i32
  }
  func.func @transform_3(%arg0: i32, %arg1: i32, %arg2: i32) -> (i32, i32) {
    %c0_i32 = arith.constant 0 : i32
    %c0_i32_0 = arith.constant 0 : i32
    %c0_i32_1 = arith.constant 0 : i32
    return %c0_i32, %c0_i32_0 : i32, i32
  }
  func.func @transform_4(%arg0: i32, %arg1: i32, %arg2: i32) -> (i32, i32) {
    %c0_i32 = arith.constant 0 : i32
    %c0_i32_0 = arith.constant 0 : i32
    %c0_i32_1 = arith.constant 0 : i32
    return %c0_i32, %c0_i32_0 : i32, i32
  }
  func.func @transform_5(%arg0: i32, %arg1: i32, %arg2: i32) -> (i32, i32, i32, i32) {
    %c0_i32 = arith.constant 0 : i32
    %c0_i32_0 = arith.constant 0 : i32
    %c0_i32_1 = arith.constant 0 : i32
    return %arg0, %arg1, %c0_i32, %c0_i32_0 : i32, i32, i32, i32
  }
  func.func @transform_6(%arg0: i32, %arg1: i32, %arg2: i32) -> (i32, i32) {
    %c0_i32 = arith.constant 0 : i32
    %c0_i32_0 = arith.constant 0 : i32
    %c0_i32_1 = arith.constant 0 : i32
    return %c0_i32, %c0_i32_0 : i32, i32
  }
  func.func @transform_7(%arg0: i32, %arg1: i32, %arg2: i32) -> (i32, i32) {
    %c0_i32 = arith.constant 0 : i32
    %c0_i32_0 = arith.constant 0 : i32
    %c0_i32_1 = arith.constant 0 : i32
    return %c0_i32, %c0_i32_0 : i32, i32
  }
}

module attributes {stable_mosaic.version = 11 : i64} {
  func.func @_bn_add_relu_kernel(%arg0: i32, %arg1: memref<512x128xf32, #tpu.memory_space<vmem>>, %arg2: memref<1x128xf32, #tpu.memory_space<vmem>>, %arg3: memref<1x128xf32, #tpu.memory_space<vmem>>, %arg4: memref<512x128xf32, #tpu.memory_space<vmem>>, %arg5: memref<1x128xf32, #tpu.memory_space<vmem>>, %arg6: memref<1x128xf32, #tpu.memory_space<vmem>>, %arg7: memref<512x128xf32, #tpu.memory_space<vmem>>) attributes {dimension_semantics = [#tpu.dimension_semantics<parallel>], iteration_bounds = array<i64: 1>, scalar_prefetch = 0 : i64, scratch_operands = 0 : i64, tpu.core_type = #tpu.core_type<tc>, window_params = [{transform_indices = @transform_0, window_bounds = array<i64: 512, 128>}, {pipeline_mode = #tpu.pipeline_mode<synchronous>, transform_indices = @transform_1, window_bounds = array<i64: 1, 128>}, {pipeline_mode = #tpu.pipeline_mode<synchronous>, transform_indices = @transform_2, window_bounds = array<i64: 1, 128>}, {transform_indices = @transform_3, window_bounds = array<i64: 512, 128>}, {pipeline_mode = #tpu.pipeline_mode<synchronous>, transform_indices = @transform_4, window_bounds = array<i64: 1, 128>}, {pipeline_mode = #tpu.pipeline_mode<synchronous>, transform_indices = @transform_5, window_bounds = array<i64: 1, 128>}, {transform_indices = @transform_6, window_bounds = array<i64: 512, 128>}]} {
    %c0 = arith.constant 0 : index
    %c0_0 = arith.constant 0 : index
    %0 = vector.load %arg1[%c0, %c0_0] : memref<512x128xf32, #tpu.memory_space<vmem>>, vector<512x128xf32>
    %c0_1 = arith.constant 0 : index
    %c0_2 = arith.constant 0 : index
    %1 = vector.load %arg2[%c0_1, %c0_2] : memref<1x128xf32, #tpu.memory_space<vmem>>, vector<1x128xf32>
    %2 = vector.broadcast %1 : vector<1x128xf32> to vector<512x128xf32>
    %3 = arith.mulf %0, %2 : vector<512x128xf32>
    %c0_3 = arith.constant 0 : index
    %c0_4 = arith.constant 0 : index
    %4 = vector.load %arg3[%c0_3, %c0_4] : memref<1x128xf32, #tpu.memory_space<vmem>>, vector<1x128xf32>
    %5 = vector.broadcast %4 : vector<1x128xf32> to vector<512x128xf32>
    %6 = arith.addf %3, %5 : vector<512x128xf32>
    %c0_5 = arith.constant 0 : index
    %c0_6 = arith.constant 0 : index
    %7 = vector.load %arg4[%c0_5, %c0_6] : memref<512x128xf32, #tpu.memory_space<vmem>>, vector<512x128xf32>
    %c0_7 = arith.constant 0 : index
    %c0_8 = arith.constant 0 : index
    %8 = vector.load %arg5[%c0_7, %c0_8] : memref<1x128xf32, #tpu.memory_space<vmem>>, vector<1x128xf32>
    %9 = vector.broadcast %8 : vector<1x128xf32> to vector<512x128xf32>
    %10 = arith.mulf %7, %9 : vector<512x128xf32>
    %11 = arith.addf %6, %10 : vector<512x128xf32>
    %c0_9 = arith.constant 0 : index
    %c0_10 = arith.constant 0 : index
    %12 = vector.load %arg6[%c0_9, %c0_10] : memref<1x128xf32, #tpu.memory_space<vmem>>, vector<1x128xf32>
    %13 = vector.broadcast %12 : vector<1x128xf32> to vector<512x128xf32>
    %14 = arith.addf %11, %13 : vector<512x128xf32>
    %cst = arith.constant 0.000000e+00 : f32
    %15 = vector.broadcast %cst : f32 to vector<512x128xf32>
    %16 = arith.maximumf %14, %15 : vector<512x128xf32>
    %c0_11 = arith.constant 0 : index
    %c0_12 = arith.constant 0 : index
    %17 = vector.load %arg7[%c0_11, %c0_12] : memref<512x128xf32, #tpu.memory_space<vmem>>, vector<512x128xf32>
    tpu.vector_store %arg7[%c0_11, %c0_12], %16 {strides = array<i32>} : memref<512x128xf32, #tpu.memory_space<vmem>>, vector<512x128xf32>,
    return
  }
  func.func @transform_0(%arg0: i32) -> (i32, i32) {
    %c0_i32 = arith.constant 0 : i32
    %c0_i32_0 = arith.constant 0 : i32
    return %arg0, %c0_i32 : i32, i32
  }
  func.func @transform_1(%arg0: i32) -> (i32, i32) {
    %c0_i32 = arith.constant 0 : i32
    %c0_i32_0 = arith.constant 0 : i32
    %c0_i32_1 = arith.constant 0 : i32
    return %c0_i32, %c0_i32_0 : i32, i32
  }
  func.func @transform_2(%arg0: i32) -> (i32, i32) {
    %c0_i32 = arith.constant 0 : i32
    %c0_i32_0 = arith.constant 0 : i32
    %c0_i32_1 = arith.constant 0 : i32
    return %c0_i32, %c0_i32_0 : i32, i32
  }
  func.func @transform_3(%arg0: i32) -> (i32, i32) {
    %c0_i32 = arith.constant 0 : i32
    %c0_i32_0 = arith.constant 0 : i32
    return %arg0, %c0_i32 : i32, i32
  }
  func.func @transform_4(%arg0: i32) -> (i32, i32) {
    %c0_i32 = arith.constant 0 : i32
    %c0_i32_0 = arith.constant 0 : i32
    %c0_i32_1 = arith.constant 0 : i32
    return %c0_i32, %c0_i32_0 : i32, i32
  }
  func.func @transform_5(%arg0: i32) -> (i32, i32) {
    %c0_i32 = arith.constant 0 : i32
    %c0_i32_0 = arith.constant 0 : i32
    %c0_i32_1 = arith.constant 0 : i32
    return %c0_i32, %c0_i32_0 : i32, i32
  }
  func.func @transform_6(%arg0: i32) -> (i32, i32) {
    %c0_i32 = arith.constant 0 : i32
    %c0_i32_0 = arith.constant 0 : i32
    return %arg0, %c0_i32 : i32, i32
  }
}

</mosaic_0001>

<bundles_post_ra>
// kernel: bottleneck_forward.7
= control target key start
LH: loop header
LB: loop body
LE: loop exit
PB: predicated region body
PF: predicated region fallthrough
CT: control target
= control target key end

     0   :  { %s1510_s0 = inlined_call_operand.vmem [shape: f32[512,128], index: 0, kind: input, shape index: {}]   ;;  %s1511_s1 = inlined_call_operand.vmem [shape: f32[1,128], index: 1, kind: input, shape index: {}]   ;;  %s1512_s2 = inlined_call_operand.vmem [shape: f32[1,128], index: 2, kind: input, shape index: {}]   ;;  %s1513_s3 = inlined_call_operand.vmem [shape: f32[512,128], index: 3, kind: input, shape index: {}]   ;;  %s1514_s4 = inlined_call_operand.vmem [shape: f32[1,128], index: 4, kind: input, shape index: {}]   ;;  %s1515_s5 = inlined_call_operand.vmem [shape: f32[1,128], index: 5, kind: input, shape index: {}]   ;;  %s1516_s6 = inlined_call_operand.vmem [shape: f32[512,128], index: 6, kind: output, shape index: {}]  }
   0x1   :  { %v23_v0 = vld [vmem:[%s1510_s0] sm:$0xff]  ;;  %v24_v8 = vld [vmem:[%s1510_s0 + $0x8] sm:$0xff]  ;;  %v25_v10 = vld [vmem:[%s1510_s0 + $0x10] sm:$0xff] }
   0x2   :  { %v680_v1 = vld [vmem:[%s1511_s1] ss:$0 sm:$0xff]  ;;  %v230_v9 = vld [vmem:[%s1513_s3 + $0x8] sm:$0xff]  ;;  %v231_v15 = vld [vmem:[%s1513_s3 + $0x10] sm:$0xff] }
   0x3   :  { %v685_v2 = vld [vmem:[%s1512_s2] ss:$0 sm:$0xff]  ;;  %v94_v3 = vmul.f32 %v680_v1, %v23_v0  ;;  %v95_v12 = vmul.f32 %v680_v1, %v24_v8  ;;  %v96_v14 = vmul.f32 %v680_v1, %v25_v10  ;;  %v26_v16 = vld [vmem:[%s1510_s0 + $0x18] sm:$0xff]  ;;  %v28_v23 = vld [vmem:[%s1510_s0 + $0x28] sm:$0xff] }
   0x4   :  { %v229_v4 = vld [vmem:[%s1513_s3] sm:$0xff]  ;;  %v232_v17 = vld [vmem:[%s1513_s3 + $0x18] sm:$0xff]  ;;  %v97_v19 = vmul.f32 %v680_v1, %v26_v16  ;;  %v234_v28 = vld [vmem:[%s1513_s3 + $0x28] sm:$0xff]  ;;  %v99_v33 = vmul.f32 %v680_v1, %v28_v23 }
   0x5   :  { %v694_v5 = vld [vmem:[%s1514_s4] ss:$0 sm:$0xff]  ;;  %v165_v11 = vadd.f32 %v685_v2, %v94_v3  ;;  %v166_v25 = vadd.f32 %v685_v2, %v95_v12  ;;  %v167_v26 = vadd.f32 %v685_v2, %v96_v14  ;;  %v29_v29 = vld [vmem:[%s1510_s0 + $0x30] sm:$0xff]  ;;  %v30_v39 = vld [vmem:[%s1510_s0 + $0x38] sm:$0xff] }
   0x6   :  { %v300_v6 = vmul.f32 %v694_v5, %v229_v4  ;;  %v700_v7 = vld [vmem:[%s1515_s5] ss:$0 sm:$0xff]  ;;  %v301_v13 = vmul.f32 %v694_v5, %v230_v9  ;;  %v302_v18 = vmul.f32 %v694_v5, %v231_v15  ;;  %v303_v20 = vmul.f32 %v694_v5, %v232_v17  ;;  %v235_v30 = vld [vmem:[%s1513_s3 + $0x30] sm:$0xff]  ;;  %v236_v44 = vld [vmem:[%s1513_s3 + $0x38] sm:$0xff] }
   0x7   :  { %v27_v21 = vld [vmem:[%s1510_s0 + $0x20] sm:$0xff]  ;;  %v168_v31 = vadd.f32 %v685_v2, %v97_v19  ;;  %v305_v34 = vmul.f32 %v694_v5, %v234_v28  ;;  %v170_v41 = vadd.f32 %v685_v2, %v99_v33  ;;  %v100_v42 = vmul.f32 %v680_v1, %v29_v29  ;;  %v32_v55 = vld [vmem:[%s1510_s0 + $0x48] sm:$0xff]  ;;  %v33_v3 = vld [vmem:[%s1510_s0 + $0x50] sm:$0xff] }
   0x8   :  { %v233_v22 = vld [vmem:[%s1513_s3 + $0x20] sm:$0xff]  ;;  %v364_v24 = vadd.f32 %v300_v6, %v165_v11  ;;  %v98_v27 = vmul.f32 %v680_v1, %v27_v21  ;;  %v365_v36 = vadd.f32 %v301_v13, %v166_v25  ;;  %v366_v37 = vadd.f32 %v302_v18, %v167_v26  ;;  %v238_v60 = vld [vmem:[%s1513_s3 + $0x48] sm:$0xff]  ;;  %v239_v4 = vld [vmem:[%s1513_s3 + $0x50] sm:$0xff] }
   0x9   :  { %v304_v32 = vmul.f32 %v694_v5, %v233_v22  ;;  %v367_v40 = vadd.f32 %v303_v20, %v168_v31  ;;  %v306_v43 = vmul.f32 %v694_v5, %v235_v30  ;;  %v369_v50 = vadd.f32 %v305_v34, %v170_v41  ;;  %v31_v53 = vld [vmem:[%s1510_s0 + $0x40] sm:$0xff]  ;;  %v34_v11 = vld [vmem:[%s1510_s0 + $0x58] sm:$0xff]  ;;  %v36_v23 = vld [vmem:[%s1510_s0 + $0x68] sm:$0xff] }
   0xa   :  { %v435_v35 = vadd.f32 %v700_v7, %v364_v24  ;;  %v169_v38 = vadd.f32 %v685_v2, %v98_v27  ;;  %v436_v46 = vadd.f32 %v700_v7, %v365_v36  ;;  %v437_v47 = vadd.f32 %v700_v7, %v366_v37  ;;  %v237_v54 = vld [vmem:[%s1513_s3 + $0x40] sm:$0xff]  ;;  %v240_v12 = vld [vmem:[%s1513_s3 + $0x58] sm:$0xff]  ;;  %v37_v33 = vld [vmem:[%s1510_s0 + $0x70] sm:$0xff] }
   0xb   :  { %v438_v49 = vadd.f32 %v700_v7, %v367_v40  ;;  %v171_v51 = vadd.f32 %v685_v2, %v100_v42  ;;  %v101_v52 = vmul.f32 %v680_v1, %v30_v39  ;;  %v307_v59 = vmul.f32 %v694_v5, %v236_v44  ;;  %v35_v17 = vld [vmem:[%s1510_s0 + $0x60] sm:$0xff]  ;;  %v243_v42 = vld [vmem:[%s1513_s3 + $0x70] sm:$0xff] }
   0xc   :  { %v499_v45 = vmax.f32 %v435_v35, 0.0  ;;  %v368_v48 = vadd.f32 %v304_v32, %v169_v38  ;;  %v500_v56 = vmax.f32 %v436_v46, 0.0  ;;  %v501_v57 = vmax.f32 %v437_v47, 0.0  ;;  %v241_v22 = vld [vmem:[%s1513_s3 + $0x60] sm:$0xff]  ;;  %v242_v32 = vld [vmem:[%s1513_s3 + $0x68] sm:$0xff]  ;;  %v38_v47 = vld [vmem:[%s1510_s0 + $0x78] sm:$0xff] }
   0xd   :  { %v502_v61 = vmax.f32 %v438_v49, 0.0  ;;  %v440_v62 = vadd.f32 %v700_v7, %v369_v50  ;;  %v370_v63 = vadd.f32 %v306_v43, %v171_v51  ;;  %v172_v0 = vadd.f32 %v685_v2, %v101_v52 }
   0xe   :  { %563 = vst [vmem:[%s1516_s6] sm:$0xff] %v499_v45  ;;  %v439_v58 = vadd.f32 %v700_v7, %v368_v48  ;;  %564 = vst [vmem:[%s1516_s6 + $0x8] sm:$0xff] %v500_v56  ;;  %v102_v8 = vmul.f32 %v680_v1, %v31_v53  ;;  %v308_v9 = vmul.f32 %v694_v5, %v237_v54  ;;  %v244_v48 = vld [vmem:[%s1513_s3 + $0x78] sm:$0xff]  ;;  %v39_v53 = vld [vmem:[%s1510_s0 + $0x80] sm:$0xff] }
   0xf   :  { %565 = vst [vmem:[%s1516_s6 + $0x10] sm:$0xff] %v501_v57  ;;  %v103_v10 = vmul.f32 %v680_v1, %v32_v55  ;;  %566 = vst [vmem:[%s1516_s6 + $0x18] sm:$0xff] %v502_v61  ;;  %v504_v13 = vmax.f32 %v440_v62, 0.0  ;;  %v441_v14 = vadd.f32 %v700_v7, %v370_v63  ;;  %v371_v15 = vadd.f32 %v307_v59, %v172_v0  ;;  %v40_v59 = vld [vmem:[%s1510_s0 + $0x88] sm:$0xff] }
  0x10   :  { %v503_v6 = vmax.f32 %v439_v58, 0.0  ;;  %v309_v16 = vmul.f32 %v694_v5, %v238_v60  ;;  %v173_v18 = vadd.f32 %v685_v2, %v102_v8  ;;  %v104_v20 = vmul.f32 %v680_v1, %v33_v3  ;;  %v245_v58 = vld [vmem:[%s1513_s3 + $0x80] sm:$0xff]  ;;  %v246_v0 = vld [vmem:[%s1513_s3 + $0x88] sm:$0xff] }
  0x11   :  { %v174_v19 = vadd.f32 %v685_v2, %v103_v10  ;;  %v310_v21 = vmul.f32 %v694_v5, %v239_v4  ;;  %568 = vst [vmem:[%s1516_s6 + $0x28] sm:$0xff] %v504_v13  ;;  %v505_v24 = vmax.f32 %v441_v14, 0.0  ;;  %v442_v25 = vadd.f32 %v700_v7, %v371_v15  ;;  %v247_v10 = vld [vmem:[%s1513_s3 + $0x90] sm:$0xff]  ;;  %v42_v15 = vld [vmem:[%s1510_s0 + $0x98] sm:$0xff] }
  0x12   :  { %567 = vst [vmem:[%s1516_s6 + $0x20] sm:$0xff] %v503_v6  ;;  %v105_v26 = vmul.f32 %v680_v1, %v34_v11  ;;  %v311_v27 = vmul.f32 %v694_v5, %v240_v12  ;;  %v372_v28 = vadd.f32 %v308_v9, %v173_v18  ;;  %v175_v30 = vadd.f32 %v685_v2, %v104_v20  ;;  %v41_v9 = vld [vmem:[%s1510_s0 + $0x90] sm:$0xff] }
  0x13   :  { %v373_v29 = vadd.f32 %v309_v16, %v174_v19  ;;  %v106_v31 = vmul.f32 %v680_v1, %v35_v17  ;;  %569 = vst [vmem:[%s1516_s6 + $0x30] sm:$0xff] %v505_v24  ;;  %v506_v34 = vmax.f32 %v442_v25, 0.0  ;;  %v312_v36 = vmul.f32 %v694_v5, %v241_v22  ;;  %v248_v16 = vld [vmem:[%s1513_s3 + $0x98] sm:$0xff] }
  0x14   :  { %v176_v35 = vadd.f32 %v685_v2, %v105_v26  ;;  %v107_v37 = vmul.f32 %v680_v1, %v36_v23  ;;  %v443_v38 = vadd.f32 %v700_v7, %v372_v28  ;;  %v374_v40 = vadd.f32 %v310_v21, %v175_v30  ;;  %v43_v21 = vld [vmem:[%s1510_s0 + $0xa0] sm:$0xff] }
  0x15   :  { %v444_v39 = vadd.f32 %v700_v7, %v373_v29  ;;  %v177_v41 = vadd.f32 %v685_v2, %v106_v31  ;;  %570 = vst [vmem:[%s1516_s6 + $0x38] sm:$0xff] %v506_v34  ;;  %v313_v45 = vmul.f32 %v694_v5, %v242_v32  ;;  %v108_v46 = vmul.f32 %v680_v1, %v37_v33  ;;  %v249_v26 = vld [vmem:[%s1513_s3 + $0xa0] sm:$0xff] }
  0x16   :  { %v375_v43 = vadd.f32 %v311_v27, %v176_v35  ;;  %v178_v44 = vadd.f32 %v685_v2, %v107_v37  ;;  %v507_v49 = vmax.f32 %v443_v38, 0.0  ;;  %v445_v51 = vadd.f32 %v700_v7, %v374_v40  ;;  %v44_v27 = vld [vmem:[%s1510_s0 + $0xa8] sm:$0xff] }
  0x17   :  { %v508_v50 = vmax.f32 %v444_v39, 0.0  ;;  %v376_v52 = vadd.f32 %v312_v36, %v177_v41  ;;  %v179_v56 = vadd.f32 %v685_v2, %v108_v46  ;;  %v314_v57 = vmul.f32 %v694_v5, %v243_v42  ;;  %v250_v36 = vld [vmem:[%s1513_s3 + $0xa8] sm:$0xff]  ;;  %v45_v41 = vld [vmem:[%s1510_s0 + $0xb0] sm:$0xff] }
  0x18   :  { %v446_v54 = vadd.f32 %v700_v7, %v375_v43  ;;  %v377_v55 = vadd.f32 %v313_v45, %v178_v44  ;;  %571 = vst [vmem:[%s1516_s6 + $0x40] sm:$0xff] %v507_v49  ;;  %v509_v60 = vmax.f32 %v445_v51, 0.0  ;;  %v109_v62 = vmul.f32 %v680_v1, %v38_v47  ;;  %v251_v46 = vld [vmem:[%s1513_s3 + $0xb0] sm:$0xff]  ;;  %v46_v47 = vld [vmem:[%s1510_s0 + $0xb8] sm:$0xff] }
  0x19   :  { %572 = vst [vmem:[%s1516_s6 + $0x48] sm:$0xff] %v508_v50  ;;  %v447_v61 = vadd.f32 %v700_v7, %v376_v52  ;;  %v315_v63 = vmul.f32 %v694_v5, %v244_v48  ;;  %v378_v6 = vadd.f32 %v314_v57, %v179_v56  ;;  %v110_v8 = vmul.f32 %v680_v1, %v39_v53  ;;  %v252_v52 = vld [vmem:[%s1513_s3 + $0xb8] sm:$0xff]  ;;  %v47_v57 = vld [vmem:[%s1510_s0 + $0xc0] sm:$0xff] }
  0x1a   :  { %v510_v3 = vmax.f32 %v446_v54, 0.0  ;;  %v448_v4 = vadd.f32 %v700_v7, %v377_v55  ;;  %573 = vst [vmem:[%s1516_s6 + $0x50] sm:$0xff] %v509_v60  ;;  %v180_v12 = vadd.f32 %v685_v2, %v109_v62  ;;  %v316_v13 = vmul.f32 %v694_v5, %v245_v58  ;;  %v253_v62 = vld [vmem:[%s1513_s3 + $0xc0] sm:$0xff] }
  0x1b   :  { %v511_v11 = vmax.f32 %v447_v61, 0.0  ;;  %v111_v14 = vmul.f32 %v680_v1, %v40_v59  ;;  %v449_v18 = vadd.f32 %v700_v7, %v378_v6  ;;  %v181_v19 = vadd.f32 %v685_v2, %v110_v8  ;;  %v254_v8 = vld [vmem:[%s1513_s3 + $0xc8] sm:$0xff] }
  0x1c   :  { %574 = vst [vmem:[%s1516_s6 + $0x58] sm:$0xff] %v510_v3  ;;  %v512_v17 = vmax.f32 %v448_v4, 0.0  ;;  %v317_v20 = vmul.f32 %v694_v5, %v246_v0  ;;  %v379_v22 = vadd.f32 %v315_v63, %v180_v12  ;;  %v112_v24 = vmul.f32 %v680_v1, %v41_v9  ;;  %v48_v63 = vld [vmem:[%s1510_s0 + $0xc8] sm:$0xff] }
  0x1d   :  { %575 = vst [vmem:[%s1516_s6 + $0x60] sm:$0xff] %v511_v11  ;;  %v182_v23 = vadd.f32 %v685_v2, %v111_v14  ;;  %v318_v25 = vmul.f32 %v694_v5, %v247_v10  ;;  %v513_v28 = vmax.f32 %v449_v18, 0.0  ;;  %v380_v29 = vadd.f32 %v316_v13, %v181_v19  ;;  %v49_v13 = vld [vmem:[%s1510_s0 + $0xd0] sm:$0xff]  ;;  %v50_v19 = vld [vmem:[%s1510_s0 + $0xd8] sm:$0xff] }
  0x1e   :  { %576 = vst [vmem:[%s1516_s6 + $0x68] sm:$0xff] %v512_v17  ;;  %v113_v30 = vmul.f32 %v680_v1, %v42_v15  ;;  %v319_v31 = vmul.f32 %v694_v5, %v248_v16  ;;  %v450_v32 = vadd.f32 %v700_v7, %v379_v22  ;;  %v183_v34 = vadd.f32 %v685_v2, %v112_v24  ;;  %v255_v14 = vld [vmem:[%s1513_s3 + $0xd0] sm:$0xff] }
  0x1f   :  { %v381_v33 = vadd.f32 %v317_v20, %v182_v23  ;;  %v114_v35 = vmul.f32 %v680_v1, %v43_v21  ;;  %577 = vst [vmem:[%s1516_s6 + $0x70] sm:$0xff] %v513_v28  ;;  %v451_v37 = vadd.f32 %v700_v7, %v380_v29  ;;  %v320_v39 = vmul.f32 %v694_v5, %v249_v26  ;;  %v256_v20 = vld [vmem:[%s1513_s3 + $0xd8] sm:$0xff] }
  0x20   :  { %v184_v38 = vadd.f32 %v685_v2, %v113_v30  ;;  %v115_v40 = vmul.f32 %v680_v1, %v44_v27  ;;  %v514_v42 = vmax.f32 %v450_v32, 0.0  ;;  %v382_v44 = vadd.f32 %v318_v25, %v183_v34  ;;  %v51_v25 = vld [vmem:[%s1510_s0 + $0xe0] sm:$0xff] }
  0x21   :  { %v452_v43 = vadd.f32 %v700_v7, %v381_v33  ;;  %v185_v45 = vadd.f32 %v685_v2, %v114_v35  ;;  %v515_v48 = vmax.f32 %v451_v37, 0.0  ;;  %v321_v51 = vmul.f32 %v694_v5, %v250_v36  ;;  %v257_v30 = vld [vmem:[%s1513_s3 + $0xe0] sm:$0xff]  ;;  %v52_v35 = vld [vmem:[%s1510_s0 + $0xe8] sm:$0xff] }
  0x22   :  { %v383_v49 = vadd.f32 %v319_v31, %v184_v38  ;;  %v186_v50 = vadd.f32 %v685_v2, %v115_v40  ;;  %578 = vst [vmem:[%s1516_s6 + $0x78] sm:$0xff] %v514_v42  ;;  %v453_v54 = vadd.f32 %v700_v7, %v382_v44  ;;  %v116_v56 = vmul.f32 %v680_v1, %v45_v41  ;;  %v258_v40 = vld [vmem:[%s1513_s3 + $0xe8] sm:$0xff]  ;;  %v53_v41 = vld [vmem:[%s1510_s0 + $0xf0] sm:$0xff] }
  0x23   :  { %v516_v53 = vmax.f32 %v452_v43, 0.0  ;;  %v384_v55 = vadd.f32 %v320_v39, %v185_v45  ;;  %579 = vst [vmem:[%s1516_s6 + $0x80] sm:$0xff] %v515_v48  ;;  %v322_v60 = vmul.f32 %v694_v5, %v251_v46  ;;  %v117_v61 = vmul.f32 %v680_v1, %v46_v47 }
  0x24   :  { %v454_v58 = vadd.f32 %v700_v7, %v383_v49  ;;  %v385_v59 = vadd.f32 %v321_v51, %v186_v50  ;;  %v517_v0 = vmax.f32 %v453_v54, 0.0  ;;  %v187_v4 = vadd.f32 %v685_v2, %v116_v56  ;;  %v259_v50 = vld [vmem:[%s1513_s3 + $0xf0] sm:$0xff]  ;;  %v54_v51 = vld [vmem:[%s1510_s0 + $0xf8] sm:$0xff] }
  0x25   :  { %580 = vst [vmem:[%s1516_s6 + $0x88] sm:$0xff] %v516_v53  ;;  %v455_v3 = vadd.f32 %v700_v7, %v384_v55  ;;  %v323_v6 = vmul.f32 %v694_v5, %v252_v52  ;;  %v188_v11 = vadd.f32 %v685_v2, %v117_v61  ;;  %v118_v12 = vmul.f32 %v680_v1, %v47_v57  ;;  %v260_v56 = vld [vmem:[%s1513_s3 + $0xf8] sm:$0xff]  ;;  %v55_v61 = vld [vmem:[%s1510_s0 + $0x100] sm:$0xff] }
  0x26   :  { %v518_v9 = vmax.f32 %v454_v58, 0.0  ;;  %v456_v10 = vadd.f32 %v700_v7, %v385_v59  ;;  %581 = vst [vmem:[%s1516_s6 + $0x90] sm:$0xff] %v517_v0  ;;  %v386_v16 = vadd.f32 %v322_v60, %v187_v4  ;;  %v324_v17 = vmul.f32 %v694_v5, %v253_v62  ;;  %v261_v4 = vld [vmem:[%s1513_s3 + $0x100] sm:$0xff] }
  0x27   :  { %v519_v15 = vmax.f32 %v455_v3, 0.0  ;;  %v119_v18 = vmul.f32 %v680_v1, %v48_v63  ;;  %v387_v22 = vadd.f32 %v323_v6, %v188_v11  ;;  %v189_v23 = vadd.f32 %v685_v2, %v118_v12  ;;  %v56_v6 = vld [vmem:[%s1510_s0 + $0x108] sm:$0xff] }
  0x28   :  { %582 = vst [vmem:[%s1516_s6 + $0x98] sm:$0xff] %v518_v9  ;;  %v520_v21 = vmax.f32 %v456_v10, 0.0  ;;  %v325_v24 = vmul.f32 %v694_v5, %v254_v8  ;;  %v457_v26 = vadd.f32 %v700_v7, %v386_v16  ;;  %v120_v28 = vmul.f32 %v680_v1, %v49_v13  ;;  %v262_v12 = vld [vmem:[%s1513_s3 + $0x108] sm:$0xff] }
  0x29   :  { %583 = vst [vmem:[%s1516_s6 + $0xa0] sm:$0xff] %v519_v15  ;;  %v190_v27 = vadd.f32 %v685_v2, %v119_v18  ;;  %v326_v29 = vmul.f32 %v694_v5, %v255_v14  ;;  %v458_v31 = vadd.f32 %v700_v7, %v387_v22  ;;  %v388_v32 = vadd.f32 %v324_v17, %v189_v23  ;;  %v57_v17 = vld [vmem:[%s1510_s0 + $0x110] sm:$0xff]  ;;  %v58_v23 = vld [vmem:[%s1510_s0 + $0x118] sm:$0xff] }
  0x2a   :  { %584 = vst [vmem:[%s1516_s6 + $0xa8] sm:$0xff] %v520_v21  ;;  %v121_v33 = vmul.f32 %v680_v1, %v50_v19  ;;  %v327_v34 = vmul.f32 %v694_v5, %v256_v20  ;;  %v521_v36 = vmax.f32 %v457_v26, 0.0  ;;  %v191_v38 = vadd.f32 %v685_v2, %v120_v28  ;;  %v263_v18 = vld [vmem:[%s1513_s3 + $0x110] sm:$0xff]  ;;  %v264_v28 = vld [vmem:[%s1513_s3 + $0x118] sm:$0xff] }
  0x2b   :  { %v389_v37 = vadd.f32 %v325_v24, %v190_v27  ;;  %v122_v39 = vmul.f32 %v680_v1, %v51_v25  ;;  %v522_v42 = vmax.f32 %v458_v31, 0.0  ;;  %v459_v43 = vadd.f32 %v700_v7, %v388_v32 }
  0x2c   :  { %v192_v44 = vadd.f32 %v685_v2, %v121_v33  ;;  %v328_v45 = vmul.f32 %v694_v5, %v257_v30  ;;  %585 = vst [vmem:[%s1516_s6 + $0xb0] sm:$0xff] %v521_v36  ;;  %v390_v47 = vadd.f32 %v326_v29, %v191_v38  ;;  %v123_v49 = vmul.f32 %v680_v1, %v52_v35  ;;  %v59_v29 = vld [vmem:[%s1510_s0 + $0x120] sm:$0xff] }
  0x2d   :  { %v460_v46 = vadd.f32 %v700_v7, %v389_v37  ;;  %v193_v48 = vadd.f32 %v685_v2, %v122_v39  ;;  %586 = vst [vmem:[%s1516_s6 + $0xb8] sm:$0xff] %v522_v42  ;;  %v523_v52 = vmax.f32 %v459_v43, 0.0  ;;  %v329_v54 = vmul.f32 %v694_v5, %v258_v40  ;;  %v60_v39 = vld [vmem:[%s1510_s0 + $0x128] sm:$0xff] }
  0x2e   :  { %v391_v53 = vadd.f32 %v327_v34, %v192_v44  ;;  %v124_v55 = vmul.f32 %v680_v1, %v53_v41  ;;  %v461_v58 = vadd.f32 %v700_v7, %v390_v47  ;;  %v194_v60 = vadd.f32 %v685_v2, %v123_v49  ;;  %v265_v34 = vld [vmem:[%s1513_s3 + $0x120] sm:$0xff]  ;;  %v266_v44 = vld [vmem:[%s1513_s3 + $0x128] sm:$0xff] }
  0x2f   :  { %v524_v57 = vmax.f32 %v460_v46, 0.0  ;;  %v392_v59 = vadd.f32 %v328_v45, %v193_v48  ;;  %587 = vst [vmem:[%s1516_s6 + $0xc0] sm:$0xff] %v523_v52  ;;  %v330_v0 = vmul.f32 %v694_v5, %v259_v50  ;;  %v125_v3 = vmul.f32 %v680_v1, %v54_v51  ;;  %v61_v45 = vld [vmem:[%s1510_s0 + $0x130] sm:$0xff] }
  0x30   :  { %v462_v62 = vadd.f32 %v700_v7, %v391_v53  ;;  %v195_v63 = vadd.f32 %v685_v2, %v124_v55  ;;  %v525_v8 = vmax.f32 %v461_v58, 0.0  ;;  %v393_v10 = vadd.f32 %v329_v54, %v194_v60  ;;  %v267_v54 = vld [vmem:[%s1513_s3 + $0x130] sm:$0xff]  ;;  %v62_v55 = vld [vmem:[%s1510_s0 + $0x138] sm:$0xff] }
  0x31   :  { %588 = vst [vmem:[%s1516_s6 + $0xc8] sm:$0xff] %v524_v57  ;;  %v463_v9 = vadd.f32 %v700_v7, %v392_v59  ;;  %v331_v11 = vmul.f32 %v694_v5, %v260_v56  ;;  %v196_v15 = vadd.f32 %v685_v2, %v125_v3  ;;  %v126_v16 = vmul.f32 %v680_v1, %v55_v61  ;;  %v268_v60 = vld [vmem:[%s1513_s3 + $0x138] sm:$0xff]  ;;  %v63_v3 = vld [vmem:[%s1510_s0 + $0x140] sm:$0xff] }
  0x32   :  { %v526_v13 = vmax.f32 %v462_v62, 0.0  ;;  %v394_v14 = vadd.f32 %v330_v0, %v195_v63  ;;  %589 = vst [vmem:[%s1516_s6 + $0xd0] sm:$0xff] %v525_v8  ;;  %v464_v20 = vadd.f32 %v700_v7, %v393_v10  ;;  %v332_v21 = vmul.f32 %v694_v5, %v261_v4  ;;  %v269_v10 = vld [vmem:[%s1513_s3 + $0x140] sm:$0xff] }
  0x33   :  { %v527_v19 = vmax.f32 %v463_v9, 0.0  ;;  %v127_v22 = vmul.f32 %v680_v1, %v56_v6  ;;  %v395_v25 = vadd.f32 %v331_v11, %v196_v15  ;;  %v197_v26 = vadd.f32 %v685_v2, %v126_v16  ;;  %v64_v11 = vld [vmem:[%s1510_s0 + $0x148] sm:$0xff] }
  0x34   :  { %590 = vst [vmem:[%s1516_s6 + $0xd8] sm:$0xff] %v526_v13  ;;  %v465_v24 = vadd.f32 %v700_v7, %v394_v14  ;;  %v333_v27 = vmul.f32 %v694_v5, %v262_v12  ;;  %v528_v30 = vmax.f32 %v464_v20, 0.0  ;;  %v128_v32 = vmul.f32 %v680_v1, %v57_v17  ;;  %v270_v16 = vld [vmem:[%s1513_s3 + $0x148] sm:$0xff] }
  0x35   :  { %591 = vst [vmem:[%s1516_s6 + $0xe0] sm:$0xff] %v527_v19  ;;  %v198_v31 = vadd.f32 %v685_v2, %v127_v22  ;;  %v334_v33 = vmul.f32 %v694_v5, %v263_v18  ;;  %v466_v36 = vadd.f32 %v700_v7, %v395_v25  ;;  %v396_v37 = vadd.f32 %v332_v21, %v197_v26  ;;  %v65_v21 = vld [vmem:[%s1510_s0 + $0x150] sm:$0xff] }
  0x36   :  { %v529_v35 = vmax.f32 %v465_v24, 0.0  ;;  %v129_v38 = vmul.f32 %v680_v1, %v58_v23  ;;  %592 = vst [vmem:[%s1516_s6 + $0xe8] sm:$0xff] %v528_v30  ;;  %v199_v41 = vadd.f32 %v685_v2, %v128_v32  ;;  %v335_v42 = vmul.f32 %v694_v5, %v264_v28  ;;  %v271_v22 = vld [vmem:[%s1513_s3 + $0x150] sm:$0xff]  ;;  %v272_v32 = vld [vmem:[%s1513_s3 + $0x158] sm:$0xff] }
  0x37   :  { %v397_v40 = vadd.f32 %v333_v27, %v198_v31  ;;  %v130_v43 = vmul.f32 %v680_v1, %v59_v29  ;;  %v530_v46 = vmax.f32 %v466_v36, 0.0  ;;  %v467_v47 = vadd.f32 %v700_v7, %v396_v37  ;;  %v66_v27 = vld [vmem:[%s1510_s0 + $0x158] sm:$0xff] }
  0x38   :  { %593 = vst [vmem:[%s1516_s6 + $0xf0] sm:$0xff] %v529_v35  ;;  %v200_v48 = vadd.f32 %v685_v2, %v129_v38  ;;  %v336_v49 = vmul.f32 %v694_v5, %v265_v34  ;;  %v398_v51 = vadd.f32 %v334_v33, %v199_v41  ;;  %v131_v53 = vmul.f32 %v680_v1, %v60_v39  ;;  %v67_v33 = vld [vmem:[%s1510_s0 + $0x160] sm:$0xff] }
  0x39   :  { %v468_v50 = vadd.f32 %v700_v7, %v397_v40  ;;  %v201_v52 = vadd.f32 %v685_v2, %v130_v43  ;;  %594 = vst [vmem:[%s1516_s6 + $0xf8] sm:$0xff] %v530_v46  ;;  %v531_v56 = vmax.f32 %v467_v47, 0.0  ;;  %v337_v58 = vmul.f32 %v694_v5, %v266_v44  ;;  %v273_v38 = vld [vmem:[%s1513_s3 + $0x160] sm:$0xff]  ;;  %v68_v43 = vld [vmem:[%s1510_s0 + $0x168] sm:$0xff] }
  0x3a   :  { %v399_v57 = vadd.f32 %v335_v42, %v200_v48  ;;  %v132_v59 = vmul.f32 %v680_v1, %v61_v45  ;;  %v469_v62 = vadd.f32 %v700_v7, %v398_v51  ;;  %v202_v0 = vadd.f32 %v685_v2, %v131_v53  ;;  %v274_v48 = vld [vmem:[%s1513_s3 + $0x168] sm:$0xff] }
  0x3b   :  { %v532_v61 = vmax.f32 %v468_v50, 0.0  ;;  %v400_v63 = vadd.f32 %v336_v49, %v201_v52  ;;  %595 = vst [vmem:[%s1516_s6 + $0x100] sm:$0xff] %v531_v56  ;;  %v338_v8 = vmul.f32 %v694_v5, %v267_v54  ;;  %v133_v9 = vmul.f32 %v680_v1, %v62_v55  ;;  %v69_v49 = vld [vmem:[%s1510_s0 + $0x170] sm:$0xff] }
  0x3c   :  { %v470_v4 = vadd.f32 %v700_v7, %v399_v57  ;;  %v203_v6 = vadd.f32 %v685_v2, %v132_v59  ;;  %v533_v12 = vmax.f32 %v469_v62, 0.0  ;;  %v401_v14 = vadd.f32 %v337_v58, %v202_v0  ;;  %v275_v58 = vld [vmem:[%s1513_s3 + $0x170] sm:$0xff]  ;;  %v70_v59 = vld [vmem:[%s1510_s0 + $0x178] sm:$0xff] }
  0x3d   :  { %596 = vst [vmem:[%s1516_s6 + $0x108] sm:$0xff] %v532_v61  ;;  %v471_v13 = vadd.f32 %v700_v7, %v400_v63  ;;  %v339_v15 = vmul.f32 %v694_v5, %v268_v60  ;;  %v204_v19 = vadd.f32 %v685_v2, %v133_v9  ;;  %v134_v20 = vmul.f32 %v680_v1, %v63_v3  ;;  %v276_v0 = vld [vmem:[%s1513_s3 + $0x178] sm:$0xff]  ;;  %v71_v9 = vld [vmem:[%s1510_s0 + $0x180] sm:$0xff] }
  0x3e   :  { %v534_v17 = vmax.f32 %v470_v4, 0.0  ;;  %v402_v18 = vadd.f32 %v338_v8, %v203_v6  ;;  %597 = vst [vmem:[%s1516_s6 + $0x110] sm:$0xff] %v533_v12  ;;  %v472_v24 = vadd.f32 %v700_v7, %v401_v14  ;;  %v340_v25 = vmul.f32 %v694_v5, %v269_v10  ;;  %v277_v14 = vld [vmem:[%s1513_s3 + $0x180] sm:$0xff] }
  0x3f   :  { %v535_v23 = vmax.f32 %v471_v13, 0.0  ;;  %v135_v26 = vmul.f32 %v680_v1, %v64_v11  ;;  %v403_v29 = vadd.f32 %v339_v15, %v204_v19  ;;  %v205_v30 = vadd.f32 %v685_v2, %v134_v20  ;;  %v72_v15 = vld [vmem:[%s1510_s0 + $0x188] sm:$0xff] }
  0x40   :  { %598 = vst [vmem:[%s1516_s6 + $0x118] sm:$0xff] %v534_v17  ;;  %v473_v28 = vadd.f32 %v700_v7, %v402_v18  ;;  %v341_v31 = vmul.f32 %v694_v5, %v270_v16  ;;  %v536_v34 = vmax.f32 %v472_v24, 0.0  ;;  %v136_v36 = vmul.f32 %v680_v1, %v65_v21  ;;  %v278_v20 = vld [vmem:[%s1513_s3 + $0x188] sm:$0xff] }
  0x41   :  { %599 = vst [vmem:[%s1516_s6 + $0x120] sm:$0xff] %v535_v23  ;;  %v206_v35 = vadd.f32 %v685_v2, %v135_v26  ;;  %v342_v37 = vmul.f32 %v694_v5, %v271_v22  ;;  %v474_v40 = vadd.f32 %v700_v7, %v403_v29  ;;  %v404_v41 = vadd.f32 %v340_v25, %v205_v30  ;;  %v73_v25 = vld [vmem:[%s1510_s0 + $0x190] sm:$0xff] }
  0x42   :  { %v537_v39 = vmax.f32 %v473_v28, 0.0  ;;  %v137_v42 = vmul.f32 %v680_v1, %v66_v27  ;;  %600 = vst [vmem:[%s1516_s6 + $0x128] sm:$0xff] %v536_v34  ;;  %v207_v45 = vadd.f32 %v685_v2, %v136_v36  ;;  %v343_v46 = vmul.f32 %v694_v5, %v272_v32  ;;  %v279_v26 = vld [vmem:[%s1513_s3 + $0x190] sm:$0xff]  ;;  %v280_v36 = vld [vmem:[%s1513_s3 + $0x198] sm:$0xff] }
  0x43   :  { %v405_v44 = vadd.f32 %v341_v31, %v206_v35  ;;  %v138_v47 = vmul.f32 %v680_v1, %v67_v33  ;;  %v538_v50 = vmax.f32 %v474_v40, 0.0  ;;  %v475_v51 = vadd.f32 %v700_v7, %v404_v41  ;;  %v74_v31 = vld [vmem:[%s1510_s0 + $0x198] sm:$0xff] }
  0x44   :  { %601 = vst [vmem:[%s1516_s6 + $0x130] sm:$0xff] %v537_v39  ;;  %v208_v52 = vadd.f32 %v685_v2, %v137_v42  ;;  %v344_v53 = vmul.f32 %v694_v5, %v273_v38  ;;  %v406_v55 = vadd.f32 %v342_v37, %v207_v45  ;;  %v139_v57 = vmul.f32 %v680_v1, %v68_v43  ;;  %v75_v37 = vld [vmem:[%s1510_s0 + $0x1a0] sm:$0xff] }
  0x45   :  { %v476_v54 = vadd.f32 %v700_v7, %v405_v44  ;;  %v209_v56 = vadd.f32 %v685_v2, %v138_v47  ;;  %602 = vst [vmem:[%s1516_s6 + $0x138] sm:$0xff] %v538_v50  ;;  %v539_v60 = vmax.f32 %v475_v51, 0.0  ;;  %v345_v62 = vmul.f32 %v694_v5, %v274_v48  ;;  %v281_v42 = vld [vmem:[%s1513_s3 + $0x1a0] sm:$0xff]  ;;  %v76_v47 = vld [vmem:[%s1510_s0 + $0x1a8] sm:$0xff] }
  0x46   :  { %v407_v61 = vadd.f32 %v343_v46, %v208_v52  ;;  %v140_v63 = vmul.f32 %v680_v1, %v69_v49  ;;  %v477_v4 = vadd.f32 %v700_v7, %v406_v55  ;;  %v210_v8 = vadd.f32 %v685_v2, %v139_v57  ;;  %v282_v52 = vld [vmem:[%s1513_s3 + $0x1a8] sm:$0xff] }
  0x47   :  { %v540_v3 = vmax.f32 %v476_v54, 0.0  ;;  %v408_v6 = vadd.f32 %v344_v53, %v209_v56  ;;  %603 = vst [vmem:[%s1516_s6 + $0x140] sm:$0xff] %v539_v60  ;;  %v346_v12 = vmul.f32 %v694_v5, %v275_v58  ;;  %v141_v13 = vmul.f32 %v680_v1, %v70_v59  ;;  %v77_v53 = vld [vmem:[%s1510_s0 + $0x1b0] sm:$0xff] }
  0x48   :  { %v478_v10 = vadd.f32 %v700_v7, %v407_v61  ;;  %v211_v11 = vadd.f32 %v685_v2, %v140_v63  ;;  %v541_v16 = vmax.f32 %v477_v4, 0.0  ;;  %v409_v18 = vadd.f32 %v345_v62, %v210_v8  ;;  %v283_v62 = vld [vmem:[%s1513_s3 + $0x1b0] sm:$0xff]  ;;  %v78_v63 = vld [vmem:[%s1510_s0 + $0x1b8] sm:$0xff] }
  0x49   :  { %604 = vst [vmem:[%s1516_s6 + $0x148] sm:$0xff] %v540_v3  ;;  %v479_v17 = vadd.f32 %v700_v7, %v408_v6  ;;  %v347_v19 = vmul.f32 %v694_v5, %v276_v0  ;;  %v212_v23 = vadd.f32 %v685_v2, %v141_v13  ;;  %v142_v24 = vmul.f32 %v680_v1, %v71_v9  ;;  %v284_v8 = vld [vmem:[%s1513_s3 + $0x1b8] sm:$0xff]  ;;  %v79_v13 = vld [vmem:[%s1510_s0 + $0x1c0] sm:$0xff] }
  0x4a   :  { %v542_v21 = vmax.f32 %v478_v10, 0.0  ;;  %v410_v22 = vadd.f32 %v346_v12, %v211_v11  ;;  %605 = vst [vmem:[%s1516_s6 + $0x150] sm:$0xff] %v541_v16  ;;  %v480_v28 = vadd.f32 %v700_v7, %v409_v18  ;;  %v348_v29 = vmul.f32 %v694_v5, %v277_v14  ;;  %v285_v18 = vld [vmem:[%s1513_s3 + $0x1c0] sm:$0xff] }
  0x4b   :  { %v543_v27 = vmax.f32 %v479_v17, 0.0  ;;  %v143_v30 = vmul.f32 %v680_v1, %v72_v15  ;;  %v411_v33 = vadd.f32 %v347_v19, %v212_v23  ;;  %v213_v34 = vadd.f32 %v685_v2, %v142_v24  ;;  %v80_v19 = vld [vmem:[%s1510_s0 + $0x1c8] sm:$0xff] }
  0x4c   :  { %606 = vst [vmem:[%s1516_s6 + $0x158] sm:$0xff] %v542_v21  ;;  %v481_v32 = vadd.f32 %v700_v7, %v410_v22  ;;  %v349_v35 = vmul.f32 %v694_v5, %v278_v20  ;;  %v544_v38 = vmax.f32 %v480_v28, 0.0  ;;  %v144_v40 = vmul.f32 %v680_v1, %v73_v25  ;;  %v286_v24 = vld [vmem:[%s1513_s3 + $0x1c8] sm:$0xff] }
  0x4d   :  { %607 = vst [vmem:[%s1516_s6 + $0x160] sm:$0xff] %v543_v27  ;;  %v214_v39 = vadd.f32 %v685_v2, %v143_v30  ;;  %v350_v41 = vmul.f32 %v694_v5, %v279_v26  ;;  %v482_v44 = vadd.f32 %v700_v7, %v411_v33  ;;  %v412_v45 = vadd.f32 %v348_v29, %v213_v34  ;;  %v81_v29 = vld [vmem:[%s1510_s0 + $0x1d0] sm:$0xff] }
  0x4e   :  { %v545_v43 = vmax.f32 %v481_v32, 0.0  ;;  %v145_v46 = vmul.f32 %v680_v1, %v74_v31  ;;  %608 = vst [vmem:[%s1516_s6 + $0x168] sm:$0xff] %v544_v38  ;;  %v215_v49 = vadd.f32 %v685_v2, %v144_v40  ;;  %v351_v50 = vmul.f32 %v694_v5, %v280_v36  ;;  %v287_v30 = vld [vmem:[%s1513_s3 + $0x1d0] sm:$0xff]  ;;  %v288_v40 = vld [vmem:[%s1513_s3 + $0x1d8] sm:$0xff] }
  0x4f   :  { %v413_v48 = vadd.f32 %v349_v35, %v214_v39  ;;  %v146_v51 = vmul.f32 %v680_v1, %v75_v37  ;;  %v546_v54 = vmax.f32 %v482_v44, 0.0  ;;  %v483_v55 = vadd.f32 %v700_v7, %v412_v45  ;;  %v82_v35 = vld [vmem:[%s1510_s0 + $0x1d8] sm:$0xff]  ;;  %v289_v45 = vld [vmem:[%s1513_s3 + $0x1e0] sm:$0xff] }
  0x50   :  { %609 = vst [vmem:[%s1516_s6 + $0x170] sm:$0xff] %v545_v43  ;;  %v216_v56 = vadd.f32 %v685_v2, %v145_v46  ;;  %v352_v57 = vmul.f32 %v694_v5, %v281_v42  ;;  %v414_v59 = vadd.f32 %v350_v41, %v215_v49  ;;  %v147_v61 = vmul.f32 %v680_v1, %v76_v47  ;;  %v637_v43 = vld [vmem:[%s1514_s4] ss:$0 sm:$0xff] }
  0x51   :  { %v484_v58 = vadd.f32 %v700_v7, %v413_v48  ;;  %v217_v60 = vadd.f32 %v685_v2, %v146_v51  ;;  %610 = vst [vmem:[%s1516_s6 + $0x178] sm:$0xff] %v546_v54  ;;  %v547_v0 = vmax.f32 %v483_v55, 0.0  ;;  %v353_v4 = vmul.f32 %v694_v5, %v282_v52  ;;  %v638_v47 = vld [vmem:[%s1515_s5] ss:$0 sm:$0xff]  ;;  %v84_v51 = vld [vmem:[%s1510_s0 + $0x1e8] sm:$0xff] }
  0x52   :  { %v415_v3 = vadd.f32 %v351_v50, %v216_v56  ;;  %v148_v6 = vmul.f32 %v680_v1, %v77_v53  ;;  %v485_v10 = vadd.f32 %v700_v7, %v414_v59  ;;  %v218_v12 = vadd.f32 %v685_v2, %v147_v61  ;;  %v290_v56 = vld [vmem:[%s1513_s3 + $0x1e8] sm:$0xff] }
  0x53   :  { %v548_v9 = vmax.f32 %v484_v58, 0.0  ;;  %v416_v11 = vadd.f32 %v352_v57, %v217_v60  ;;  %611 = vst [vmem:[%s1516_s6 + $0x180] sm:$0xff] %v547_v0  ;;  %v354_v16 = vmul.f32 %v694_v5, %v283_v62  ;;  %v149_v17 = vmul.f32 %v680_v1, %v78_v63  ;;  %v85_v57 = vld [vmem:[%s1510_s0 + $0x1f0] sm:$0xff] }
  0x54   :  { %v486_v14 = vadd.f32 %v700_v7, %v415_v3  ;;  %v219_v15 = vadd.f32 %v685_v2, %v148_v6  ;;  %v549_v20 = vmax.f32 %v485_v10, 0.0  ;;  %v417_v22 = vadd.f32 %v353_v4, %v218_v12  ;;  %v291_v4 = vld [vmem:[%s1513_s3 + $0x1f0] sm:$0xff]  ;;  %v86_v6 = vld [vmem:[%s1510_s0 + $0x1f8] sm:$0xff] }
  0x55   :  { %612 = vst [vmem:[%s1516_s6 + $0x188] sm:$0xff] %v548_v9  ;;  %v487_v21 = vadd.f32 %v700_v7, %v416_v11  ;;  %v355_v23 = vmul.f32 %v694_v5, %v284_v8  ;;  %v220_v27 = vadd.f32 %v685_v2, %v149_v17  ;;  %v150_v28 = vmul.f32 %v680_v1, %v79_v13  ;;  %v292_v12 = vld [vmem:[%s1513_s3 + $0x1f8] sm:$0xff] }
  0x56   :  { %v550_v25 = vmax.f32 %v486_v14, 0.0  ;;  %v418_v26 = vadd.f32 %v354_v16, %v219_v15  ;;  %613 = vst [vmem:[%s1516_s6 + $0x190] sm:$0xff] %v549_v20  ;;  %v488_v32 = vadd.f32 %v700_v7, %v417_v22  ;;  %v356_v33 = vmul.f32 %v694_v5, %v285_v18 }
  0x57   :  { %v551_v31 = vmax.f32 %v487_v21, 0.0  ;;  %v151_v34 = vmul.f32 %v680_v1, %v80_v19  ;;  %v419_v37 = vadd.f32 %v355_v23, %v220_v27  ;;  %v221_v38 = vadd.f32 %v685_v2, %v150_v28  ;;  %v83_v1 = vld [vmem:[%s1510_s0 + $0x1e0] sm:$0xff] }
  0x58   :  { %614 = vst [vmem:[%s1516_s6 + $0x198] sm:$0xff] %v550_v25  ;;  %v489_v36 = vadd.f32 %v700_v7, %v418_v26  ;;  %v357_v39 = vmul.f32 %v694_v5, %v286_v24  ;;  %v552_v41 = vmax.f32 %v488_v32, 0.0  ;;  %v635_v7 = vld [vmem:[%s1512_s2] ss:$0 sm:$0xff]  ;;  %v358_v44 = vmul.f32 %v637_v43, %v287_v30 }
  0x59   :  { %615 = vst [vmem:[%s1516_s6 + $0x1a0] sm:$0xff] %v551_v31  ;;  %v222_v2 = vadd.f32 %v635_v7, %v151_v34  ;;  %v636_v5 = vld [vmem:[%s1511_s1] ss:$0 sm:$0xff]  ;;  %v490_v48 = vadd.f32 %v638_v47, %v419_v37  ;;  %v420_v49 = vadd.f32 %v356_v33, %v221_v38  ;;  %v359_v54 = vmul.f32 %v637_v43, %v288_v40 }
  0x5a   :  { %v152_v42 = vmul.f32 %v636_v5, %v81_v29  ;;  %v553_v46 = vmax.f32 %v489_v36, 0.0  ;;  %v153_v50 = vmul.f32 %v636_v5, %v82_v35  ;;  %616 = vst [vmem:[%s1516_s6 + $0x1a8] sm:$0xff] %v552_v41  ;;  %v154_v55 = vmul.f32 %v636_v5, %v83_v1 }
  0x5b   :  { %v421_v52 = vadd.f32 %v357_v39, %v222_v2  ;;  %v554_v58 = vmax.f32 %v490_v48, 0.0  ;;  %v491_v59 = vadd.f32 %v638_v47, %v420_v49  ;;  %v360_v61 = vmul.f32 %v637_v43, %v289_v45 }
  0x5c   :  { %v223_v53 = vadd.f32 %v635_v7, %v152_v42  ;;  %617 = vst [vmem:[%s1516_s6 + $0x1b0] sm:$0xff] %v553_v46  ;;  %v224_v60 = vadd.f32 %v635_v7, %v153_v50  ;;  %v225_v0 = vadd.f32 %v635_v7, %v154_v55  ;;  %v155_v3 = vmul.f32 %v636_v5, %v84_v51 }
  0x5d   :  { %v492_v62 = vadd.f32 %v638_v47, %v421_v52  ;;  %618 = vst [vmem:[%s1516_s6 + $0x1b8] sm:$0xff] %v554_v58  ;;  %v555_v8 = vmax.f32 %v491_v59, 0.0  ;;  %v361_v10 = vmul.f32 %v637_v43, %v290_v56  ;;  %v156_v11 = vmul.f32 %v636_v5, %v85_v57 }
  0x5e   :  { %v422_v63 = vadd.f32 %v358_v44, %v223_v53  ;;  %v423_v9 = vadd.f32 %v359_v54, %v224_v60  ;;  %v424_v15 = vadd.f32 %v360_v61, %v225_v0  ;;  %v226_v16 = vadd.f32 %v635_v7, %v155_v3 }
  0x5f   :  { %v556_v13 = vmax.f32 %v492_v62, 0.0  ;;  %619 = vst [vmem:[%s1516_s6 + $0x1c0] sm:$0xff] %v555_v8  ;;  %v227_v18 = vadd.f32 %v635_v7, %v156_v11  ;;  %v362_v19 = vmul.f32 %v637_v43, %v291_v4  ;;  %v157_v20 = vmul.f32 %v636_v5, %v86_v6 }
  0x60   :  { %v493_v14 = vadd.f32 %v638_v47, %v422_v63  ;;  %v494_v17 = vadd.f32 %v638_v47, %v423_v9  ;;  %v495_v22 = vadd.f32 %v638_v47, %v424_v15  ;;  %v425_v23 = vadd.f32 %v361_v10, %v226_v16 }
  0x61   :  { %620 = vst [vmem:[%s1516_s6 + $0x1c8] sm:$0xff] %v556_v13  ;;  %v363_v24 = vmul.f32 %v637_v43, %v292_v12  ;;  %v426_v26 = vadd.f32 %v362_v19, %v227_v18  ;;  %v228_v27 = vadd.f32 %v635_v7, %v157_v20 }
  0x62   :  { %v557_v21 = vmax.f32 %v493_v14, 0.0  ;;  %v558_v25 = vmax.f32 %v494_v17, 0.0  ;;  %v559_v28 = vmax.f32 %v495_v22, 0.0  ;;  %v496_v29 = vadd.f32 %v638_v47, %v425_v23 }
  0x63   :  { %v497_v30 = vadd.f32 %v638_v47, %v426_v26  ;;  %v427_v31 = vadd.f32 %v363_v24, %v228_v27 }
  0x64   :  { %621 = vst [vmem:[%s1516_s6 + $0x1d0] sm:$0xff] %v557_v21  ;;  %622 = vst [vmem:[%s1516_s6 + $0x1d8] sm:$0xff] %v558_v25  ;;  %v560_v32 = vmax.f32 %v496_v29, 0.0 }
  0x65   :  { %623 = vst [vmem:[%s1516_s6 + $0x1e0] sm:$0xff] %v559_v28  ;;  %v561_v33 = vmax.f32 %v497_v30, 0.0  ;;  %v498_v34 = vadd.f32 %v638_v47, %v427_v31 }
  0x66   :  { %624 = vst [vmem:[%s1516_s6 + $0x1e8] sm:$0xff] %v560_v32 }
  0x67   :  { %625 = vst [vmem:[%s1516_s6 + $0x1f0] sm:$0xff] %v561_v33  ;;  %v562_v35 = vmax.f32 %v498_v34, 0.0 }
  0x69   :  { %626 = vst [vmem:[%s1516_s6 + $0x1f8] sm:$0xff] %v562_v35 }

// kernel: bottleneck_forward.5
= control target key start
LH: loop header
LB: loop body
LE: loop exit
PB: predicated region body
PF: predicated region fallthrough
CT: control target
= control target key end

     0   :  { %s1310_s24 = smov 0   ;;  %s1312_s25 = smov 0   ;;  %s1539_s0 = inlined_call_operand.vmem [shape: f32[2,18,18,128], index: 0, kind: input, shape index: {}]   ;;  %s1540_s1 = inlined_call_operand.vmem [shape: bf16[3,3,128,128], index: 1, kind: input, shape index: {}]   ;;  %s1541_s2 = inlined_call_operand.vmem [shape: f32[1,128], index: 2, kind: input, shape index: {}]   ;;  %s1542_s3 = inlined_call_operand.vmem [shape: f32[1,128], index: 3, kind: input, shape index: {}]   ;;  %s1543_s4 = inlined_call_operand.vmem [shape: f32[1,128], index: 4, kind: input, shape index: {}]   ;;  %s1544_s5 = inlined_call_operand.vmem [shape: f32[2,16,16,128], index: 5, kind: output, shape index: {0}]   ;;  %s1545_s6 = inlined_call_operand.vmem [shape: f32[1,128], index: 6, kind: output, shape index: {1}]   ;;  %s1546_s7 = inlined_call_operand.vmem [shape: f32[1,128], index: 7, kind: output, shape index: {2}]  }
   0x1   :  { %s1314_s26 = smov 0   ;;  %s1316_s27 = smov 0  }
   0x2   :  { %s1318_s28 = smov 0   ;;  %s1320_s29 = smov 0  }
   0x3   :  { %s1322_s30 = smov 0  }
   0x4 LB: > { %1549 = sst [smem:[#allocation3_spill]] %s1257_s28  ;;  %s30_s8 = sadd.s32 1, %s1253_s27  ;;  %s1265_s30 = sphi %s1322_s30, %s18_s30   ;;  %s1261_s29 = sphi %s1320_s29, %s1559_s29   ;;  %s1257_s28 = sphi %s1318_s28, %s1558_s28   ;;  %s1253_s27 = sphi %s1316_s27, %s1561_s27   ;;  %s1249_s26 = sphi %s1314_s26, %s1556_s26   ;;  %s1245_s25 = sphi %s1312_s25, %s1555_s25   ;;  %s1241_s24 = sphi %s1310_s24, %s1560_s24  }
   0x5   : > { %1550 = sst [smem:[#allocation4_spill]] %s1261_s29  ;;  %p31_p0 = scmp.ge.s32.totalorder %s30_s8, 3 }
   0x6   : > { %s33_s9 = sadd.s32 1, %s1257_s28  ;;  %p945_p1 = scmp.ge.s32.totalorder %s1265_s30, 1 }
   0x7   : > { %p263_p2 = scmp.lt.s32.totalorder %s1265_s30, 97  ;;  %s1563_s8 = smov (%p31_p0, %s30_s8), 0 }
   0x8   : > { %1551 = sst [smem:[#allocation5_spill]] %s1563_s8  ;;  %s1565_s9 = smov (!%p31_p0, %s33_s9), %s1257_s28 }
   0x9   : > { %p264_p3 = pnand %p945_p1, %p263_p2  ;;  %p35_p4 = scmp.ge.s32.totalorder %s1565_s9, 16 }
   0xa   : > { %s37_s10 = sadd.s32 1, %s1261_s29  ;;  %s1360_s11 = sadd.s32 (!%p264_p3), %s1241_s24, %s1245_s25 }
   0xb   : > { %s1567_s9 = smov (%p35_p4, %s1565_s9), 0  ;;  %s1569_s10 = smov (!%p35_p4, %s37_s10), %s1261_s29 }
   0xc   : > { %1552 = sst [smem:[#allocation6_spill]] %s1567_s9  ;;  %p39_p5 = scmp.ge.s32.totalorder %s1569_s10, 2 }
   0xd   : > { %267 = sbr.rel (%p264_p3) target bundleno = 354 (0x162), region = 40  ;;  %p305_p6 = scmp.lt.s32.totalorder (!%p264_p3), %s1249_s26, 1 }
   0xe   : > { %s1571_s10 = smov (%p39_p5, %s1569_s10), 0  ;;  %p307_p7 = scmp.lt.s32.totalorder (!%p264_p3), %s1360_s11, 17 }
   0xf   : > { %1553 = sst [smem:[#allocation7_spill]] %s1571_s10  ;;  %p317_p8 = scmp.lt.s32.totalorder (!%p264_p3), %s1245_s25, 15 }
  0x10   : > { %p326_p9 = scmp.eq.s32.totalorder (!%p264_p3), %s1249_s26, 0  ;;  %p327_p10 = scmp.eq.s32.totalorder (!%p264_p3), %s1245_s25, 0 }
  0x11   : > { %p330_p12 = scmp.eq.s32.totalorder (!%p264_p3), %s1241_s24, 0 }
  0x12   : > { %p328_p11 = pnand (!%p264_p3), %p327_p10, %p326_p9 }
  0x14   : > { %s306_s12 = scalar_select %p305_p6, %s1249_s26, 1 }
  0x15   : > { %s308_s13 = scalar_select %p307_p7, %s1360_s11, 17 }
  0x16   : > { %s1127_s14 = smul.u32 54, %s306_s12  ;;  %s948_s15 = sshll.u32 %s306_s12, 5 }
  0x17   : > { %s1126_s16 = smul.u32 3, %s308_s13  ;;  %p329_p13 = pneg %p328_p11 }
  0x18   : > { %s318_s17 = scalar_select %p317_p8, %s1245_s25, 15 }
  0x19   : > { %s311_s18 = sadd.s32 %s1127_s14, %s1126_s16  ;;  %p331_p0 = pnand %p330_p12, %p329_p13 }
  0x1a   : > { %s946_s19 = sshll.u32 %s311_s18, 3  ;;  %s947_s20 = sshll.u32 %s318_s17, 1  ;;  %v1267_v0 = vmov (!%p331_p0), 0.0  }
  0x1b   : > { %s1373_s23 = scalar_lea.vmem %s1539_s0, %s946_s19  ;;  %s321_s10 = sadd.s32 %s948_s15, %s947_s20  ;;  %335 = vst [vmem:[%s1545_s6] sm:$0x1] (!%p331_p0), %v1267_v0  ;;  %336 = vst [vmem:[%s1546_s7] sm:$0x1] (!%p331_p0), %v1267_v0 }
  0x1c   : > { %s949_s9 = sshll.u32 %s321_s10, 3  ;;  %334 = sbr.rel (%p331_p0) target bundleno = 35 (0x23), region = 44 }
  0x1d   : > { %s1378_s28 = scalar_lea.vmem %s1544_s5, %s949_s9 }
  0x23 PF: > { %p950_p1 = scmp.ne.s32.totalorder %s1241_s24, 0 }
  0x24   : > { %v951_v1 = vld [vmem:[%s1541_s2] ss:$0 sm:$0xff] (!%p950_p1) }
  0x25   : > { %339 = sbr.rel (%p950_p1) target bundleno = 44 (0x2c), region = 48  ;;  %347 = vst [vmem:[#allocation2] sm:$0xff] (!%p950_p1), %v951_v1  ;;  %348 = vst [vmem:[#allocation2 + $0x8] sm:$0xff] (!%p950_p1), %v951_v1 }
  0x2c PF: > { %s1026_s9 = smul.u32 192, %s1241_s24  ;;  %v1268_v2 = vmov 0.0   ;;  %vm1269_vm0 = vmmov 0   ;;  %p351_p2 = scmp.ge.s32.totalorder %s1360_s11, 1  ;;  %v1419_v10 = vld [vmem:[%s1542_s3] ss:$0 sm:$0xff]  ;;  %v375_v24 = vlaneseq }
  0x2d   : > { %1074 = vmatprep.subr.bf16.mxu0 %v1268_v2  ;;  %1054 = vmatprep.subr.bf16.mxu1 %v1268_v2  ;;  %p352_p3 = scmp.le.s32.totalorder %s1360_s11, 16  ;;  %v510_v11 = vld [vmem:[%s1373_s23 + $0x1] sm:$0xff]  ;;  %v511_v12 = vld [vmem:[%s1373_s23 + $0x9] sm:$0xff]  ;;  %v1431_v15 = vld [vmem:[%s1543_s4] ss:$0 sm:$0xff]  ;;  %p1023_p5 = scmp.ne.s32.totalorder %s1241_s24, 2 }
  0x2e   : > { %s1397_s15 = scalar_lea.vmem %s1540_s1, %s1026_s9  ;;  %1090 = vmatprep.mubr.msk.bf16.mxu0 %vm1269_vm0, %v1268_v2  ;;  %1070 = vmatprep.mubr.msk.bf16.mxu1 %vm1269_vm0, %v1268_v2  ;;  %v512_v16 = vmul.f32 %v1419_v10, %v510_v11  ;;  %v513_v17 = vmul.f32 %v1419_v10, %v511_v12  ;;  %v355_v18 = vld [vmem:[%s1373_s23] sm:$0xff]  ;;  %v356_v19 = vld [vmem:[%s1373_s23 + $0x8] sm:$0xff]  ;;  %v376_v32 = vshrl.u32 %v375_v24, 7 }
  0x2f   : > { %v1187_v3 = vld [vmem:[%s1397_s15 + $0x40] sm:$0xff]   ;;  %v1188_v4 = vld [vmem:[%s1397_s15 + $0x48] sm:$0xff]   ;;  %v1189_v6 = vld [vmem:[%s1397_s15 + $0x50] sm:$0xff]   ;;  %p1435_p4 = pnand %p352_p3, %p351_p2  ;;  %v363_v26 = vmul.f32 %v1419_v10, %v355_v18  ;;  %v364_v27 = vmul.f32 %v1419_v10, %v356_v19 }
  0x30   : > { %1075 = vmatpush3.bf16.msra.mxu0 %v1187_v3  ;;  %v1192_v5 = vld [vmem:[%s1397_s15] sm:$0xff]   ;;  %v1194_v7 = vld [vmem:[%s1397_s15 + $0x8] sm:$0xff]   ;;  %v1190_v8 = vld [vmem:[%s1397_s15 + $0x58] sm:$0xff]   ;;  %v514_v22 = vadd.f32 %v1431_v15, %v512_v16  ;;  %v515_v23 = vadd.f32 %v1431_v15, %v513_v17  ;;  %vm378_vm2 = vcmp.ge.s32.totalorder %v376_v32, 1  ;;  %v377_v49 = vadd.s32 8, %v376_v32 }
  0x31   : > { %1076 = vmatprep.subr.bf16.mxu0 %v1268_v2  ;;  %1055 = vmatpush3.bf16.msra.mxu1 %v1192_v5  ;;  %v1196_v9 = vld [vmem:[%s1397_s15 + $0x10] sm:$0xff]   ;;  %v1191_v13 = vld [vmem:[%s1397_s15 + $0x60] sm:$0xff]   ;;  %v1198_v14 = vld [vmem:[%s1397_s15 + $0x18] sm:$0xff]   ;;  %s954_s11 = scalar_select %p1435_p4, 0, 1  ;;  %v371_v34 = vadd.f32 %v1431_v15, %v363_v26  ;;  %v372_v35 = vadd.f32 %v1431_v15, %v364_v27 }
  0x32   : > { %1056 = vmatprep.subr.bf16.mxu1 %v1268_v2  ;;  %v1193_v20 = vld [vmem:[%s1397_s15 + $0x68] sm:$0xff]   ;;  %v1200_v21 = vld [vmem:[%s1397_s15 + $0x20] sm:$0xff]   ;;  %v1195_v25 = vld [vmem:[%s1397_s15 + $0x70] sm:$0xff]   ;;  %v516_v30 = vmax.f32 %v514_v22, 0.0  ;;  %v517_v31 = vmax.f32 %v515_v23, 0.0  ;;  %v658_v53 = vadd.s32 2, %v377_v49 }
  0x33   : > { %v1202_v28 = vld [vmem:[%s1397_s15 + $0x28] sm:$0xff]   ;;  %v1456_v29 = vstv %s954_s11  ;;  %v1197_v33 = vld [vmem:[%s1397_s15 + $0x78] sm:$0xff]   ;;  %v1204_v36 = vld [vmem:[%s1397_s15 + $0x30] sm:$0xff]   ;;  %v373_v39 = vmax.f32 %v371_v34, 0.0  ;;  %v374_v40 = vmax.f32 %v372_v35, 0.0 }
  0x34   : > { %1077 = vmatpush3.bf16.msra.mxu0 %v1188_v4  ;;  %vm386_vm1 = vcmp.eq.s32.totalorder %v1456_v29, 1  ;;  %v993_v37 = vpack.c.bf16 %v517_v31, %v516_v30  ;;  %v1199_v38 = vld [vmem:[%s1397_s15 + $0x80] sm:$0xff]   ;;  %v1206_v41 = vld [vmem:[%s1397_s15 + $0x38] sm:$0xff]   ;;  %v1201_v42 = vld [vmem:[%s1397_s15 + $0x88] sm:$0xff]   ;;  %vm662_vm6 = vcmp.le.s32.totalorder %v658_v53, 16 }
  0x35   : > { %1078 = vmatprep.subr.bf16.mxu0 %v1268_v2  ;;  %1057 = vmatpush3.bf16.msra.mxu1 %v1194_v7  ;;  %vm992_vm3 = vmpackc.low %vm386_vm1, %vm386_vm1  ;;  %v965_v43 = vpack.c.bf16 %v374_v40, %v373_v39  ;;  %v1203_v44 = vld [vmem:[%s1397_s15 + $0x90] sm:$0xff]   ;;  %v1205_v45 = vld [vmem:[%s1397_s15 + $0x98] sm:$0xff]  }
  0x36   : > { %1058 = vmatprep.subr.bf16.mxu1 %v1268_v2  ;;  %vm387_vm4 = vmand %vm386_vm1, %vm378_vm2  ;;  %v1207_v46 = vld [vmem:[%s1397_s15 + $0xa0] sm:$0xff]   ;;  %v650_v48 = vld [vmem:[%s1373_s23 + $0xa] sm:$0xff] }
  0x37   : > { %vm964_vm5 = vmpackc.low %vm386_vm1, %vm387_vm4  ;;  %v649_v47 = vld [vmem:[%s1373_s23 + $0x2] sm:$0xff]  ;;  %v652_v51 = vmul.f32 %v1419_v10, %v650_v48  ;;  %v1209_v56 = vld [vmem:[%s1397_s15 + $0xb0] sm:$0xff]  }
  0x38   : > { %1079 = vmatpush3.bf16.msra.mxu0 %v1189_v6  ;;  %v651_v50 = vmul.f32 %v1419_v10, %v649_v47  ;;  %v1208_v52 = vld [vmem:[%s1397_s15 + $0xa8] sm:$0xff]   ;;  %v1210_v59 = vld [vmem:[%s1397_s15 + $0xb8] sm:$0xff]   ;;  %vm666_vm7 = vmand %vm386_vm1, %vm662_vm6 }
  0x39   : > { %1080 = vmatprep.subr.bf16.mxu0 %v1268_v2  ;;  %1059 = vmatpush3.bf16.msra.mxu1 %v1196_v9  ;;  %v654_v55 = vadd.f32 %v1431_v15, %v652_v51  ;;  %vm1020_vm8 = vmpackc.low %vm666_vm7, %vm386_vm1  ;;  %v395_v1 = vld [vmem:[#allocation2] sm:$0xff]  ;;  %v396_v4 = vld [vmem:[#allocation2 + $0x8] sm:$0xff] }
  0x3a   : > { %1060 = vmatprep.subr.bf16.mxu1 %v1268_v2  ;;  %v653_v54 = vadd.f32 %v1431_v15, %v651_v50  ;;  %v796_v26 = vld [vmem:[%s1545_s6] sm:$0x1] (!%p1023_p5) }
  0x3b   : > { %v656_v58 = vmax.f32 %v654_v55, 0.0  ;;  %v806_v29 = vld [vmem:[%s1546_s7] sm:$0x1] (!%p1023_p5) }
  0x3c   : > { %1081 = vmatpush3.bf16.msra.mxu0 %v1190_v8  ;;  %v655_v57 = vmax.f32 %v653_v54, 0.0 }
  0x3d   : > { %1082 = vmatprep.subr.bf16.mxu0 %v1268_v2  ;;  %1061 = vmatpush3.bf16.msra.mxu1 %v1198_v14 }
  0x3e   : > { %1062 = vmatprep.subr.bf16.mxu1 %v1268_v2  ;;  %v1021_v60 = vpack.c.bf16 %v656_v58, %v655_v57 }
  0x40   : > { %1083 = vmatpush3.bf16.msra.mxu0 %v1191_v13 }
  0x41   : > { %1084 = vmatprep.subr.bf16.mxu0 %v1268_v2  ;;  %1063 = vmatpush3.bf16.msra.mxu1 %v1200_v21 }
  0x42   : > { %1064 = vmatprep.subr.bf16.mxu1 %v1268_v2 }
  0x44   : > { %1085 = vmatpush3.bf16.msra.mxu0 %v1193_v20 }
  0x45   : > { %1086 = vmatprep.subr.bf16.mxu0 %v1268_v2  ;;  %1065 = vmatpush3.bf16.msra.mxu1 %v1202_v28 }
  0x46   : > { %1066 = vmatprep.subr.bf16.mxu1 %v1268_v2 }
  0x48   : > { %1087 = vmatpush3.bf16.msra.mxu0 %v1195_v25 }
  0x49   : > { %1088 = vmatprep.subr.bf16.mxu0 %v1268_v2  ;;  %1067 = vmatpush3.bf16.msra.mxu1 %v1204_v36 }
  0x4a   : > { %1068 = vmatprep.subr.bf16.mxu1 %v1268_v2 }
  0x4c   : > { %1089 = vmatpush3.bf16.msra.mxu0 %v1197_v33 }
  0x4d   : > { %1094 = vmatprep.subr.bf16.mxu0 %v1268_v2  ;;  %1069 = vmatpush3.bf16.msra.mxu1 %v1206_v41 }
  0x4f   : > { %1091 = vmatmul.mubr.msk.bf16.vlgmr.msra.gmra.mrb[0].mxu0 %vm992_vm3, %v993_v37 }
  0x50   : > { %1095 = vmatpush3.bf16.msra.mxu0 %v1199_v38  ;;  %1110 = vmatprep.mubr.msk.bf16.mxu0 %vm1269_vm0, %v1268_v2 }
  0x51   : > { %1096 = vmatprep.subr.bf16.mxu0 %v1268_v2  ;;  %1071 = vmatmul.mubr.msk.bf16.vlgmr.msra.gmra.mrb[0].mxu1 %vm964_vm5, %v965_v43 }
  0x54   : > { %1097 = vmatpush3.bf16.msra.mxu0 %v1201_v42 }
  0x55   : > { %1098 = vmatprep.subr.bf16.mxu0 %v1268_v2 }
  0x58   : > { %1099 = vmatpush3.bf16.msra.mxu0 %v1203_v44 }
  0x59   : > { %1100 = vmatprep.subr.bf16.mxu0 %v1268_v2 }
  0x5c   : > { %1101 = vmatpush3.bf16.msra.mxu0 %v1205_v45 }
  0x5d   : > { %1102 = vmatprep.subr.bf16.mxu0 %v1268_v2 }
  0x60   : > { %1103 = vmatpush3.bf16.msra.mxu0 %v1207_v46 }
  0x61   : > { %1104 = vmatprep.subr.bf16.mxu0 %v1268_v2 }
  0x64   : > { %1105 = vmatpush3.bf16.msra.mxu0 %v1208_v52 }
  0x65   : > { %1106 = vmatprep.subr.bf16.mxu0 %v1268_v2 }
  0x68   : > { %1107 = vmatpush3.bf16.msra.mxu0 %v1209_v56 }
  0x69   : > { %1108 = vmatprep.subr.bf16.mxu0 %v1268_v2 }
  0x6c   : > { %1109 = vmatpush3.bf16.msra.mxu0 %v1210_v59 }
  0x6f   : > { %1111 = vmatmul.mubr.msk.bf16.vlgmr.msra.gmra.mrb[0].mxu0 %vm1020_vm8, %v1021_v60 }
 0x124   : > { %v499_v61 = vpop.f32.mrb[0].mxu1 }
 0x125   : > { %v1072_v62 = vpop.f32.mrb[1].mxu1  ;;  %v506_v3 = vadd.f32 %v499_v61, %v395_v1 }
 0x126   : > { %v502_v63 = vpop.f32.mrb[2].mxu1 }
 0x127   : > { %v1073_v0 = vpop.f32.mrb[3].mxu1  ;;  %v507_v6 = vadd.f32 %v502_v63, %v396_v4 }
 0x141   : > { %791 = sbr.rel (%p1023_p5) target bundleno = 354 (0x162), region = 52 }
 0x142   : > { %v777_v5 = vpop.f32.mrb[0].mxu0 }
 0x143   : > { %v1117_v7 = vadd.f32 %v777_v5, %v506_v3  ;;  %v1112_v2 = vpop.f32.mrb[1].mxu0 }
 0x144   : > { %v780_v8 = vpop.f32.mrb[2].mxu0 }
 0x145   : > { %786 = vst [vmem:[#allocation2] sm:$0xff] %v1117_v7  ;;  %v1121_v9 = vadd.f32 %v780_v8, %v507_v6  ;;  %v1113_v10 = vpop.f32.mrb[3].mxu0 }
 0x147   : > { %787 = vst [vmem:[#allocation2 + $0x8] sm:$0xff] %v1121_v9 }
 0x14c   : > { %v792_v11 = vld [vmem:[#allocation2] sm:$0xff] }
 0x14d   : > { %794 = vst [vmem:[%s1378_s28] sm:$0xff] %v792_v11  ;;  %v807_v13 = vmul.f32 %v792_v11, %v792_v11 }
 0x14e   : > { %v793_v12 = vld [vmem:[#allocation2 + $0x8] sm:$0xff] }
 0x14f   : > { %795 = vst [vmem:[%s1378_s28 + $0x8] sm:$0xff] %v793_v12  ;;  %v797_v14 = vadd.f32 %v793_v12, %v792_v11  ;;  %v808_v15 = vmul.f32 %v793_v12, %v793_v12 }
 0x151   : > { %v798_v16 = vrot.slane %v797_v14, 4  ;;  %v809_v17 = vadd.f32 %v808_v15, %v807_v13 }
 0x153   : > { %v799_v18 = vadd.f32 %v798_v16, %v797_v14  ;;  %v810_v19 = vrot.slane %v809_v17, 4 }
 0x155   : > { %v800_v20 = vrot.slane %v799_v18, 2  ;;  %v811_v21 = vadd.f32 %v810_v19, %v809_v17 }
 0x157   : > { %v801_v22 = vadd.f32 %v800_v20, %v799_v18  ;;  %v812_v23 = vrot.slane %v811_v21, 2 }
 0x159   : > { %v802_v24 = vrot.slane %v801_v22, 1  ;;  %v813_v25 = vadd.f32 %v812_v23, %v811_v21 }
 0x15b   : > { %v803_v27 = vadd.f32 %v802_v24, %v801_v22  ;;  %v814_v28 = vrot.slane %v813_v25, 1 }
 0x15d   : > { %v804_v30 = vadd.f32 %v803_v27, %v796_v26  ;;  %v815_v31 = vadd.f32 %v814_v28, %v813_v25 }
 0x15f   : > { %805 = vst [vmem:[%s1545_s6] sm:$0x1] %v804_v30  ;;  %v816_v32 = vadd.f32 %v815_v31, %v806_v29 }
 0x161   : > { %817 = vst [vmem:[%s1546_s7] sm:$0x1] %v816_v32 }
 0x162 PF: > { %s18_s30 = sadd.s32 1, %s1265_s30   ;;  %s1555_s25 = sld [smem:[#allocation3_spill]] }
 0x163   : > { %p15_p6 = scmp.ge.s32.totalorder %s18_s30, 98   ;;  %s1556_s26 = sld [smem:[#allocation4_spill]] }
 0x164   : > { %s1557_s13 = sld [smem:[#allocation5_spill]]  ;;  %s1558_s28 = sld [smem:[#allocation6_spill]] }
 0x165   : > { %s1559_s29 = sld [smem:[#allocation7_spill]]  ;;  %s1560_s24 = smov %s1253_s27 }
 0x166   :  { %17 = sbr.rel (!%p15_p6) target bundleno = 4 (0x4), region = 101 }
 0x16a   : > { %s1561_s27 = smov %s1557_s13 }

// kernel: bottleneck_forward.6
= control target key start
LH: loop header
LB: loop body
LE: loop exit
PB: predicated region body
PF: predicated region fallthrough
CT: control target
= control target key end

     0   :  { %s2493_s1 = inlined_call_operand.vmem [shape: bf16[128,128], index: 1, kind: input, shape index: {}]   ;;  %s2494_s0 = inlined_call_operand.vmem [shape: f32[512,128], index: 0, kind: input, shape index: {}]   ;;  %s2495_s3 = inlined_call_operand.vmem [shape: f32[1,128], index: 3, kind: input, shape index: {}]   ;;  %s2496_s4 = inlined_call_operand.vmem [shape: f32[1,128], index: 4, kind: input, shape index: {}]   ;;  %s2497_s2 = inlined_call_operand.vmem [shape: f32[1,128], index: 2, kind: input, shape index: {}]   ;;  %s2498_s6 = inlined_call_operand.vmem [shape: f32[1,128], index: 6, kind: output, shape index: {1}]   ;;  %s2499_s7 = inlined_call_operand.vmem [shape: f32[1,128], index: 7, kind: output, shape index: {2}]   ;;  %s2500_s5 = inlined_call_operand.vmem [shape: f32[512,128], index: 5, kind: output, shape index: {0}]  }
   0x1   :  { %v1516_v0 = vld [vmem:[%s2493_s1] sm:$0xff]   ;;  %v1517_v1 = vld [vmem:[%s2493_s1 + $0x8] sm:$0xff]   ;;  %v1518_v2 = vld [vmem:[%s2493_s1 + $0x10] sm:$0xff]  }
   0x2   :  { %1419 = vmatprep.subr.bf16.mxu0 %v1516_v0  ;;  %1499 = vmatprep.subr.bf16.mxu1 %v1516_v0  ;;  %v1519_v3 = vld [vmem:[%s2493_s1 + $0x18] sm:$0xff]   ;;  %v92_v4 = vld [vmem:[%s2494_s0] sm:$0xff]  ;;  %v93_v5 = vld [vmem:[%s2494_s0 + $0x8] sm:$0xff] }
   0x3   :  { %1420 = vmatpush3.bf16.msra.mxu0 %v1516_v0  ;;  %1507 = vmatpush3.bf16.msra.mxu1 %v1516_v0  ;;  %v1586_v6 = vld [vmem:[%s2495_s3] ss:$0 sm:$0xff]  ;;  %v94_v10 = vld [vmem:[%s2494_s0 + $0x10] sm:$0xff]  ;;  %v95_v14 = vld [vmem:[%s2494_s0 + $0x18] sm:$0xff] }
   0x4   :  { %1421 = vmatprep.subr.bf16.mxu0 %v1517_v1  ;;  %1500 = vmatprep.subr.bf16.mxu1 %v1517_v1  ;;  %v163_v7 = vmul.f32 %v1586_v6, %v92_v4  ;;  %v164_v8 = vmul.f32 %v1586_v6, %v93_v5  ;;  %v1593_v9 = vld [vmem:[%s2496_s4] ss:$0 sm:$0xff]  ;;  %v97_v16 = vld [vmem:[%s2494_s0 + $0x28] sm:$0xff]  ;;  %v98_v17 = vld [vmem:[%s2494_s0 + $0x30] sm:$0xff]  ;;  %v165_v21 = vmul.f32 %v1586_v6, %v94_v10 }
   0x5   :  { %v1601_v11 = vld [vmem:[%s2493_s1 + $0x20] sm:$0xff]   ;;  %v99_v18 = vld [vmem:[%s2494_s0 + $0x38] sm:$0xff]  ;;  %v101_v23 = vld [vmem:[%s2494_s0 + $0x48] sm:$0xff]  ;;  %v166_v24 = vmul.f32 %v1586_v6, %v95_v14  ;;  %v168_v29 = vmul.f32 %v1586_v6, %v97_v16  ;;  %v169_v30 = vmul.f32 %v1586_v6, %v98_v17 }
   0x6   :  { %v234_v12 = vadd.f32 %v1593_v9, %v163_v7  ;;  %v235_v13 = vadd.f32 %v1593_v9, %v164_v8  ;;  %v96_v15 = vld [vmem:[%s2494_s0 + $0x20] sm:$0xff]  ;;  %v102_v26 = vld [vmem:[%s2494_s0 + $0x50] sm:$0xff]  ;;  %v103_v27 = vld [vmem:[%s2494_s0 + $0x58] sm:$0xff]  ;;  %v170_v31 = vmul.f32 %v1586_v6, %v99_v18  ;;  %v172_v36 = vmul.f32 %v1586_v6, %v101_v23 }
   0x7   :  { %1422 = vmatpush3.bf16.msra.mxu0 %v1517_v1  ;;  %1508 = vmatpush3.bf16.msra.mxu1 %v1517_v1  ;;  %v100_v22 = vld [vmem:[%s2494_s0 + $0x40] sm:$0xff]  ;;  %v167_v25 = vmul.f32 %v1586_v6, %v96_v15  ;;  %v105_v33 = vld [vmem:[%s2494_s0 + $0x68] sm:$0xff]  ;;  %v236_v37 = vadd.f32 %v1593_v9, %v165_v21  ;;  %v173_v38 = vmul.f32 %v1586_v6, %v102_v26  ;;  %v106_v44 = vld [vmem:[%s2494_s0 + $0x70] sm:$0xff] }
   0x8   :  { %1423 = vmatprep.subr.bf16.mxu0 %v1518_v2  ;;  %1501 = vmatprep.subr.bf16.mxu1 %v1518_v2  ;;  %v298_v19 = vmax.f32 %v234_v12, 0.0  ;;  %v299_v20 = vmax.f32 %v235_v13, 0.0  ;;  %v104_v32 = vld [vmem:[%s2494_s0 + $0x60] sm:$0xff]  ;;  %v1521_v34 = vld [vmem:[%s2493_s1 + $0x28] sm:$0xff]   ;;  %v171_v35 = vmul.f32 %v1586_v6, %v100_v22  ;;  %v174_v39 = vmul.f32 %v1586_v6, %v103_v27  ;;  %v107_v48 = vld [vmem:[%s2494_s0 + $0x78] sm:$0xff] }
   0x9   :  { %v237_v40 = vadd.f32 %v1593_v9, %v166_v24  ;;  %v238_v41 = vadd.f32 %v1593_v9, %v167_v25  ;;  %v175_v42 = vmul.f32 %v1586_v6, %v104_v32  ;;  %v176_v43 = vmul.f32 %v1586_v6, %v105_v33  ;;  %v108_v49 = vld [vmem:[%s2494_s0 + $0x80] sm:$0xff]  ;;  %v1674_v50 = vld [vmem:[%s2493_s1 + $0x30] sm:$0xff]   ;;  %v109_v55 = vld [vmem:[%s2494_s0 + $0x88] sm:$0xff] }
   0xa   :  { %v426_v28 = vpack.c.bf16 %v299_v20, %v298_v19  ;;  %v239_v45 = vadd.f32 %v1593_v9, %v168_v29  ;;  %v240_v46 = vadd.f32 %v1593_v9, %v169_v30  ;;  %v241_v47 = vadd.f32 %v1593_v9, %v170_v31  ;;  %v110_v0 = vld [vmem:[%s2494_s0 + $0x90] sm:$0xff]  ;;  %v111_v5 = vld [vmem:[%s2494_s0 + $0x98] sm:$0xff]  ;;  %v112_v13 = vld [vmem:[%s2494_s0 + $0xa0] sm:$0xff] }
   0xb   :  { %1424 = vmatpush3.bf16.msra.mxu0 %v1518_v2  ;;  %1509 = vmatpush3.bf16.msra.mxu1 %v1518_v2  ;;  %v242_v51 = vadd.f32 %v1593_v9, %v171_v35  ;;  %v243_v52 = vadd.f32 %v1593_v9, %v172_v36  ;;  %v244_v53 = vadd.f32 %v1593_v9, %v173_v38  ;;  %v300_v56 = vmax.f32 %v236_v37, 0.0  ;;  %v1523_v7 = vld [vmem:[%s2493_s1 + $0x38] sm:$0xff]   ;;  %v113_v18 = vld [vmem:[%s2494_s0 + $0xa8] sm:$0xff]  ;;  %v114_v25 = vld [vmem:[%s2494_s0 + $0xb0] sm:$0xff] }
   0xc   :  { %1425 = vmatprep.subr.bf16.mxu0 %v1519_v3  ;;  %1502 = vmatprep.subr.bf16.mxu1 %v1519_v3  ;;  %v245_v54 = vadd.f32 %v1593_v9, %v174_v39  ;;  %v246_v57 = vadd.f32 %v1593_v9, %v175_v42  ;;  %v247_v58 = vadd.f32 %v1593_v9, %v176_v43  ;;  %v301_v60 = vmax.f32 %v237_v40, 0.0  ;;  %v118_v30 = vld [vmem:[%s2494_s0 + $0xd0] sm:$0xff]  ;;  %v119_v31 = vld [vmem:[%s2494_s0 + $0xd8] sm:$0xff]  ;;  %v120_v37 = vld [vmem:[%s2494_s0 + $0xe0] sm:$0xff] }
   0xd   :  { %1435 = vmatprep.mubr.bf16.mxu0 %v426_v28  ;;  %v177_v59 = vmul.f32 %v1586_v6, %v106_v44  ;;  %v302_v61 = vmax.f32 %v238_v41, 0.0  ;;  %v178_v62 = vmul.f32 %v1586_v6, %v107_v48  ;;  %v179_v63 = vmul.f32 %v1586_v6, %v108_v49  ;;  %v115_v36 = vld [vmem:[%s2494_s0 + $0xb8] sm:$0xff]  ;;  %v121_v38 = vld [vmem:[%s2494_s0 + $0xe8] sm:$0xff]  ;;  %v122_v43 = vld [vmem:[%s2494_s0 + $0xf0] sm:$0xff] }
   0xe   :  { %v303_v1 = vmax.f32 %v239_v45, 0.0  ;;  %v304_v2 = vmax.f32 %v240_v46, 0.0  ;;  %v180_v4 = vmul.f32 %v1586_v6, %v109_v55  ;;  %v306_v8 = vmax.f32 %v242_v51, 0.0  ;;  %v123_v48 = vld [vmem:[%s2494_s0 + $0xf8] sm:$0xff] }
   0xf   :  { %1426 = vmatpush3.bf16.msra.mxu0 %v1519_v3  ;;  %1510 = vmatpush3.bf16.msra.mxu1 %v1519_v3  ;;  %v305_v3 = vmax.f32 %v241_v47, 0.0  ;;  %v307_v10 = vmax.f32 %v243_v52, 0.0  ;;  %v309_v12 = vmax.f32 %v245_v54, 0.0  ;;  %v310_v14 = vmax.f32 %v246_v57, 0.0 }
  0x10   :  { %1427 = vmatprep.subr.bf16.mxu0 %v1601_v11  ;;  %1503 = vmatprep.subr.bf16.mxu1 %v1601_v11  ;;  %v311_v15 = vmax.f32 %v247_v58, 0.0  ;;  %v1704_v16 = vadd.f32 %v1593_v9, %v177_v59  ;;  %v181_v17 = vmul.f32 %v1586_v6, %v110_v0  ;;  %v1711_v19 = vadd.f32 %v1593_v9, %v178_v62  ;;  %v125_v62 = vld [vmem:[%s2494_s0 + $0x108] sm:$0xff] }
  0x11   :  { %v1714_v20 = vadd.f32 %v1593_v9, %v179_v63  ;;  %v182_v21 = vmul.f32 %v1586_v6, %v111_v5  ;;  %v427_v22 = vpack.c.bf16 %v301_v60, %v300_v56  ;;  %v1719_v23 = vadd.f32 %v1593_v9, %v180_v4  ;;  %v127_v4 = vld [vmem:[%s2494_s0 + $0x118] sm:$0xff] }
  0x12   :  { %v183_v24 = vmul.f32 %v1586_v6, %v112_v13  ;;  %v428_v26 = vpack.c.bf16 %v303_v1, %v302_v61  ;;  %v1726_v27 = vpack.c.bf16 %v305_v3, %v304_v2  ;;  %v1728_v28 = vpack.c.bf16 %v307_v10, %v306_v8  ;;  %v126_v3 = vld [vmem:[%s2494_s0 + $0x110] sm:$0xff] }
  0x13   :  { %1428 = vmatpush3.bf16.msra.mxu0 %v1601_v11  ;;  %1511 = vmatpush3.bf16.msra.mxu1 %v1601_v11  ;;  %v308_v11 = vmax.f32 %v244_v53, 0.0  ;;  %v184_v29 = vmul.f32 %v1586_v6, %v113_v18  ;;  %v1739_v33 = vpack.c.bf16 %v311_v15, %v310_v14  ;;  %v1743_v35 = vadd.f32 %v1593_v9, %v181_v17  ;;  %v124_v53 = vld [vmem:[%s2494_s0 + $0x100] sm:$0xff]  ;;  %v130_v18 = vld [vmem:[%s2494_s0 + $0x130] sm:$0xff] }
  0x14   :  { %1429 = vmatprep.subr.bf16.mxu0 %v1521_v34  ;;  %1504 = vmatprep.subr.bf16.mxu1 %v1521_v34  ;;  %v313_v39 = vmax.f32 %v1711_v19, 0.0  ;;  %v314_v40 = vmax.f32 %v1714_v20, 0.0  ;;  %v1757_v41 = vadd.f32 %v1593_v9, %v182_v21  ;;  %v185_v42 = vmul.f32 %v1586_v6, %v114_v25 }
  0x15   :  { %v1737_v32 = vpack.c.bf16 %v309_v12, %v308_v11  ;;  %v315_v44 = vmax.f32 %v1719_v23, 0.0  ;;  %v1766_v45 = vadd.f32 %v1593_v9, %v183_v24  ;;  %v189_v46 = vmul.f32 %v1586_v6, %v118_v30  ;;  %v128_v11 = vld [vmem:[%s2494_s0 + $0x120] sm:$0xff]  ;;  %v129_v12 = vld [vmem:[%s2494_s0 + $0x128] sm:$0xff] }
  0x16   :  { %v190_v47 = vmul.f32 %v1586_v6, %v119_v31  ;;  %v1774_v49 = vadd.f32 %v1593_v9, %v184_v29  ;;  %v191_v51 = vmul.f32 %v1586_v6, %v120_v37  ;;  %v192_v52 = vmul.f32 %v1586_v6, %v121_v38  ;;  %v132_v37 = vld [vmem:[%s2494_s0 + $0x140] sm:$0xff] }
  0x17   :  { %1430 = vmatpush3.bf16.msra.mxu0 %v1521_v34  ;;  %1512 = vmatpush3.bf16.msra.mxu1 %v1521_v34  ;;  %v312_v34 = vmax.f32 %v1704_v16, 0.0  ;;  %v316_v54 = vmax.f32 %v1743_v35, 0.0  ;;  %v260_v55 = vadd.f32 %v1593_v9, %v189_v46  ;;  %v193_v57 = vmul.f32 %v1586_v6, %v122_v43  ;;  %v147_v16 = vld [vmem:[%s2494_s0 + $0x1b8] sm:$0xff]  ;;  %v142_v35 = vld [vmem:[%s2494_s0 + $0x190] sm:$0xff] }
  0x18   :  { %1431 = vmatprep.subr.bf16.mxu0 %v1674_v50  ;;  %1505 = vmatprep.subr.bf16.mxu1 %v1674_v50  ;;  %v261_v56 = vadd.f32 %v1593_v9, %v190_v47  ;;  %v317_v58 = vmax.f32 %v1757_v41, 0.0  ;;  %v262_v59 = vadd.f32 %v1593_v9, %v191_v51  ;;  %v263_v60 = vadd.f32 %v1593_v9, %v192_v52  ;;  %v116_v47 = vld [vmem:[%s2494_s0 + $0xc0] sm:$0xff] }
  0x19   :  { %v194_v61 = vmul.f32 %v1586_v6, %v123_v48  ;;  %v324_v63 = vmax.f32 %v260_v55, 0.0  ;;  %v264_v1 = vadd.f32 %v1593_v9, %v193_v57  ;;  %v195_v2 = vmul.f32 %v1586_v6, %v124_v53  ;;  %v133_v55 = vld [vmem:[%s2494_s0 + $0x148] sm:$0xff] }
  0x1a   :  { %v325_v0 = vmax.f32 %v261_v56, 0.0  ;;  %v1804_v5 = vadd.f32 %v1593_v9, %v185_v42  ;;  %v327_v8 = vmax.f32 %v263_v60, 0.0  ;;  %v196_v15 = vmul.f32 %v1586_v6, %v125_v62  ;;  %v135_v62 = vld [vmem:[%s2494_s0 + $0x158] sm:$0xff] }
  0x1b   :  { %1432 = vmatpush3.bf16.msra.mxu0 %v1674_v50  ;;  %1513 = vmatpush3.bf16.msra.mxu1 %v1674_v50  ;;  %v1777_v50 = vmul.f32 %v1586_v6, %v115_v36  ;;  %v265_v10 = vadd.f32 %v1593_v9, %v194_v61  ;;  %v328_v14 = vmax.f32 %v264_v1, 0.0  ;;  %v266_v17 = vadd.f32 %v1593_v9, %v195_v2  ;;  %v134_v61 = vld [vmem:[%s2494_s0 + $0x150] sm:$0xff]  ;;  %v136_v2 = vld [vmem:[%s2494_s0 + $0x160] sm:$0xff] }
  0x1c   :  { %1433 = vmatprep.subr.bf16.mxu0 %v1523_v7  ;;  %1506 = vmatprep.subr.bf16.mxu1 %v1523_v7  ;;  %v1813_v13 = vpack.c.bf16 %v325_v0, %v324_v63  ;;  %v197_v24 = vmul.f32 %v1586_v6, %v126_v3  ;;  %v198_v25 = vmul.f32 %v1586_v6, %v127_v4  ;;  %v137_v3 = vld [vmem:[%s2494_s0 + $0x168] sm:$0xff]  ;;  %v320_v19 = vmax.f32 %v1804_v5, 0.0 }
  0x1d   :  { %v267_v29 = vadd.f32 %v1593_v9, %v196_v15  ;;  %v330_v30 = vmax.f32 %v266_v17, 0.0  ;;  %v199_v31 = vmul.f32 %v1586_v6, %v128_v11  ;;  %v200_v36 = vmul.f32 %v1586_v6, %v129_v12  ;;  %v139_v17 = vld [vmem:[%s2494_s0 + $0x178] sm:$0xff] }
  0x1e   :  { %v268_v42 = vadd.f32 %v1593_v9, %v197_v24  ;;  %v269_v43 = vadd.f32 %v1593_v9, %v198_v25  ;;  %v201_v46 = vmul.f32 %v1586_v6, %v130_v18  ;;  %v203_v60 = vmul.f32 %v1586_v6, %v132_v37 }
  0x1f   :  { %1434 = vmatpush3.bf16.msra.mxu0 %v1523_v7  ;;  %1514 = vmatpush3.bf16.msra.mxu1 %v1523_v7  ;;  %v326_v7 = vmax.f32 %v262_v59, 0.0  ;;  %v331_v48 = vmax.f32 %v267_v29, 0.0  ;;  %v270_v51 = vadd.f32 %v1593_v9, %v199_v31  ;;  %v271_v52 = vadd.f32 %v1593_v9, %v200_v36  ;;  %v117_v29 = vld [vmem:[%s2494_s0 + $0xc8] sm:$0xff] }
  0x20   :  { %v332_v56 = vmax.f32 %v268_v42, 0.0  ;;  %v333_v57 = vmax.f32 %v269_v43, 0.0  ;;  %v272_v59 = vadd.f32 %v1593_v9, %v201_v46  ;;  %v187_v4 = vmul.f32 %v1586_v6, %v116_v47 }
  0x21   :  { %v1820_v21 = vpack.c.bf16 %v327_v8, %v326_v7  ;;  %v442_v63 = vpack.c.bf16 %v331_v48, %v330_v30  ;;  %v334_v0 = vmax.f32 %v270_v51, 0.0  ;;  %v335_v1 = vmax.f32 %v271_v52, 0.0 }
  0x22   :  { %1436 = vmatmul.mubr.bf16.vlgmr.msra.gmra.mrb[0].mxu0 %v427_v22  ;;  %v329_v22 = vmax.f32 %v265_v10, 0.0  ;;  %v443_v7 = vpack.c.bf16 %v333_v57, %v332_v56  ;;  %v204_v8 = vmul.f32 %v1586_v6, %v133_v55  ;;  %v138_v10 = vld [vmem:[%s2494_s0 + $0x170] sm:$0xff]  ;;  %v336_v12 = vmax.f32 %v272_v59, 0.0 }
  0x23   :  { %1439 = vmatprep.mubr.bf16.mxu0 %v428_v26  ;;  %v131_v26 = vld [vmem:[%s2494_s0 + $0x138] sm:$0xff]  ;;  %1467 = vmatprep.mubr.bf16.mxu1 %v442_v63  ;;  %v444_v11 = vpack.c.bf16 %v335_v1, %v334_v0  ;;  %v206_v15 = vmul.f32 %v1586_v6, %v135_v62  ;;  %v207_v24 = vmul.f32 %v1586_v6, %v136_v2  ;;  %v318_v48 = vmax.f32 %v1766_v45, 0.0 }
  0x24   :  { %v1833_v38 = vpack.c.bf16 %v329_v22, %v328_v14  ;;  %v202_v53 = vmul.f32 %v1586_v6, %v131_v26  ;;  %v205_v14 = vmul.f32 %v1586_v6, %v134_v61  ;;  %1468 = vmatmul.mubr.bf16.vlgmr.msra.gmra.mrb[0].mxu1 %v443_v7  ;;  %v275_v22 = vadd.f32 %v1593_v9, %v204_v8  ;;  %v140_v26 = vld [vmem:[%s2494_s0 + $0x180] sm:$0xff]  ;;  %v149_v7 = vld [vmem:[%s2494_s0 + $0x1c8] sm:$0xff] }
  0x25   :  { %v208_v25 = vmul.f32 %v1586_v6, %v137_v3  ;;  %1471 = vmatprep.mubr.bf16.mxu1 %v444_v11  ;;  %v277_v36 = vadd.f32 %v1593_v9, %v206_v15  ;;  %v209_v37 = vmul.f32 %v1586_v6, %v138_v10  ;;  %v278_v43 = vadd.f32 %v1593_v9, %v207_v24  ;;  %v144_v3 = vld [vmem:[%s2494_s0 + $0x1a0] sm:$0xff]  ;;  %v145_v10 = vld [vmem:[%s2494_s0 + $0x1a8] sm:$0xff]  ;;  %v151_v15 = vld [vmem:[%s2494_s0 + $0x1d8] sm:$0xff] }
  0x26   :  { %v276_v31 = vadd.f32 %v1593_v9, %v205_v14  ;;  %v339_v42 = vmax.f32 %v275_v22, 0.0  ;;  %v210_v47 = vmul.f32 %v1586_v6, %v139_v17  ;;  %v319_v51 = vmax.f32 %v1774_v49, 0.0  ;;  %v150_v14 = vld [vmem:[%s2494_s0 + $0x1d0] sm:$0xff] }
  0x27   :  { %v279_v46 = vadd.f32 %v1593_v9, %v208_v25  ;;  %v1894_v52 = vadd.f32 %v1593_v9, %v1777_v50  ;;  %v188_v55 = vmul.f32 %v1586_v6, %v117_v29  ;;  %v341_v59 = vmax.f32 %v277_v36, 0.0  ;;  %v152_v25 = vld [vmem:[%s2494_s0 + $0x1e0] sm:$0xff] }
  0x28   :  { %v340_v57 = vmax.f32 %v276_v31, 0.0  ;;  %v342_v49 = vmax.f32 %v278_v43, 0.0  ;;  %v1904_v50 = vadd.f32 %v1593_v9, %v209_v37  ;;  %v433_v62 = vpack.c.bf16 %v313_v39, %v312_v34  ;;  %v148_v39 = vld [vmem:[%s2494_s0 + $0x1c0] sm:$0xff]  ;;  %v154_v37 = vld [vmem:[%s2494_s0 + $0x1f0] sm:$0xff] }
  0x29   :  { %v343_v61 = vmax.f32 %v279_v46, 0.0  ;;  %v1921_v63 = vpack.c.bf16 %v317_v58, %v316_v54  ;;  %v1924_v0 = vadd.f32 %v1593_v9, %v210_v47  ;;  %v1931_v20 = vadd.f32 %v1593_v9, %v187_v4  ;;  %v143_v54 = vld [vmem:[%s2494_s0 + $0x198] sm:$0xff] }
  0x2a   :  { %1440 = vmatmul.mubr.bf16.gmra.mrb[4].mxu0 %v1726_v27  ;;  %v273_v27 = vadd.f32 %v1593_v9, %v202_v53  ;;  %v211_v53 = vmul.f32 %v1586_v6, %v140_v26  ;;  %v321_v41 = vmax.f32 %v1894_v52, 0.0  ;;  %v447_v1 = vpack.c.bf16 %v341_v59, %v340_v57  ;;  %v153_v26 = vld [vmem:[%s2494_s0 + $0x1e8] sm:$0xff] }
  0x2b   :  { %1443 = vmatprep.mubr.bf16.mxu0 %v1728_v28  ;;  %v274_v28 = vadd.f32 %v1593_v9, %v203_v60  ;;  %v141_v60 = vld [vmem:[%s2494_s0 + $0x188] sm:$0xff]  ;;  %v344_v2 = vmax.f32 %v1904_v50, 0.0  ;;  %v218_v4 = vmul.f32 %v1586_v6, %v147_v16  ;;  %v345_v8 = vmax.f32 %v1924_v0, 0.0 }
  0x2c   :  { %v337_v18 = vmax.f32 %v273_v27, 0.0  ;;  %v212_v23 = vmul.f32 %v1586_v6, %v141_v60  ;;  %v1935_v34 = vadd.f32 %v1593_v9, %v211_v53  ;;  %v448_v27 = vpack.c.bf16 %v343_v61, %v342_v49 }
  0x2d   :  { %v338_v30 = vmax.f32 %v274_v28, 0.0  ;;  %v213_v28 = vmul.f32 %v1586_v6, %v142_v35  ;;  %v214_v22 = vmul.f32 %v1586_v6, %v143_v54  ;;  %v289_v24 = vadd.f32 %v1593_v9, %v218_v4 }
  0x2e   :  { %v445_v56 = vpack.c.bf16 %v337_v18, %v336_v12  ;;  %v219_v12 = vmul.f32 %v1586_v6, %v148_v39  ;;  %v283_v17 = vadd.f32 %v1593_v9, %v212_v23  ;;  %v346_v18 = vmax.f32 %v1935_v34, 0.0 }
  0x2f   :  { %v446_v45 = vpack.c.bf16 %v339_v42, %v338_v30  ;;  %v215_v29 = vmul.f32 %v1586_v6, %v144_v3  ;;  %v220_v31 = vmul.f32 %v1586_v6, %v149_v7  ;;  %v216_v42 = vmul.f32 %v1586_v6, %v145_v10 }
  0x30   :  { %1472 = vmatmul.mubr.bf16.gmra.mrb[4].mxu1 %v445_v56  ;;  %v290_v36 = vadd.f32 %v1593_v9, %v219_v12  ;;  %v353_v43 = vmax.f32 %v289_v24, 0.0  ;;  %v221_v46 = vmul.f32 %v1586_v6, %v150_v14  ;;  %v222_v47 = vmul.f32 %v1586_v6, %v151_v15 }
  0x31   :  { %1475 = vmatprep.mubr.bf16.mxu1 %v446_v45  ;;  %v224_v56 = vmul.f32 %v1586_v6, %v153_v26  ;;  %v225_v45 = vmul.f32 %v1586_v6, %v154_v37  ;;  %v322_v54 = vmax.f32 %v1931_v20, 0.0  ;;  %v286_v12 = vadd.f32 %v1593_v9, %v215_v29 }
  0x32   :  { %1444 = vmatmul.mubr.bf16.gmra.mrb[8].mxu0 %v1737_v32  ;;  %v146_v32 = vld [vmem:[%s2494_s0 + $0x1b0] sm:$0xff]  ;;  %v354_v53 = vmax.f32 %v290_v36, 0.0  ;;  %v292_v59 = vadd.f32 %v1593_v9, %v221_v46  ;;  %v293_v60 = vadd.f32 %v1593_v9, %v222_v47  ;;  %v287_v20 = vadd.f32 %v1593_v9, %v216_v42 }
  0x33   :  { %1447 = vmatprep.mubr.bf16.mxu0 %v1739_v33  ;;  %v434_v33 = vpack.c.bf16 %v315_v44, %v314_v40  ;;  %v1943_v40 = vpack.c.bf16 %v319_v51, %v318_v48  ;;  %v1947_v44 = vadd.f32 %v1593_v9, %v188_v55  ;;  %v217_v58 = vmul.f32 %v1586_v6, %v146_v32  ;;  %v155_v48 = vld [vmem:[%s2494_s0 + $0x1f8] sm:$0xff] }
  0x34   :  { %v291_v51 = vadd.f32 %v1593_v9, %v220_v31  ;;  %v223_v55 = vmul.f32 %v1586_v6, %v152_v25  ;;  %v295_v50 = vadd.f32 %v1593_v9, %v224_v56  ;;  %v226_v32 = vmul.f32 %v1586_v6, %v155_v48 }
  0x35   :  { %v288_v11 = vadd.f32 %v1593_v9, %v217_v58  ;;  %v357_v0 = vmax.f32 %v293_v60, 0.0  ;;  %v296_v16 = vadd.f32 %v1593_v9, %v225_v45  ;;  %v449_v58 = vpack.c.bf16 %v345_v8, %v344_v2 }
  0x36   :  { %v355_v49 = vmax.f32 %v291_v51, 0.0  ;;  %v294_v61 = vadd.f32 %v1593_v9, %v223_v55  ;;  %v359_v35 = vmax.f32 %v295_v50, 0.0  ;;  %v297_v39 = vadd.f32 %v1593_v9, %v226_v32 }
  0x37   :  { %v352_v30 = vmax.f32 %v288_v11, 0.0  ;;  %v360_v3 = vmax.f32 %v296_v16, 0.0  ;;  %v284_v6 = vadd.f32 %v1593_v9, %v213_v28  ;;  %v323_v10 = vmax.f32 %v1947_v44, 0.0 }
  0x38   :  { %1476 = vmatmul.mubr.bf16.gmra.mrb[8].mxu1 %v447_v1  ;;  %v454_v23 = vpack.c.bf16 %v355_v49, %v354_v53  ;;  %v358_v34 = vmax.f32 %v294_v61, 0.0  ;;  %v361_v7 = vmax.f32 %v297_v39, 0.0  ;;  %v350_v15 = vmax.f32 %v286_v12, 0.0 }
  0x39   :  { %v453_v57 = vpack.c.bf16 %v353_v43, %v352_v30  ;;  %1479 = vmatprep.mubr.bf16.mxu1 %v448_v27  ;;  %v285_v27 = vadd.f32 %v1593_v9, %v214_v22  ;;  %v348_v8 = vmax.f32 %v284_v6, 0.0  ;;  %v438_v14 = vpack.c.bf16 %v323_v10, %v322_v54  ;;  %v2025_v9 = vld [vmem:[%s2497_s2] ss:$0 sm:$0xff] }
  0x3a   :  { %1448 = vmatmul.mubr.bf16.gmra.mrb[12].mxu0 %v433_v62  ;;  %v347_v62 = vmax.f32 %v283_v17, 0.0  ;;  %v456_v4 = vpack.c.bf16 %v359_v35, %v358_v34  ;;  %v457_v2 = vpack.c.bf16 %v361_v7, %v360_v3  ;;  %v1524_v5 = vmov 0.0  }
  0x3b   :  { %1451 = vmatprep.mubr.bf16.mxu0 %v434_v33  ;;  %v356_v33 = vmax.f32 %v292_v59, 0.0  ;;  %v349_v28 = vmax.f32 %v285_v27, 0.0  ;;  %944 = vst [vmem:[%s2498_s6] sm:$0x1] %v1524_v5  ;;  %945 = vst [vmem:[%s2499_s7] sm:$0x1] %v1524_v5 }
  0x3c   :  { %v450_v11 = vpack.c.bf16 %v347_v62, %v346_v18 }
  0x3d   :  { %v455_v1 = vpack.c.bf16 %v357_v0, %v356_v33  ;;  %v451_v44 = vpack.c.bf16 %v349_v28, %v348_v8 }
  0x40   :  { %1480 = vmatmul.mubr.bf16.gmra.mrb[12].mxu1 %v449_v58 }
  0x41   :  { %1483 = vmatprep.mubr.bf16.mxu1 %v450_v11 }
  0x42   :  { %1452 = vmatmul.mubr.bf16.gmra.mrb[16].mxu0 %v1921_v63  ;;  %v437_v63 = vpack.c.bf16 %v321_v41, %v320_v19 }
  0x43   :  { %1455 = vmatprep.mubr.bf16.mxu0 %v1943_v40  ;;  %v351_v40 = vmax.f32 %v287_v20, 0.0 }
  0x45   :  { %v452_v17 = vpack.c.bf16 %v351_v40, %v350_v15 }
  0x48   :  { %1484 = vmatmul.mubr.bf16.gmra.mrb[16].mxu1 %v451_v44 }
  0x49   :  { %1487 = vmatprep.mubr.bf16.mxu1 %v452_v17 }
  0x4a   :  { %1456 = vmatmul.mubr.bf16.gmra.mrb[20].mxu0 %v437_v63 }
  0x4b   :  { %1459 = vmatprep.mubr.bf16.mxu0 %v438_v14 }
  0x50   :  { %1488 = vmatmul.mubr.bf16.gmra.mrb[20].mxu1 %v453_v57 }
  0x51   :  { %1491 = vmatprep.mubr.bf16.mxu1 %v454_v23 }
  0x52   :  { %1460 = vmatmul.mubr.bf16.gmra.mrb[24].mxu0 %v1813_v13 }
  0x53   :  { %1463 = vmatprep.mubr.bf16.mxu0 %v1820_v21 }
  0x58   :  { %1492 = vmatmul.mubr.bf16.gmra.mrb[24].mxu1 %v455_v1 }
  0x59   :  { %1495 = vmatprep.mubr.bf16.mxu1 %v456_v4 }
  0x5a   :  { %1464 = vmatmul.mubr.bf16.gmra.mrb[28].mxu0 %v1833_v38 }
  0x60   :  { %1496 = vmatmul.mubr.bf16.gmra.mrb[28].mxu1 %v457_v2 }
  0xf5   :  { %v1437_v13 = vpop.f32.mrb[0].mxu0 }
  0xf6   :  { %v1022_v21 = vadd.f32 %v1437_v13, %v2025_v9  ;;  %v556_v38 = vpop.f32.mrb[1].mxu0 }
  0xf7   :  { %v1020_v52 = vadd.f32 %v2025_v9, %v556_v38  ;;  %v1438_v19 = vpop.f32.mrb[2].mxu0  ;;  %v1469_v45 = vpop.f32.mrb[0].mxu1 }
  0xf8   :  { %1086 = vst [vmem:[%s2500_s5 + $0x10] sm:$0xff] %v1022_v21  ;;  %v1023_v41 = vadd.f32 %v1438_v19, %v2025_v9  ;;  %v559_v18 = vpop.f32.mrb[3].mxu0  ;;  %v1223_v29 = vmul.f32 %v1022_v21, %v1022_v21  ;;  %v2063_v49 = vadd.f32 %v1469_v45, %v2025_v9  ;;  %v684_v61 = vpop.f32.mrb[1].mxu1 }
  0xf9   :  { %1084 = vst [vmem:[%s2500_s5] sm:$0xff] %v1020_v52  ;;  %v1021_v22 = vadd.f32 %v2025_v9, %v559_v18  ;;  %v1221_v24 = vmul.f32 %v1020_v52, %v1020_v52  ;;  %v2069_v33 = vadd.f32 %v2025_v9, %v684_v61  ;;  %v1470_v0 = vpop.f32.mrb[2].mxu1 }
  0xfa   :  { %1087 = vst [vmem:[%s2500_s5 + $0x18] sm:$0xff] %v1023_v41  ;;  %v1224_v43 = vmul.f32 %v1023_v41, %v1023_v41  ;;  %1118 = vst [vmem:[%s2500_s5 + $0x110] sm:$0xff] %v2063_v49  ;;  %v2076_v16 = vadd.f32 %v1470_v0, %v2025_v9  ;;  %v687_v23 = vpop.f32.mrb[3].mxu1 }
  0xfb   :  { %1085 = vst [vmem:[%s2500_s5 + $0x8] sm:$0xff] %v1021_v22  ;;  %v1149_v25 = vadd.f32 %v1021_v22, %v1020_v52  ;;  %v1222_v26 = vmul.f32 %v1021_v22, %v1021_v22  ;;  %1116 = vst [vmem:[%s2500_s5 + $0x100] sm:$0xff] %v2069_v33  ;;  %v2083_v58 = vadd.f32 %v2025_v9, %v687_v23 }
  0xfc   :  { %1119 = vst [vmem:[%s2500_s5 + $0x118] sm:$0xff] %v2076_v16 }
  0xfd   :  { %v1150_v30 = vadd.f32 %v1149_v25, %v1022_v21  ;;  %v1285_v31 = vadd.f32 %v1222_v26, %v1221_v24  ;;  %v1441_v36 = vpop.f32.mrb[4].mxu0  ;;  %1117 = vst [vmem:[%s2500_s5 + $0x108] sm:$0xff] %v2083_v58 }
  0xfe   :  { %v1026_v37 = vadd.f32 %v1441_v36, %v2025_v9  ;;  %v572_v42 = vpop.f32.mrb[5].mxu0 }
  0xff   :  { %v1286_v46 = vadd.f32 %v1285_v31, %v1223_v29  ;;  %v1024_v47 = vadd.f32 %v2025_v9, %v572_v42  ;;  %v1151_v48 = vadd.f32 %v1150_v30, %v1023_v41  ;;  %v1442_v51 = vpop.f32.mrb[6].mxu0 }
 0x100   :  { %1090 = vst [vmem:[%s2500_s5 + $0x30] sm:$0xff] %v1026_v37  ;;  %v1027_v53 = vadd.f32 %v1442_v51, %v2025_v9  ;;  %v575_v55 = vpop.f32.mrb[7].mxu0  ;;  %v1227_v34 = vmul.f32 %v1026_v37, %v1026_v37 }
 0x101   :  { %1088 = vst [vmem:[%s2500_s5 + $0x20] sm:$0xff] %v1024_v47  ;;  %v1152_v56 = vadd.f32 %v1151_v48, %v1024_v47  ;;  %v1225_v57 = vmul.f32 %v1024_v47, %v1024_v47  ;;  %v1287_v59 = vadd.f32 %v1286_v46, %v1224_v43  ;;  %v1025_v60 = vadd.f32 %v2025_v9, %v575_v55 }
 0x102   :  { %1091 = vst [vmem:[%s2500_s5 + $0x38] sm:$0xff] %v1027_v53  ;;  %v1228_v6 = vmul.f32 %v1027_v53, %v1027_v53 }
 0x103   :  { %v1288_v50 = vadd.f32 %v1287_v59, %v1225_v57  ;;  %1089 = vst [vmem:[%s2500_s5 + $0x28] sm:$0xff] %v1025_v60  ;;  %v1153_v32 = vadd.f32 %v1152_v56, %v1025_v60  ;;  %v1226_v62 = vmul.f32 %v1025_v60, %v1025_v60  ;;  %v1473_v28 = vpop.f32.mrb[4].mxu1 }
 0x104   :  { %v2107_v14 = vadd.f32 %v1473_v28, %v2025_v9  ;;  %v700_v15 = vpop.f32.mrb[5].mxu1 }
 0x105   :  { %v1154_v35 = vadd.f32 %v1153_v32, %v1026_v37  ;;  %v1289_v39 = vadd.f32 %v1288_v50, %v1226_v62  ;;  %v1445_v54 = vpop.f32.mrb[8].mxu0  ;;  %v2113_v5 = vadd.f32 %v2025_v9, %v700_v15  ;;  %v1474_v13 = vpop.f32.mrb[6].mxu1 }
 0x106   :  { %v1030_v1 = vadd.f32 %v1445_v54, %v2025_v9  ;;  %v588_v3 = vpop.f32.mrb[9].mxu0  ;;  %1122 = vst [vmem:[%s2500_s5 + $0x130] sm:$0xff] %v2107_v14  ;;  %v2120_v21 = vadd.f32 %v1474_v13, %v2025_v9  ;;  %v703_v38 = vpop.f32.mrb[7].mxu1 }
 0x107   :  { %v1290_v27 = vadd.f32 %v1289_v39, %v1227_v34  ;;  %v1028_v4 = vadd.f32 %v2025_v9, %v588_v3  ;;  %v1155_v7 = vadd.f32 %v1154_v35, %v1027_v53  ;;  %v1446_v10 = vpop.f32.mrb[10].mxu0  ;;  %1120 = vst [vmem:[%s2500_s5 + $0x120] sm:$0xff] %v2113_v5  ;;  %v2127_v22 = vadd.f32 %v2025_v9, %v703_v38 }
 0x108   :  { %1094 = vst [vmem:[%s2500_s5 + $0x50] sm:$0xff] %v1030_v1  ;;  %v1031_v11 = vadd.f32 %v1446_v10, %v2025_v9  ;;  %v591_v12 = vpop.f32.mrb[11].mxu0  ;;  %v1231_v52 = vmul.f32 %v1030_v1, %v1030_v1  ;;  %1123 = vst [vmem:[%s2500_s5 + $0x138] sm:$0xff] %v2120_v21 }
 0x109   :  { %1092 = vst [vmem:[%s2500_s5 + $0x40] sm:$0xff] %v1028_v4  ;;  %v1156_v20 = vadd.f32 %v1155_v7, %v1028_v4  ;;  %v1229_v2 = vmul.f32 %v1028_v4, %v1028_v4  ;;  %v1291_v63 = vadd.f32 %v1290_v27, %v1228_v6  ;;  %v1029_v8 = vadd.f32 %v2025_v9, %v591_v12 }
 0x10a   :  { %1095 = vst [vmem:[%s2500_s5 + $0x58] sm:$0xff] %v1031_v11  ;;  %v1232_v26 = vmul.f32 %v1031_v11, %v1031_v11  ;;  %1121 = vst [vmem:[%s2500_s5 + $0x128] sm:$0xff] %v2127_v22 }
 0x10b   :  { %v1292_v40 = vadd.f32 %v1291_v63, %v1229_v2  ;;  %1093 = vst [vmem:[%s2500_s5 + $0x48] sm:$0xff] %v1029_v8  ;;  %v1157_v44 = vadd.f32 %v1156_v20, %v1029_v8  ;;  %v1230_v17 = vmul.f32 %v1029_v8, %v1029_v8  ;;  %v1477_v51 = vpop.f32.mrb[8].mxu1 }
 0x10c   :  { %v2151_v53 = vadd.f32 %v1477_v51, %v2025_v9  ;;  %v716_v55 = vpop.f32.mrb[9].mxu1 }
 0x10d   :  { %v1158_v19 = vadd.f32 %v1157_v44, %v1030_v1  ;;  %v1293_v41 = vadd.f32 %v1292_v40, %v1230_v17  ;;  %v1449_v18 = vpop.f32.mrb[12].mxu0  ;;  %v2157_v60 = vadd.f32 %v2025_v9, %v716_v55  ;;  %v1478_v45 = vpop.f32.mrb[10].mxu1 }
 0x10e   :  { %v1034_v24 = vadd.f32 %v1449_v18, %v2025_v9  ;;  %v604_v25 = vpop.f32.mrb[13].mxu0  ;;  %1126 = vst [vmem:[%s2500_s5 + $0x150] sm:$0xff] %v2151_v53  ;;  %v2164_v61 = vadd.f32 %v1478_v45, %v2025_v9  ;;  %v719_v50 = vpop.f32.mrb[11].mxu1 }
 0x10f   :  { %v1294_v29 = vadd.f32 %v1293_v41, %v1231_v52  ;;  %v1032_v30 = vadd.f32 %v2025_v9, %v604_v25  ;;  %v1159_v31 = vadd.f32 %v1158_v19, %v1031_v11  ;;  %v1450_v36 = vpop.f32.mrb[14].mxu0  ;;  %1124 = vst [vmem:[%s2500_s5 + $0x140] sm:$0xff] %v2157_v60  ;;  %v2171_v34 = vadd.f32 %v2025_v9, %v719_v50 }
 0x110   :  { %1098 = vst [vmem:[%s2500_s5 + $0x70] sm:$0xff] %v1034_v24  ;;  %v1035_v37 = vadd.f32 %v1450_v36, %v2025_v9  ;;  %v607_v42 = vpop.f32.mrb[15].mxu0  ;;  %v1235_v32 = vmul.f32 %v1034_v24, %v1034_v24  ;;  %1127 = vst [vmem:[%s2500_s5 + $0x158] sm:$0xff] %v2164_v61 }
 0x111   :  { %1096 = vst [vmem:[%s2500_s5 + $0x60] sm:$0xff] %v1032_v30  ;;  %v1160_v43 = vadd.f32 %v1159_v31, %v1032_v30  ;;  %v1233_v46 = vmul.f32 %v1032_v30, %v1032_v30  ;;  %v1295_v47 = vadd.f32 %v1294_v29, %v1232_v26  ;;  %v1033_v48 = vadd.f32 %v2025_v9, %v607_v42 }
 0x112   :  { %1099 = vst [vmem:[%s2500_s5 + $0x78] sm:$0xff] %v1035_v37  ;;  %v1236_v54 = vmul.f32 %v1035_v37, %v1035_v37  ;;  %1125 = vst [vmem:[%s2500_s5 + $0x148] sm:$0xff] %v2171_v34 }
 0x113   :  { %v1296_v56 = vadd.f32 %v1295_v47, %v1233_v46  ;;  %1097 = vst [vmem:[%s2500_s5 + $0x68] sm:$0xff] %v1033_v48  ;;  %v1161_v57 = vadd.f32 %v1160_v43, %v1033_v48  ;;  %v1234_v59 = vmul.f32 %v1033_v48, %v1033_v48  ;;  %v1481_v2 = vpop.f32.mrb[12].mxu1 }
 0x114   :  { %v2195_v63 = vadd.f32 %v1481_v2, %v2025_v9  ;;  %v732_v8 = vpop.f32.mrb[13].mxu1 }
 0x115   :  { %v1162_v62 = vadd.f32 %v1161_v57, %v1034_v24  ;;  %v1297_v0 = vadd.f32 %v1296_v56, %v1234_v59  ;;  %v1453_v23 = vpop.f32.mrb[16].mxu0  ;;  %v2201_v44 = vadd.f32 %v2025_v9, %v732_v8  ;;  %v1482_v17 = vpop.f32.mrb[14].mxu1 }
 0x116   :  { %v1038_v35 = vadd.f32 %v1453_v23, %v2025_v9  ;;  %v620_v39 = vpop.f32.mrb[17].mxu0  ;;  %1130 = vst [vmem:[%s2500_s5 + $0x170] sm:$0xff] %v2195_v63  ;;  %v2208_v13 = vadd.f32 %v1482_v17, %v2025_v9  ;;  %v735_v38 = vpop.f32.mrb[15].mxu1 }
 0x117   :  { %v1298_v1 = vadd.f32 %v1297_v0, %v1235_v32  ;;  %v1036_v3 = vadd.f32 %v2025_v9, %v620_v39  ;;  %v1163_v6 = vadd.f32 %v1162_v62, %v1035_v37  ;;  %v1454_v27 = vpop.f32.mrb[18].mxu0  ;;  %1128 = vst [vmem:[%s2500_s5 + $0x160] sm:$0xff] %v2201_v44  ;;  %v2215_v24 = vadd.f32 %v2025_v9, %v735_v38 }
 0x118   :  { %1102 = vst [vmem:[%s2500_s5 + $0x90] sm:$0xff] %v1038_v35  ;;  %v1039_v4 = vadd.f32 %v1454_v27, %v2025_v9  ;;  %v623_v7 = vpop.f32.mrb[19].mxu0  ;;  %v1239_v52 = vmul.f32 %v1038_v35, %v1038_v35  ;;  %1131 = vst [vmem:[%s2500_s5 + $0x178] sm:$0xff] %v2208_v13 }
 0x119   :  { %1100 = vst [vmem:[%s2500_s5 + $0x80] sm:$0xff] %v1036_v3  ;;  %v1164_v10 = vadd.f32 %v1163_v6, %v1036_v3  ;;  %v1237_v11 = vmul.f32 %v1036_v3, %v1036_v3  ;;  %v1299_v12 = vadd.f32 %v1298_v1, %v1236_v54  ;;  %v1037_v20 = vadd.f32 %v2025_v9, %v623_v7 }
 0x11a   :  { %1103 = vst [vmem:[%s2500_s5 + $0x98] sm:$0xff] %v1039_v4  ;;  %v1240_v29 = vmul.f32 %v1039_v4, %v1039_v4  ;;  %1129 = vst [vmem:[%s2500_s5 + $0x168] sm:$0xff] %v2215_v24 }
 0x11b   :  { %v1300_v28 = vadd.f32 %v1299_v12, %v1237_v11  ;;  %1101 = vst [vmem:[%s2500_s5 + $0x88] sm:$0xff] %v1037_v20  ;;  %v1165_v15 = vadd.f32 %v1164_v10, %v1037_v20  ;;  %v1238_v40 = vmul.f32 %v1037_v20, %v1037_v20  ;;  %v1485_v55 = vpop.f32.mrb[16].mxu1 }
 0x11c   :  { %v2239_v56 = vadd.f32 %v1485_v55, %v2025_v9  ;;  %v748_v57 = vpop.f32.mrb[17].mxu1 }
 0x11d   :  { %v1166_v19 = vadd.f32 %v1165_v15, %v1038_v35  ;;  %v1301_v41 = vadd.f32 %v1300_v28, %v1238_v40  ;;  %v1457_v18 = vpop.f32.mrb[20].mxu0  ;;  %v2245_v32 = vadd.f32 %v2025_v9, %v748_v57  ;;  %v1486_v62 = vpop.f32.mrb[18].mxu1 }
 0x11e   :  { %v1042_v25 = vadd.f32 %v1457_v18, %v2025_v9  ;;  %v636_v26 = vpop.f32.mrb[21].mxu0  ;;  %1134 = vst [vmem:[%s2500_s5 + $0x190] sm:$0xff] %v2239_v56  ;;  %v2252_v0 = vadd.f32 %v1486_v62, %v2025_v9  ;;  %v751_v23 = vpop.f32.mrb[19].mxu1 }
 0x11f   :  { %v1302_v30 = vadd.f32 %v1301_v41, %v1239_v52  ;;  %v1040_v31 = vadd.f32 %v2025_v9, %v636_v26  ;;  %v1167_v36 = vadd.f32 %v1166_v19, %v1039_v4  ;;  %v1458_v37 = vpop.f32.mrb[22].mxu0  ;;  %1132 = vst [vmem:[%s2500_s5 + $0x180] sm:$0xff] %v2245_v32  ;;  %v2259_v3 = vadd.f32 %v2025_v9, %v751_v23 }
 0x120   :  { %1106 = vst [vmem:[%s2500_s5 + $0xb0] sm:$0xff] %v1042_v25  ;;  %v1043_v42 = vadd.f32 %v1458_v37, %v2025_v9  ;;  %v639_v43 = vpop.f32.mrb[23].mxu0  ;;  %v1243_v35 = vmul.f32 %v1042_v25, %v1042_v25  ;;  %1135 = vst [vmem:[%s2500_s5 + $0x198] sm:$0xff] %v2252_v0 }
 0x121   :  { %1104 = vst [vmem:[%s2500_s5 + $0xa0] sm:$0xff] %v1040_v31  ;;  %v1168_v46 = vadd.f32 %v1167_v36, %v1040_v31  ;;  %v1241_v47 = vmul.f32 %v1040_v31, %v1040_v31  ;;  %v1303_v48 = vadd.f32 %v1302_v30, %v1240_v29  ;;  %v1041_v51 = vadd.f32 %v2025_v9, %v639_v43 }
 0x122   :  { %1107 = vst [vmem:[%s2500_s5 + $0xb8] sm:$0xff] %v1043_v42  ;;  %v1244_v4 = vmul.f32 %v1043_v42, %v1043_v42  ;;  %1133 = vst [vmem:[%s2500_s5 + $0x188] sm:$0xff] %v2259_v3 }
 0x123   :  { %v1304_v59 = vadd.f32 %v1303_v48, %v1241_v47  ;;  %1105 = vst [vmem:[%s2500_s5 + $0xa8] sm:$0xff] %v1041_v51  ;;  %v1169_v45 = vadd.f32 %v1168_v46, %v1041_v51  ;;  %v1242_v50 = vmul.f32 %v1041_v51, %v1041_v51  ;;  %v1489_v17 = vpop.f32.mrb[20].mxu1 }
 0x124   :  { %v2283_v38 = vadd.f32 %v1489_v17, %v2025_v9  ;;  %v764_v52 = vpop.f32.mrb[21].mxu1 }
 0x125   :  { %v1170_v39 = vadd.f32 %v1169_v45, %v1042_v25  ;;  %v1305_v54 = vadd.f32 %v1304_v59, %v1242_v50  ;;  %v1461_v1 = vpop.f32.mrb[24].mxu0  ;;  %v2289_v25 = vadd.f32 %v2025_v9, %v764_v52  ;;  %v1490_v26 = vpop.f32.mrb[22].mxu1 }
 0x126   :  { %v1046_v6 = vadd.f32 %v1461_v1, %v2025_v9  ;;  %v652_v27 = vpop.f32.mrb[25].mxu0  ;;  %1138 = vst [vmem:[%s2500_s5 + $0x1b0] sm:$0xff] %v2283_v38  ;;  %v2296_v29 = vadd.f32 %v1490_v26, %v2025_v9  ;;  %v767_v30 = vpop.f32.mrb[23].mxu1 }
 0x127   :  { %v1306_v7 = vadd.f32 %v1305_v54, %v1243_v35  ;;  %v1044_v10 = vadd.f32 %v2025_v9, %v652_v27  ;;  %v1171_v11 = vadd.f32 %v1170_v39, %v1043_v42  ;;  %v1462_v12 = vpop.f32.mrb[26].mxu0  ;;  %1136 = vst [vmem:[%s2500_s5 + $0x1a0] sm:$0xff] %v2289_v25  ;;  %v2303_v43 = vadd.f32 %v2025_v9, %v767_v30 }
 0x128   :  { %1110 = vst [vmem:[%s2500_s5 + $0xd0] sm:$0xff] %v1046_v6  ;;  %v1047_v20 = vadd.f32 %v1462_v12, %v2025_v9  ;;  %v655_v2 = vpop.f32.mrb[27].mxu0  ;;  %v1247_v31 = vmul.f32 %v1046_v6, %v1046_v6  ;;  %1139 = vst [vmem:[%s2500_s5 + $0x1b8] sm:$0xff] %v2296_v29 }
 0x129   :  { %1108 = vst [vmem:[%s2500_s5 + $0xc0] sm:$0xff] %v1044_v10  ;;  %v1172_v8 = vadd.f32 %v1171_v11, %v1044_v10  ;;  %v1245_v28 = vmul.f32 %v1044_v10, %v1044_v10  ;;  %v1307_v15 = vadd.f32 %v1306_v7, %v1244_v4  ;;  %v1045_v40 = vadd.f32 %v2025_v9, %v655_v2 }
 0x12a   :  { %1111 = vst [vmem:[%s2500_s5 + $0xd8] sm:$0xff] %v1047_v20  ;;  %v1248_v48 = vmul.f32 %v1047_v20, %v1047_v20  ;;  %1137 = vst [vmem:[%s2500_s5 + $0x1a8] sm:$0xff] %v2303_v43 }
 0x12b   :  { %v1308_v19 = vadd.f32 %v1307_v15, %v1245_v28  ;;  %1109 = vst [vmem:[%s2500_s5 + $0xc8] sm:$0xff] %v1045_v40  ;;  %v1173_v41 = vadd.f32 %v1172_v8, %v1045_v40  ;;  %v1246_v18 = vmul.f32 %v1045_v40, %v1045_v40  ;;  %v1493_v54 = vpop.f32.mrb[24].mxu1 }
 0x12c   :  { %v2327_v1 = vadd.f32 %v1493_v54, %v2025_v9 }
 0x12d   :  { %v1174_v36 = vadd.f32 %v1173_v41, %v1046_v6  ;;  %v1309_v37 = vadd.f32 %v1308_v19, %v1246_v18  ;;  %v1465_v42 = vpop.f32.mrb[28].mxu0  ;;  %v780_v6 = vpop.f32.mrb[25].mxu1  ;;  %v1253_v19 = vmul.f32 %v2069_v33, %v2069_v33 }
 0x12e   :  { %v1050_v46 = vadd.f32 %v1465_v42, %v2025_v9  ;;  %v668_v47 = vpop.f32.mrb[29].mxu0  ;;  %v2333_v10 = vadd.f32 %v2025_v9, %v780_v6  ;;  %v1494_v11 = vpop.f32.mrb[26].mxu1  ;;  %1142 = vst [vmem:[%s2500_s5 + $0x1d0] sm:$0xff] %v2327_v1  ;;  %v1254_v42 = vmul.f32 %v2083_v58, %v2083_v58 }
 0x12f   :  { %v1310_v51 = vadd.f32 %v1309_v37, %v1247_v31  ;;  %v1048_v55 = vadd.f32 %v2025_v9, %v668_v47  ;;  %v1175_v57 = vadd.f32 %v1174_v36, %v1047_v20  ;;  %v1466_v59 = vpop.f32.mrb[30].mxu0  ;;  %v2340_v12 = vadd.f32 %v1494_v11, %v2025_v9  ;;  %v783_v20 = vpop.f32.mrb[27].mxu1 }
 0x130   :  { %1114 = vst [vmem:[%s2500_s5 + $0xf0] sm:$0xff] %v1050_v46  ;;  %v1051_v45 = vadd.f32 %v1466_v59, %v2025_v9  ;;  %v671_v50 = vpop.f32.mrb[31].mxu0  ;;  %v1251_v2 = vmul.f32 %v1050_v46, %v1050_v46  ;;  %1140 = vst [vmem:[%s2500_s5 + $0x1c0] sm:$0xff] %v2333_v10  ;;  %v2347_v15 = vadd.f32 %v2025_v9, %v783_v20 }
 0x131   :  { %1112 = vst [vmem:[%s2500_s5 + $0xe0] sm:$0xff] %v1048_v55  ;;  %v1176_v62 = vadd.f32 %v1175_v57, %v1048_v55  ;;  %v1249_v23 = vmul.f32 %v1048_v55, %v1048_v55  ;;  %v1311_v35 = vadd.f32 %v1310_v51, %v1248_v48  ;;  %v1049_v39 = vadd.f32 %v2025_v9, %v671_v50 }
 0x132   :  { %1115 = vst [vmem:[%s2500_s5 + $0xf8] sm:$0xff] %v1051_v45  ;;  %1143 = vst [vmem:[%s2500_s5 + $0x1d8] sm:$0xff] %v2340_v12  ;;  %v1252_v40 = vmul.f32 %v1051_v45, %v1051_v45  ;;  %v1255_v51 = vmul.f32 %v2063_v49, %v2063_v49  ;;  %v1256_v59 = vmul.f32 %v2076_v16, %v2076_v16 }
 0x133   :  { %v1312_v27 = vadd.f32 %v1311_v35, %v1249_v23  ;;  %1113 = vst [vmem:[%s2500_s5 + $0xe8] sm:$0xff] %v1049_v39  ;;  %v1177_v4 = vadd.f32 %v1176_v62, %v1049_v39  ;;  %v1250_v7 = vmul.f32 %v1049_v39, %v1049_v39  ;;  %1141 = vst [vmem:[%s2500_s5 + $0x1c8] sm:$0xff] %v2347_v15  ;;  %v1497_v26 = vpop.f32.mrb[28].mxu1 }
 0x134   :  { %v2361_v30 = vadd.f32 %v1497_v26, %v2025_v9  ;;  %v796_v31 = vpop.f32.mrb[29].mxu1  ;;  %v1257_v50 = vmul.f32 %v2113_v5, %v2113_v5  ;;  %v1258_v39 = vmul.f32 %v2127_v22, %v2127_v22  ;;  %v1266_v26 = vmul.f32 %v2215_v24, %v2215_v24 }
 0x135   :  { %v1178_v8 = vadd.f32 %v1177_v4, %v1050_v46  ;;  %v1313_v28 = vadd.f32 %v1312_v27, %v1250_v7  ;;  %v2367_v46 = vadd.f32 %v2025_v9, %v796_v31  ;;  %v1498_v47 = vpop.f32.mrb[30].mxu1  ;;  %v1260_v27 = vmul.f32 %v2120_v21, %v2120_v21 }
 0x136   :  { %1146 = vst [vmem:[%s2500_s5 + $0x1f0] sm:$0xff] %v2361_v30  ;;  %v799_v48 = vpop.f32.mrb[31].mxu1 }
 0x137   :  { %v1314_v17 = vadd.f32 %v1313_v28, %v1251_v2  ;;  %v1179_v52 = vadd.f32 %v1178_v8, %v1051_v45  ;;  %1144 = vst [vmem:[%s2500_s5 + $0x1e0] sm:$0xff] %v2367_v46  ;;  %v1262_v8 = vmul.f32 %v2171_v34, %v2171_v34 }
 0x139   :  { %v1180_v41 = vadd.f32 %v1179_v52, %v2069_v33  ;;  %v1315_v18 = vadd.f32 %v1314_v17, %v1252_v40  ;;  %v2374_v33 = vadd.f32 %v1498_v47, %v2025_v9 }
 0x13b   :  { %v1316_v36 = vadd.f32 %v1315_v18, %v1253_v19  ;;  %v1181_v37 = vadd.f32 %v1180_v41, %v2083_v58  ;;  %v2384_v58 = vadd.f32 %v2025_v9, %v799_v48  ;;  %1147 = vst [vmem:[%s2500_s5 + $0x1f8] sm:$0xff] %v2374_v33 }
 0x13d   :  { %v1182_v55 = vadd.f32 %v1181_v37, %v2063_v49  ;;  %v1317_v57 = vadd.f32 %v1316_v36, %v1254_v42  ;;  %1145 = vst [vmem:[%s2500_s5 + $0x1e8] sm:$0xff] %v2384_v58 }
 0x13f   :  { %v1318_v45 = vadd.f32 %v1317_v57, %v1255_v51  ;;  %v1183_v49 = vadd.f32 %v1182_v55, %v2076_v16  ;;  %v1259_v16 = vmul.f32 %v2107_v14, %v2107_v14  ;;  %v1270_v55 = vmul.f32 %v2259_v3, %v2259_v3 }
 0x141   :  { %v1184_v9 = vadd.f32 %v1183_v49, %v2113_v5  ;;  %v1319_v62 = vadd.f32 %v1318_v45, %v1256_v59  ;;  %v1261_v5 = vmul.f32 %v2157_v60, %v2157_v60 }
 0x143   :  { %v1320_v23 = vadd.f32 %v1319_v62, %v1257_v50  ;;  %v1185_v35 = vadd.f32 %v1184_v9, %v2127_v22 }
 0x145   :  { %v1186_v54 = vadd.f32 %v1185_v35, %v2107_v14  ;;  %v1321_v6 = vadd.f32 %v1320_v23, %v1258_v39  ;;  %v1263_v14 = vmul.f32 %v2151_v53, %v2151_v53  ;;  %v1274_v23 = vmul.f32 %v2303_v43, %v2303_v43 }
 0x147   :  { %v1322_v4 = vadd.f32 %v1321_v6, %v1259_v16  ;;  %v1187_v7 = vadd.f32 %v1186_v54, %v2120_v21  ;;  %v1264_v21 = vmul.f32 %v2164_v61, %v2164_v61 }
 0x149   :  { %v1188_v11 = vadd.f32 %v1187_v7, %v2157_v60  ;;  %v1323_v20 = vadd.f32 %v1322_v4, %v1260_v27  ;;  %v1265_v60 = vmul.f32 %v2201_v44, %v2201_v44  ;;  %v1278_v7 = vmul.f32 %v2347_v15, %v2347_v15 }
 0x14b   :  { %v1324_v2 = vadd.f32 %v1323_v20, %v1261_v5  ;;  %v1189_v22 = vadd.f32 %v1188_v11, %v2171_v34 }
 0x14d   :  { %v1190_v28 = vadd.f32 %v1189_v22, %v2151_v53  ;;  %v1325_v40 = vadd.f32 %v1324_v2, %v1262_v8  ;;  %v1267_v53 = vmul.f32 %v2195_v63, %v2195_v63 }
 0x14f   :  { %v1326_v17 = vadd.f32 %v1325_v40, %v1263_v14  ;;  %v1191_v52 = vadd.f32 %v1190_v28, %v2164_v61  ;;  %v1268_v61 = vmul.f32 %v2208_v13, %v2208_v13  ;;  %v1282_v28 = vmul.f32 %v2384_v58, %v2384_v58 }
 0x151   :  { %v1192_v19 = vadd.f32 %v1191_v52, %v2201_v44  ;;  %v1327_v41 = vadd.f32 %v1326_v17, %v1264_v21  ;;  %v1269_v44 = vmul.f32 %v2245_v32, %v2245_v32 }
 0x153   :  { %v1328_v18 = vadd.f32 %v1327_v41, %v1265_v60  ;;  %v1193_v34 = vadd.f32 %v1192_v19, %v2215_v24 }
 0x155   :  { %v1194_v31 = vadd.f32 %v1193_v34, %v2195_v63  ;;  %v1329_v36 = vadd.f32 %v1328_v18, %v1266_v26  ;;  %v1271_v63 = vmul.f32 %v2239_v56, %v2239_v56 }
 0x157   :  { %v1330_v37 = vadd.f32 %v1329_v36, %v1267_v53  ;;  %v1195_v42 = vadd.f32 %v1194_v31, %v2208_v13  ;;  %v1272_v13 = vmul.f32 %v2252_v0, %v2252_v0 }
 0x159   :  { %v1196_v47 = vadd.f32 %v1195_v42, %v2245_v32  ;;  %v1331_v48 = vadd.f32 %v1330_v37, %v1268_v61  ;;  %v1273_v32 = vmul.f32 %v2289_v25, %v2289_v25 }
 0x15b   :  { %v1332_v51 = vadd.f32 %v1331_v48, %v1269_v44  ;;  %v1197_v24 = vadd.f32 %v1196_v47, %v2259_v3 }
 0x15d   :  { %v1198_v57 = vadd.f32 %v1197_v24, %v2239_v56  ;;  %v1333_v59 = vadd.f32 %v1332_v51, %v1270_v55  ;;  %v1275_v56 = vmul.f32 %v2283_v38, %v2283_v38 }
 0x15f   :  { %v1334_v45 = vadd.f32 %v1333_v59, %v1271_v63  ;;  %v1199_v49 = vadd.f32 %v1198_v57, %v2252_v0  ;;  %v1276_v0 = vmul.f32 %v2296_v29, %v2296_v29 }
 0x161   :  { %v1200_v50 = vadd.f32 %v1199_v49, %v2289_v25  ;;  %v1335_v9 = vadd.f32 %v1334_v45, %v1272_v13  ;;  %v1277_v25 = vmul.f32 %v2333_v10, %v2333_v10 }
 0x163   :  { %v1336_v62 = vadd.f32 %v1335_v9, %v1273_v32  ;;  %v1201_v3 = vadd.f32 %v1200_v50, %v2303_v43 }
 0x165   :  { %v1202_v35 = vadd.f32 %v1201_v3, %v2283_v38  ;;  %v1337_v39 = vadd.f32 %v1336_v62, %v1274_v23  ;;  %v1279_v38 = vmul.f32 %v2327_v1, %v2327_v1 }
 0x167   :  { %v1338_v16 = vadd.f32 %v1337_v39, %v1275_v56  ;;  %v1203_v54 = vadd.f32 %v1202_v35, %v2296_v29  ;;  %v1280_v29 = vmul.f32 %v2340_v12, %v2340_v12 }
 0x169   :  { %v1204_v6 = vadd.f32 %v1203_v54, %v2333_v10  ;;  %v1339_v27 = vadd.f32 %v1338_v16, %v1276_v0  ;;  %v1281_v10 = vmul.f32 %v2367_v46, %v2367_v46 }
 0x16b   :  { %v1340_v4 = vadd.f32 %v1339_v27, %v1277_v25  ;;  %v1205_v43 = vadd.f32 %v1204_v6, %v2347_v15 }
 0x16d   :  { %v1206_v5 = vadd.f32 %v1205_v43, %v2327_v1  ;;  %v1341_v11 = vadd.f32 %v1340_v4, %v1278_v7  ;;  %v1283_v1 = vmul.f32 %v2361_v30, %v2361_v30 }
 0x16f   :  { %v1342_v20 = vadd.f32 %v1341_v11, %v1279_v38  ;;  %v1207_v2 = vadd.f32 %v1206_v5, %v2340_v12  ;;  %v1284_v12 = vmul.f32 %v2374_v33, %v2374_v33 }
 0x171   :  { %v1208_v22 = vadd.f32 %v1207_v2, %v2367_v46  ;;  %v1343_v8 = vadd.f32 %v1342_v20, %v1280_v29 }
 0x173   :  { %v1344_v14 = vadd.f32 %v1343_v8, %v1281_v10  ;;  %v1209_v15 = vadd.f32 %v1208_v22, %v2384_v58 }
 0x175   :  { %v1210_v40 = vadd.f32 %v1209_v15, %v2361_v30  ;;  %v1345_v21 = vadd.f32 %v1344_v14, %v1282_v28  ;;  %v1148_v30 = vld [vmem:[%s2498_s6] sm:$0x1] }
 0x177   :  { %v1211_v17 = vadd.f32 %v1210_v40, %v2374_v33  ;;  %v1346_v52 = vadd.f32 %v1345_v21, %v1283_v1  ;;  %v1220_v33 = vld [vmem:[%s2499_s7] sm:$0x1] }
 0x179   :  { %v1212_v46 = vrot.slane %v1211_v17, 4  ;;  %v1347_v60 = vadd.f32 %v1346_v52, %v1284_v12 }
 0x17b   :  { %v1213_v19 = vadd.f32 %v1212_v46, %v1211_v17  ;;  %v1348_v41 = vrot.slane %v1347_v60, 4 }
 0x17d   :  { %v1214_v18 = vrot.slane %v1213_v19, 2  ;;  %v1349_v34 = vadd.f32 %v1348_v41, %v1347_v60 }
 0x17f   :  { %v1215_v26 = vadd.f32 %v1214_v18, %v1213_v19  ;;  %v1350_v58 = vrot.slane %v1349_v34, 2 }
 0x181   :  { %v1216_v53 = vrot.slane %v1215_v26, 1  ;;  %v1351_v31 = vadd.f32 %v1350_v58, %v1349_v34 }
 0x183   :  { %v1217_v36 = vadd.f32 %v1216_v53, %v1215_v26  ;;  %v1352_v61 = vrot.slane %v1351_v31, 1 }
 0x185   :  { %v1218_v37 = vadd.f32 %v1217_v36, %v1148_v30  ;;  %v1353_v42 = vadd.f32 %v1352_v61, %v1351_v31 }
 0x187   :  { %1219 = vst [vmem:[%s2498_s6] sm:$0x1] %v1218_v37  ;;  %v1354_v44 = vadd.f32 %v1353_v42, %v1220_v33 }
 0x189   :  { %1355 = vst [vmem:[%s2499_s7] sm:$0x1] %v1354_v44 }

// kernel: bottleneck_forward.4
= control target key start
LH: loop header
LB: loop body
LE: loop exit
PB: predicated region body
PF: predicated region fallthrough
CT: control target
= control target key end

     0   :  { %s2398_s1 = inlined_call_operand.vmem [shape: bf16[128,128], index: 1, kind: input, shape index: {}]   ;;  %s2399_s0 = inlined_call_operand.vmem [shape: f32[512,128], index: 0, kind: input, shape index: {}]   ;;  %s2400_s3 = inlined_call_operand.vmem [shape: f32[1,128], index: 3, kind: input, shape index: {}]   ;;  %s2401_s4 = inlined_call_operand.vmem [shape: f32[1,128], index: 4, kind: input, shape index: {}]   ;;  %s2402_s2 = inlined_call_operand.vmem [shape: f32[1,128], index: 2, kind: input, shape index: {}]   ;;  %s2403_s6 = inlined_call_operand.vmem [shape: f32[1,128], index: 6, kind: output, shape index: {1}]   ;;  %s2404_s7 = inlined_call_operand.vmem [shape: f32[1,128], index: 7, kind: output, shape index: {2}]   ;;  %s2405_s5 = inlined_call_operand.vmem [shape: f32[512,128], index: 5, kind: output, shape index: {0}]  }
   0x1   :  { %v1452_v0 = vld [vmem:[%s2398_s1] sm:$0xff]   ;;  %v1453_v1 = vld [vmem:[%s2398_s1 + $0x8] sm:$0xff]   ;;  %v1454_v2 = vld [vmem:[%s2398_s1 + $0x10] sm:$0xff]  }
   0x2   :  { %1355 = vmatprep.subr.bf16.mxu0 %v1452_v0  ;;  %1435 = vmatprep.subr.bf16.mxu1 %v1452_v0  ;;  %v1455_v3 = vld [vmem:[%s2398_s1 + $0x18] sm:$0xff]   ;;  %v92_v4 = vld [vmem:[%s2399_s0] sm:$0xff]  ;;  %v93_v5 = vld [vmem:[%s2399_s0 + $0x8] sm:$0xff] }
   0x3   :  { %1356 = vmatpush3.bf16.msra.mxu0 %v1452_v0  ;;  %1443 = vmatpush3.bf16.msra.mxu1 %v1452_v0  ;;  %v1522_v6 = vld [vmem:[%s2400_s3] ss:$0 sm:$0xff]  ;;  %v94_v14 = vld [vmem:[%s2399_s0 + $0x10] sm:$0xff]  ;;  %v95_v15 = vld [vmem:[%s2399_s0 + $0x18] sm:$0xff] }
   0x4   :  { %1357 = vmatprep.subr.bf16.mxu0 %v1453_v1  ;;  %1436 = vmatprep.subr.bf16.mxu1 %v1453_v1  ;;  %v163_v7 = vmul.f32 %v1522_v6, %v92_v4  ;;  %v164_v8 = vmul.f32 %v1522_v6, %v93_v5  ;;  %v1529_v9 = vld [vmem:[%s2401_s4] ss:$0 sm:$0xff]  ;;  %v1457_v16 = vld [vmem:[%s2398_s1 + $0x28] sm:$0xff]   ;;  %v165_v17 = vmul.f32 %v1522_v6, %v94_v14  ;;  %v98_v21 = vld [vmem:[%s2399_s0 + $0x30] sm:$0xff] }
   0x5   :  { %v1456_v12 = vld [vmem:[%s2398_s1 + $0x20] sm:$0xff]   ;;  %v166_v18 = vmul.f32 %v1522_v6, %v95_v15  ;;  %v97_v20 = vld [vmem:[%s2399_s0 + $0x28] sm:$0xff]  ;;  %v99_v22 = vld [vmem:[%s2399_s0 + $0x38] sm:$0xff]  ;;  %v169_v28 = vmul.f32 %v1522_v6, %v98_v21 }
   0x6   :  { %v234_v10 = vadd.f32 %v1529_v9, %v163_v7  ;;  %v235_v11 = vadd.f32 %v1529_v9, %v164_v8  ;;  %v96_v19 = vld [vmem:[%s2399_s0 + $0x20] sm:$0xff]  ;;  %v1458_v23 = vld [vmem:[%s2398_s1 + $0x30] sm:$0xff]   ;;  %v168_v25 = vmul.f32 %v1522_v6, %v97_v20  ;;  %v1565_v26 = vadd.f32 %v1529_v9, %v165_v17  ;;  %v119_v32 = vld [vmem:[%s2399_s0 + $0xd8] sm:$0xff] }
   0x7   :  { %1358 = vmatpush3.bf16.msra.mxu0 %v1453_v1  ;;  %1444 = vmatpush3.bf16.msra.mxu1 %v1453_v1  ;;  %v167_v24 = vmul.f32 %v1522_v6, %v96_v19  ;;  %v1568_v27 = vadd.f32 %v1529_v9, %v166_v18  ;;  %v170_v29 = vmul.f32 %v1522_v6, %v99_v22  ;;  %v100_v30 = vld [vmem:[%s2399_s0 + $0x40] sm:$0xff]  ;;  %v118_v31 = vld [vmem:[%s2399_s0 + $0xd0] sm:$0xff]  ;;  %v121_v34 = vld [vmem:[%s2399_s0 + $0xe8] sm:$0xff] }
   0x8   :  { %1359 = vmatprep.subr.bf16.mxu0 %v1454_v2  ;;  %1437 = vmatprep.subr.bf16.mxu1 %v1454_v2  ;;  %v362_v13 = vpack.c.bf16 %v235_v11, %v234_v10  ;;  %v120_v33 = vld [vmem:[%s2399_s0 + $0xe0] sm:$0xff]  ;;  %v1459_v35 = vld [vmem:[%s2398_s1 + $0x38] sm:$0xff]   ;;  %v1594_v37 = vadd.f32 %v1529_v9, %v168_v25  ;;  %v101_v38 = vld [vmem:[%s2399_s0 + $0x48] sm:$0xff]  ;;  %v171_v41 = vmul.f32 %v1522_v6, %v100_v30 }
   0x9   :  { %v1591_v36 = vadd.f32 %v1529_v9, %v167_v24  ;;  %v122_v39 = vld [vmem:[%s2399_s0 + $0xf0] sm:$0xff]  ;;  %v363_v40 = vpack.c.bf16 %v1568_v27, %v1565_v26  ;;  %v189_v42 = vmul.f32 %v1522_v6, %v118_v31  ;;  %v190_v43 = vmul.f32 %v1522_v6, %v119_v32  ;;  %v123_v44 = vld [vmem:[%s2399_s0 + $0xf8] sm:$0xff]  ;;  %v124_v49 = vld [vmem:[%s2399_s0 + $0x100] sm:$0xff] }
   0xa   :  { %1371 = vmatprep.mubr.bf16.mxu0 %v362_v13  ;;  %v1611_v45 = vadd.f32 %v1529_v9, %v169_v28  ;;  %v1614_v46 = vadd.f32 %v1529_v9, %v170_v29  ;;  %v191_v47 = vmul.f32 %v1522_v6, %v120_v33  ;;  %v192_v48 = vmul.f32 %v1522_v6, %v121_v34  ;;  %v125_v50 = vld [vmem:[%s2399_s0 + $0x108] sm:$0xff]  ;;  %v126_v55 = vld [vmem:[%s2399_s0 + $0x110] sm:$0xff]  ;;  %v127_v56 = vld [vmem:[%s2399_s0 + $0x118] sm:$0xff] }
   0xb   :  { %1360 = vmatpush3.bf16.msra.mxu0 %v1454_v2  ;;  %1445 = vmatpush3.bf16.msra.mxu1 %v1454_v2  ;;  %v172_v51 = vmul.f32 %v1522_v6, %v101_v38  ;;  %v1626_v52 = vadd.f32 %v1529_v9, %v189_v42  ;;  %v1629_v53 = vadd.f32 %v1529_v9, %v190_v43  ;;  %v128_v61 = vld [vmem:[%s2399_s0 + $0x120] sm:$0xff]  ;;  %v129_v62 = vld [vmem:[%s2399_s0 + $0x128] sm:$0xff]  ;;  %v131_v10 = vld [vmem:[%s2399_s0 + $0x138] sm:$0xff] }
   0xc   :  { %1361 = vmatprep.subr.bf16.mxu0 %v1455_v3  ;;  %1438 = vmatprep.subr.bf16.mxu1 %v1455_v3  ;;  %v193_v54 = vmul.f32 %v1522_v6, %v122_v39  ;;  %v364_v57 = vpack.c.bf16 %v1594_v37, %v1591_v36  ;;  %v1641_v58 = vadd.f32 %v1529_v9, %v191_v47  ;;  %v132_v15 = vld [vmem:[%s2399_s0 + $0x140] sm:$0xff]  ;;  %v102_v17 = vld [vmem:[%s2399_s0 + $0x50] sm:$0xff]  ;;  %v103_v22 = vld [vmem:[%s2399_s0 + $0x58] sm:$0xff] }
   0xd   :  { %v1644_v59 = vadd.f32 %v1529_v9, %v192_v48  ;;  %v194_v60 = vmul.f32 %v1522_v6, %v123_v44  ;;  %v375_v63 = vpack.c.bf16 %v1629_v53, %v1626_v52  ;;  %v195_v1 = vmul.f32 %v1522_v6, %v124_v49  ;;  %v104_v33 = vld [vmem:[%s2399_s0 + $0x60] sm:$0xff]  ;;  %v105_v34 = vld [vmem:[%s2399_s0 + $0x68] sm:$0xff]  ;;  %v135_v42 = vld [vmem:[%s2399_s0 + $0x158] sm:$0xff] }
   0xe   :  { %v1656_v0 = vadd.f32 %v1529_v9, %v193_v54  ;;  %v196_v2 = vmul.f32 %v1522_v6, %v125_v50  ;;  %v197_v7 = vmul.f32 %v1522_v6, %v126_v55  ;;  %v198_v8 = vmul.f32 %v1522_v6, %v127_v56  ;;  %v136_v48 = vld [vmem:[%s2399_s0 + $0x160] sm:$0xff]  ;;  %v137_v49 = vld [vmem:[%s2399_s0 + $0x168] sm:$0xff] }
   0xf   :  { %1362 = vmatpush3.bf16.msra.mxu0 %v1455_v3  ;;  %1446 = vmatpush3.bf16.msra.mxu1 %v1455_v3  ;;  %v130_v3 = vld [vmem:[%s2399_s0 + $0x130] sm:$0xff]  ;;  %v376_v4 = vpack.c.bf16 %v1644_v59, %v1641_v58  ;;  %v1666_v5 = vadd.f32 %v1529_v9, %v194_v60  ;;  %v266_v11 = vadd.f32 %v1529_v9, %v195_v1  ;;  %v108_v55 = vld [vmem:[%s2399_s0 + $0x80] sm:$0xff]  ;;  %v1460_v52 = vmov 0.0  }
  0x10   :  { %1363 = vmatprep.subr.bf16.mxu0 %v1456_v12  ;;  %1439 = vmatprep.subr.bf16.mxu1 %v1456_v12  ;;  %v199_v13 = vmul.f32 %v1522_v6, %v128_v61  ;;  %v200_v14 = vmul.f32 %v1522_v6, %v129_v62  ;;  %v268_v19 = vadd.f32 %v1529_v9, %v197_v7  ;;  %v109_v61 = vld [vmem:[%s2399_s0 + $0x88] sm:$0xff] }
  0x11   :  { %v377_v18 = vpack.c.bf16 %v1666_v5, %v1656_v0  ;;  %v269_v20 = vadd.f32 %v1529_v9, %v198_v8  ;;  %v201_v21 = vmul.f32 %v1522_v6, %v130_v3  ;;  %v202_v26 = vmul.f32 %v1522_v6, %v131_v10  ;;  %v150_v8 = vld [vmem:[%s2399_s0 + $0x1d0] sm:$0xff]  ;;  %v151_v10 = vld [vmem:[%s2399_s0 + $0x1d8] sm:$0xff]  ;;  %880 = vst [vmem:[%s2403_s6] sm:$0x1] %v1460_v52 }
  0x12   :  { %v270_v24 = vadd.f32 %v1529_v9, %v199_v13  ;;  %v271_v25 = vadd.f32 %v1529_v9, %v200_v14  ;;  %v242_v27 = vadd.f32 %v1529_v9, %v171_v41  ;;  %v203_v29 = vmul.f32 %v1522_v6, %v132_v15  ;;  %v134_v41 = vld [vmem:[%s2399_s0 + $0x150] sm:$0xff]  ;;  %v139_v15 = vld [vmem:[%s2399_s0 + $0x178] sm:$0xff]  ;;  %881 = vst [vmem:[%s2404_s7] sm:$0x1] %v1460_v52 }
  0x13   :  { %1364 = vmatpush3.bf16.msra.mxu0 %v1456_v12  ;;  %1447 = vmatpush3.bf16.msra.mxu1 %v1456_v12  ;;  %v267_v12 = vadd.f32 %v1529_v9, %v196_v2  ;;  %v379_v28 = vpack.c.bf16 %v269_v20, %v268_v19  ;;  %v243_v31 = vadd.f32 %v1529_v9, %v172_v51  ;;  %v138_v14 = vld [vmem:[%s2399_s0 + $0x170] sm:$0xff] }
  0x14   :  { %1365 = vmatprep.subr.bf16.mxu0 %v1457_v16  ;;  %1440 = vmatprep.subr.bf16.mxu1 %v1457_v16  ;;  %v173_v32 = vmul.f32 %v1522_v6, %v102_v17  ;;  %v174_v36 = vmul.f32 %v1522_v6, %v103_v22  ;;  %v272_v37 = vadd.f32 %v1529_v9, %v201_v21  ;;  %v140_v22 = vld [vmem:[%s2399_s0 + $0x180] sm:$0xff] }
  0x15   :  { %v273_v38 = vadd.f32 %v1529_v9, %v202_v26  ;;  %v274_v39 = vadd.f32 %v1529_v9, %v203_v29  ;;  %v365_v43 = vpack.c.bf16 %v1614_v46, %v1611_v45  ;;  %v175_v44 = vmul.f32 %v1522_v6, %v104_v33  ;;  %v106_v45 = vld [vmem:[%s2399_s0 + $0x70] sm:$0xff]  ;;  %v107_v46 = vld [vmem:[%s2399_s0 + $0x78] sm:$0xff]  ;;  %v141_v33 = vld [vmem:[%s2399_s0 + $0x188] sm:$0xff] }
  0x16   :  { %v176_v47 = vmul.f32 %v1522_v6, %v105_v34  ;;  %v366_v50 = vpack.c.bf16 %v243_v31, %v242_v27  ;;  %v244_v51 = vadd.f32 %v1529_v9, %v173_v32  ;;  %v245_v54 = vadd.f32 %v1529_v9, %v174_v36  ;;  %v155_v29 = vld [vmem:[%s2399_s0 + $0x1f8] sm:$0xff] }
  0x17   :  { %1366 = vmatpush3.bf16.msra.mxu0 %v1457_v16  ;;  %1448 = vmatpush3.bf16.msra.mxu1 %v1457_v16  ;;  %v133_v16 = vld [vmem:[%s2399_s0 + $0x148] sm:$0xff]  ;;  %v381_v56 = vpack.c.bf16 %v273_v38, %v272_v37  ;;  %v206_v60 = vmul.f32 %v1522_v6, %v135_v42  ;;  %v207_v1 = vmul.f32 %v1522_v6, %v136_v48 }
  0x18   :  { %1367 = vmatprep.subr.bf16.mxu0 %v1458_v23  ;;  %1441 = vmatprep.subr.bf16.mxu1 %v1458_v23  ;;  %v204_v30 = vmul.f32 %v1522_v6, %v133_v16  ;;  %v208_v2 = vmul.f32 %v1522_v6, %v137_v49  ;;  %v246_v3 = vadd.f32 %v1529_v9, %v175_v44  ;;  %v152_v16 = vld [vmem:[%s2399_s0 + $0x1e0] sm:$0xff] }
  0x19   :  { %v247_v7 = vadd.f32 %v1529_v9, %v176_v47  ;;  %v179_v13 = vmul.f32 %v1522_v6, %v108_v55  ;;  %v367_v17 = vpack.c.bf16 %v245_v54, %v244_v51  ;;  %v180_v19 = vmul.f32 %v1522_v6, %v109_v61  ;;  %v110_v55 = vld [vmem:[%s2399_s0 + $0x90] sm:$0xff]  ;;  %v113_v61 = vld [vmem:[%s2399_s0 + $0xa8] sm:$0xff] }
  0x1a   :  { %v277_v21 = vadd.f32 %v1529_v9, %v206_v60  ;;  %v221_v26 = vmul.f32 %v1522_v6, %v150_v8  ;;  %v222_v27 = vmul.f32 %v1522_v6, %v151_v10  ;;  %v209_v31 = vmul.f32 %v1522_v6, %v138_v14  ;;  %v112_v60 = vld [vmem:[%s2399_s0 + $0xa0] sm:$0xff]  ;;  %v142_v8 = vld [vmem:[%s2399_s0 + $0x190] sm:$0xff]  ;;  %v143_v10 = vld [vmem:[%s2399_s0 + $0x198] sm:$0xff] }
  0x1b   :  { %1368 = vmatpush3.bf16.msra.mxu0 %v1458_v23  ;;  %1449 = vmatpush3.bf16.msra.mxu1 %v1458_v23  ;;  %v378_v23 = vpack.c.bf16 %v267_v12, %v266_v11  ;;  %v177_v11 = vmul.f32 %v1522_v6, %v106_v45  ;;  %v178_v12 = vmul.f32 %v1522_v6, %v107_v46  ;;  %v144_v14 = vld [vmem:[%s2399_s0 + $0x1a0] sm:$0xff] }
  0x1c   :  { %1369 = vmatprep.subr.bf16.mxu0 %v1459_v35  ;;  %1442 = vmatprep.subr.bf16.mxu1 %v1459_v35  ;;  %v210_v32 = vmul.f32 %v1522_v6, %v139_v15  ;;  %v223_v34 = vmul.f32 %v1522_v6, %v152_v16  ;;  %v1794_v36 = vadd.f32 %v1529_v9, %v221_v26  ;;  %v145_v15 = vld [vmem:[%s2399_s0 + $0x1a8] sm:$0xff] }
  0x1d   :  { %1403 = vmatprep.mubr.bf16.mxu1 %v378_v23  ;;  %v153_v23 = vld [vmem:[%s2399_s0 + $0x1e8] sm:$0xff]  ;;  %v1797_v37 = vadd.f32 %v1529_v9, %v222_v27  ;;  %v226_v42 = vmul.f32 %v1522_v6, %v155_v29  ;;  %v212_v44 = vmul.f32 %v1522_v6, %v141_v33  ;;  %v248_v49 = vadd.f32 %v1529_v9, %v177_v11 }
  0x1e   :  { %v224_v38 = vmul.f32 %v1522_v6, %v153_v23  ;;  %v250_v45 = vadd.f32 %v1529_v9, %v179_v13  ;;  %v251_v46 = vadd.f32 %v1529_v9, %v180_v19  ;;  %v184_v19 = vmul.f32 %v1522_v6, %v113_v61  ;;  %v117_v33 = vld [vmem:[%s2399_s0 + $0xc8] sm:$0xff] }
  0x1f   :  { %1370 = vmatpush3.bf16.msra.mxu0 %v1459_v35  ;;  %1450 = vmatpush3.bf16.msra.mxu1 %v1459_v35  ;;  %v380_v35 = vpack.c.bf16 %v271_v25, %v270_v24  ;;  %v278_v24 = vadd.f32 %v1529_v9, %v207_v1  ;;  %v279_v25 = vadd.f32 %v1529_v9, %v208_v2 }
  0x20   :  { %v391_v47 = vpack.c.bf16 %v1797_v37, %v1794_v36  ;;  %v1809_v48 = vadd.f32 %v1529_v9, %v224_v38  ;;  %v1817_v54 = vadd.f32 %v1529_v9, %v226_v42  ;;  %v281_v1 = vadd.f32 %v1529_v9, %v210_v32  ;;  %v116_v32 = vld [vmem:[%s2399_s0 + $0xc0] sm:$0xff]  ;;  %v147_v42 = vld [vmem:[%s2399_s0 + $0x1b8] sm:$0xff] }
  0x21   :  { %v370_v16 = vpack.c.bf16 %v251_v46, %v250_v45  ;;  %v255_v29 = vadd.f32 %v1529_v9, %v184_v19  ;;  %v149_v45 = vld [vmem:[%s2399_s0 + $0x1c8] sm:$0xff] }
  0x22   :  { %1372 = vmatmul.mubr.bf16.vlgmr.msra.gmra.mrb[0].mxu0 %v363_v40  ;;  %1404 = vmatmul.mubr.bf16.vlgmr.msra.gmra.mrb[0].mxu1 %v379_v28  ;;  %v275_v40 = vadd.f32 %v1529_v9, %v204_v30  ;;  %v154_v28 = vld [vmem:[%s2399_s0 + $0x1f0] sm:$0xff]  ;;  %v368_v30 = vpack.c.bf16 %v247_v7, %v246_v3  ;;  %v283_v7 = vadd.f32 %v1529_v9, %v212_v44 }
  0x23   :  { %1375 = vmatprep.mubr.bf16.mxu0 %v364_v57  ;;  %1407 = vmatprep.mubr.bf16.mxu1 %v380_v35  ;;  %v205_v57 = vmul.f32 %v1522_v6, %v134_v41  ;;  %v211_v35 = vmul.f32 %v1522_v6, %v140_v22  ;;  %v225_v41 = vmul.f32 %v1522_v6, %v154_v28 }
  0x24   :  { %v382_v62 = vpack.c.bf16 %v275_v40, %v274_v39  ;;  %v1801_v40 = vadd.f32 %v1529_v9, %v223_v34  ;;  %v214_v22 = vmul.f32 %v1522_v6, %v143_v10 }
  0x25   :  { %v276_v20 = vadd.f32 %v1529_v9, %v205_v57  ;;  %v1814_v51 = vadd.f32 %v1529_v9, %v225_v41  ;;  %v282_v3 = vadd.f32 %v1529_v9, %v211_v35  ;;  %v146_v41 = vld [vmem:[%s2399_s0 + $0x1b0] sm:$0xff] }
  0x26   :  { %v392_v57 = vpack.c.bf16 %v1809_v48, %v1801_v40  ;;  %v285_v35 = vadd.f32 %v1529_v9, %v214_v22  ;;  %v217_v61 = vmul.f32 %v1522_v6, %v146_v41 }
  0x27   :  { %v383_v39 = vpack.c.bf16 %v277_v21, %v276_v20  ;;  %v393_v2 = vpack.c.bf16 %v1817_v54, %v1814_v51  ;;  %v213_v21 = vmul.f32 %v1522_v6, %v142_v8  ;;  %v386_v23 = vpack.c.bf16 %v283_v7, %v282_v3 }
  0x28   :  { %v220_v7 = vmul.f32 %v1522_v6, %v149_v45 }
  0x29   :  { %v284_v34 = vadd.f32 %v1529_v9, %v213_v21 }
  0x2a   :  { %1376 = vmatmul.mubr.bf16.gmra.mrb[4].mxu0 %v365_v43  ;;  %1408 = vmatmul.mubr.bf16.gmra.mrb[4].mxu1 %v381_v56  ;;  %v384_v43 = vpack.c.bf16 %v279_v25, %v278_v24  ;;  %v111_v56 = vld [vmem:[%s2399_s0 + $0x98] sm:$0xff]  ;;  %v215_v24 = vmul.f32 %v1522_v6, %v144_v14  ;;  %v216_v25 = vmul.f32 %v1522_v6, %v145_v15 }
  0x2b   :  { %1379 = vmatprep.mubr.bf16.mxu0 %v366_v50  ;;  %1411 = vmatprep.mubr.bf16.mxu1 %v382_v62  ;;  %v249_v50 = vadd.f32 %v1529_v9, %v178_v12  ;;  %v280_v62 = vadd.f32 %v1529_v9, %v209_v31  ;;  %v181_v12 = vmul.f32 %v1522_v6, %v110_v55  ;;  %v115_v31 = vld [vmem:[%s2399_s0 + $0xb8] sm:$0xff] }
  0x2c   :  { %v182_v13 = vmul.f32 %v1522_v6, %v111_v56  ;;  %v286_v38 = vadd.f32 %v1529_v9, %v215_v24  ;;  %v187_v55 = vmul.f32 %v1522_v6, %v116_v32  ;;  %v188_v56 = vmul.f32 %v1522_v6, %v117_v33 }
  0x2d   :  { %v369_v11 = vpack.c.bf16 %v249_v50, %v248_v49  ;;  %v385_v20 = vpack.c.bf16 %v281_v1, %v280_v62  ;;  %v252_v26 = vadd.f32 %v1529_v9, %v181_v12  ;;  %v186_v49 = vmul.f32 %v1522_v6, %v115_v31  ;;  %v148_v50 = vld [vmem:[%s2399_s0 + $0x1c0] sm:$0xff] }
  0x2e   :  { %v253_v27 = vadd.f32 %v1529_v9, %v182_v13  ;;  %v218_v62 = vmul.f32 %v1522_v6, %v147_v42  ;;  %v219_v3 = vmul.f32 %v1522_v6, %v148_v50  ;;  %v259_v12 = vadd.f32 %v1529_v9, %v188_v56 }
  0x2f   :  { %v257_v10 = vadd.f32 %v1529_v9, %v186_v49  ;;  %v288_v13 = vadd.f32 %v1529_v9, %v217_v61 }
  0x30   :  { %v289_v14 = vadd.f32 %v1529_v9, %v218_v62  ;;  %v290_v15 = vadd.f32 %v1529_v9, %v219_v3 }
  0x32   :  { %1380 = vmatmul.mubr.bf16.gmra.mrb[8].mxu0 %v367_v17  ;;  %1412 = vmatmul.mubr.bf16.gmra.mrb[8].mxu1 %v383_v39  ;;  %v183_v17 = vmul.f32 %v1522_v6, %v112_v60  ;;  %v287_v39 = vadd.f32 %v1529_v9, %v216_v25  ;;  %v387_v60 = vpack.c.bf16 %v285_v35, %v284_v34 }
  0x33   :  { %1383 = vmatprep.mubr.bf16.mxu0 %v368_v30  ;;  %1415 = vmatprep.mubr.bf16.mxu1 %v384_v43  ;;  %v114_v30 = vld [vmem:[%s2399_s0 + $0xb0] sm:$0xff]  ;;  %v371_v43 = vpack.c.bf16 %v253_v27, %v252_v26  ;;  %v389_v19 = vpack.c.bf16 %v289_v14, %v288_v13 }
  0x34   :  { %v254_v28 = vadd.f32 %v1529_v9, %v183_v17  ;;  %v185_v44 = vmul.f32 %v1522_v6, %v114_v30  ;;  %v388_v1 = vpack.c.bf16 %v287_v39, %v286_v38  ;;  %v291_v6 = vadd.f32 %v1529_v9, %v220_v7 }
  0x36   :  { %v372_v46 = vpack.c.bf16 %v255_v29, %v254_v28  ;;  %v256_v8 = vadd.f32 %v1529_v9, %v185_v44 }
  0x3a   :  { %1384 = vmatmul.mubr.bf16.gmra.mrb[12].mxu0 %v369_v11  ;;  %1416 = vmatmul.mubr.bf16.gmra.mrb[12].mxu1 %v385_v20  ;;  %v258_v11 = vadd.f32 %v1529_v9, %v187_v55  ;;  %v390_v20 = vpack.c.bf16 %v291_v6, %v290_v15  ;;  %v1930_v9 = vld [vmem:[%s2402_s2] ss:$0 sm:$0xff] }
  0x3b   :  { %1387 = vmatprep.mubr.bf16.mxu0 %v370_v16  ;;  %1419 = vmatprep.mubr.bf16.mxu1 %v386_v23  ;;  %v373_v16 = vpack.c.bf16 %v257_v10, %v256_v8 }
  0x3c   :  { %v374_v17 = vpack.c.bf16 %v259_v12, %v258_v11 }
  0x42   :  { %1388 = vmatmul.mubr.bf16.gmra.mrb[16].mxu0 %v371_v43  ;;  %1420 = vmatmul.mubr.bf16.gmra.mrb[16].mxu1 %v387_v60 }
  0x43   :  { %1391 = vmatprep.mubr.bf16.mxu0 %v372_v46  ;;  %1423 = vmatprep.mubr.bf16.mxu1 %v388_v1 }
  0x4a   :  { %1392 = vmatmul.mubr.bf16.gmra.mrb[20].mxu0 %v373_v16  ;;  %1424 = vmatmul.mubr.bf16.gmra.mrb[20].mxu1 %v389_v19 }
  0x4b   :  { %1395 = vmatprep.mubr.bf16.mxu0 %v374_v17  ;;  %1427 = vmatprep.mubr.bf16.mxu1 %v390_v20 }
  0x52   :  { %1396 = vmatmul.mubr.bf16.gmra.mrb[24].mxu0 %v375_v63  ;;  %1428 = vmatmul.mubr.bf16.gmra.mrb[24].mxu1 %v391_v47 }
  0x53   :  { %1399 = vmatprep.mubr.bf16.mxu0 %v376_v4  ;;  %1431 = vmatprep.mubr.bf16.mxu1 %v392_v57 }
  0x5a   :  { %1400 = vmatmul.mubr.bf16.gmra.mrb[28].mxu0 %v377_v18  ;;  %1432 = vmatmul.mubr.bf16.gmra.mrb[28].mxu1 %v393_v2 }
  0xf5   :  { %v1373_v53 = vpop.f32.mrb[0].mxu0  ;;  %v1405_v4 = vpop.f32.mrb[0].mxu1 }
  0xf6   :  { %v958_v58 = vadd.f32 %v1373_v53, %v1930_v9  ;;  %v492_v59 = vpop.f32.mrb[1].mxu0  ;;  %v1945_v36 = vadd.f32 %v1405_v4, %v1930_v9  ;;  %v620_v37 = vpop.f32.mrb[1].mxu1 }
  0xf7   :  { %v956_v63 = vadd.f32 %v1930_v9, %v492_v59  ;;  %v1374_v0 = vpop.f32.mrb[2].mxu0  ;;  %v1952_v47 = vadd.f32 %v1930_v9, %v620_v37  ;;  %v1406_v48 = vpop.f32.mrb[2].mxu1 }
  0xf8   :  { %1022 = vst [vmem:[%s2405_s5 + $0x10] sm:$0xff] %v958_v58  ;;  %v959_v5 = vadd.f32 %v1374_v0, %v1930_v9  ;;  %v495_v18 = vpop.f32.mrb[3].mxu0  ;;  %1054 = vst [vmem:[%s2405_s5 + $0x110] sm:$0xff] %v1945_v36  ;;  %v1962_v51 = vadd.f32 %v1406_v48, %v1930_v9  ;;  %v623_v54 = vpop.f32.mrb[3].mxu1  ;;  %v1159_v23 = vmul.f32 %v958_v58, %v958_v58 }
  0xf9   :  { %1020 = vst [vmem:[%s2405_s5] sm:$0xff] %v956_v63  ;;  %v957_v40 = vadd.f32 %v1930_v9, %v495_v18  ;;  %v1157_v57 = vmul.f32 %v956_v63, %v956_v63  ;;  %1052 = vst [vmem:[%s2405_s5 + $0x100] sm:$0xff] %v1952_v47  ;;  %v1972_v22 = vadd.f32 %v1930_v9, %v623_v54 }
  0xfa   :  { %1023 = vst [vmem:[%s2405_s5 + $0x18] sm:$0xff] %v959_v5  ;;  %1055 = vst [vmem:[%s2405_s5 + $0x118] sm:$0xff] %v1962_v51  ;;  %v1160_v29 = vmul.f32 %v959_v5, %v959_v5 }
  0xfb   :  { %1021 = vst [vmem:[%s2405_s5 + $0x8] sm:$0xff] %v957_v40  ;;  %v1085_v2 = vadd.f32 %v957_v40, %v956_v63  ;;  %v1158_v21 = vmul.f32 %v957_v40, %v957_v40  ;;  %1053 = vst [vmem:[%s2405_s5 + $0x108] sm:$0xff] %v1972_v22 }
  0xfd   :  { %v1086_v24 = vadd.f32 %v1085_v2, %v958_v58  ;;  %v1221_v25 = vadd.f32 %v1158_v21, %v1157_v57  ;;  %v1377_v26 = vpop.f32.mrb[4].mxu0  ;;  %v1409_v34 = vpop.f32.mrb[4].mxu1 }
  0xfe   :  { %v962_v27 = vadd.f32 %v1377_v26, %v1930_v9  ;;  %v508_v28 = vpop.f32.mrb[5].mxu0  ;;  %v1989_v39 = vadd.f32 %v1409_v34, %v1930_v9  ;;  %v636_v41 = vpop.f32.mrb[5].mxu1 }
  0xff   :  { %v1222_v30 = vadd.f32 %v1221_v25, %v1159_v23  ;;  %v960_v31 = vadd.f32 %v1930_v9, %v508_v28  ;;  %v1087_v32 = vadd.f32 %v1086_v24, %v959_v5  ;;  %v1378_v33 = vpop.f32.mrb[6].mxu0  ;;  %v1410_v50 = vpop.f32.mrb[6].mxu1  ;;  %v2003_v45 = vadd.f32 %v1930_v9, %v636_v41 }
 0x100   :  { %1026 = vst [vmem:[%s2405_s5 + $0x30] sm:$0xff] %v962_v27  ;;  %v963_v35 = vadd.f32 %v1378_v33, %v1930_v9  ;;  %v511_v38 = vpop.f32.mrb[7].mxu0  ;;  %1058 = vst [vmem:[%s2405_s5 + $0x130] sm:$0xff] %v1989_v39  ;;  %v2006_v46 = vadd.f32 %v1410_v50, %v1930_v9  ;;  %v639_v55 = vpop.f32.mrb[7].mxu1  ;;  %v1163_v1 = vmul.f32 %v962_v27, %v962_v27 }
 0x101   :  { %1024 = vst [vmem:[%s2405_s5 + $0x20] sm:$0xff] %v960_v31  ;;  %v1088_v42 = vadd.f32 %v1087_v32, %v960_v31  ;;  %v1161_v43 = vmul.f32 %v960_v31, %v960_v31  ;;  %v1223_v44 = vadd.f32 %v1222_v30, %v1160_v29  ;;  %v961_v49 = vadd.f32 %v1930_v9, %v511_v38 }
 0x102   :  { %1027 = vst [vmem:[%s2405_s5 + $0x38] sm:$0xff] %v963_v35  ;;  %v2012_v62 = vadd.f32 %v1930_v9, %v639_v55  ;;  %1056 = vst [vmem:[%s2405_s5 + $0x120] sm:$0xff] %v2003_v45  ;;  %v1164_v12 = vmul.f32 %v963_v35, %v963_v35 }
 0x103   :  { %v1224_v56 = vadd.f32 %v1223_v44, %v1161_v43  ;;  %1025 = vst [vmem:[%s2405_s5 + $0x28] sm:$0xff] %v961_v49  ;;  %v1089_v60 = vadd.f32 %v1088_v42, %v961_v49  ;;  %v1162_v61 = vmul.f32 %v961_v49, %v961_v49  ;;  %1059 = vst [vmem:[%s2405_s5 + $0x138] sm:$0xff] %v2006_v46 }
 0x104   :  { %1057 = vst [vmem:[%s2405_s5 + $0x128] sm:$0xff] %v2012_v62 }
 0x105   :  { %v1090_v3 = vadd.f32 %v1089_v60, %v962_v27  ;;  %v1225_v7 = vadd.f32 %v1224_v56, %v1162_v61  ;;  %v1381_v8 = vpop.f32.mrb[8].mxu0  ;;  %v1413_v16 = vpop.f32.mrb[8].mxu1 }
 0x106   :  { %v966_v10 = vadd.f32 %v1381_v8, %v1930_v9  ;;  %v524_v11 = vpop.f32.mrb[9].mxu0  ;;  %v2033_v20 = vadd.f32 %v1413_v16, %v1930_v9  ;;  %v652_v52 = vpop.f32.mrb[9].mxu1 }
 0x107   :  { %v1226_v13 = vadd.f32 %v1225_v7, %v1163_v1  ;;  %v964_v14 = vadd.f32 %v1930_v9, %v524_v11  ;;  %v1091_v15 = vadd.f32 %v1090_v3, %v963_v35  ;;  %v1382_v6 = vpop.f32.mrb[10].mxu0  ;;  %v1414_v0 = vpop.f32.mrb[10].mxu1  ;;  %v2047_v4 = vadd.f32 %v1930_v9, %v652_v52 }
 0x108   :  { %1030 = vst [vmem:[%s2405_s5 + $0x50] sm:$0xff] %v966_v10  ;;  %v967_v17 = vadd.f32 %v1382_v6, %v1930_v9  ;;  %v527_v19 = vpop.f32.mrb[11].mxu0  ;;  %1062 = vst [vmem:[%s2405_s5 + $0x150] sm:$0xff] %v2033_v20  ;;  %v2050_v5 = vadd.f32 %v1414_v0, %v1930_v9  ;;  %v655_v18 = vpop.f32.mrb[11].mxu1  ;;  %v1167_v57 = vmul.f32 %v966_v10, %v966_v10 }
 0x109   :  { %1028 = vst [vmem:[%s2405_s5 + $0x40] sm:$0xff] %v964_v14  ;;  %v1092_v53 = vadd.f32 %v1091_v15, %v964_v14  ;;  %v1165_v58 = vmul.f32 %v964_v14, %v964_v14  ;;  %v1227_v59 = vadd.f32 %v1226_v13, %v1164_v12  ;;  %v965_v63 = vadd.f32 %v1930_v9, %v527_v19 }
 0x10a   :  { %1031 = vst [vmem:[%s2405_s5 + $0x58] sm:$0xff] %v967_v17  ;;  %v2056_v54 = vadd.f32 %v1930_v9, %v655_v18  ;;  %1060 = vst [vmem:[%s2405_s5 + $0x140] sm:$0xff] %v2047_v4  ;;  %v1168_v26 = vmul.f32 %v967_v17, %v967_v17 }
 0x10b   :  { %v1228_v37 = vadd.f32 %v1227_v59, %v1165_v58  ;;  %1029 = vst [vmem:[%s2405_s5 + $0x48] sm:$0xff] %v965_v63  ;;  %v1093_v40 = vadd.f32 %v1092_v53, %v965_v63  ;;  %v1166_v48 = vmul.f32 %v965_v63, %v965_v63  ;;  %1063 = vst [vmem:[%s2405_s5 + $0x158] sm:$0xff] %v2050_v5 }
 0x10c   :  { %1061 = vst [vmem:[%s2405_s5 + $0x148] sm:$0xff] %v2056_v54 }
 0x10d   :  { %v1094_v2 = vadd.f32 %v1093_v40, %v966_v10  ;;  %v1229_v21 = vadd.f32 %v1228_v37, %v1166_v48  ;;  %v1385_v23 = vpop.f32.mrb[12].mxu0  ;;  %v1417_v31 = vpop.f32.mrb[12].mxu1 }
 0x10e   :  { %v970_v24 = vadd.f32 %v1385_v23, %v1930_v9  ;;  %v540_v25 = vpop.f32.mrb[13].mxu0  ;;  %v2077_v34 = vadd.f32 %v1417_v31, %v1930_v9  ;;  %v668_v35 = vpop.f32.mrb[13].mxu1 }
 0x10f   :  { %v1230_v27 = vadd.f32 %v1229_v21, %v1167_v57  ;;  %v968_v28 = vadd.f32 %v1930_v9, %v540_v25  ;;  %v1095_v29 = vadd.f32 %v1094_v2, %v967_v17  ;;  %v1386_v30 = vpop.f32.mrb[14].mxu0  ;;  %v1418_v44 = vpop.f32.mrb[14].mxu1  ;;  %v2091_v49 = vadd.f32 %v1930_v9, %v668_v35 }
 0x110   :  { %1034 = vst [vmem:[%s2405_s5 + $0x70] sm:$0xff] %v970_v24  ;;  %v971_v32 = vadd.f32 %v1386_v30, %v1930_v9  ;;  %v543_v33 = vpop.f32.mrb[15].mxu0  ;;  %1066 = vst [vmem:[%s2405_s5 + $0x170] sm:$0xff] %v2077_v34  ;;  %v2094_v50 = vadd.f32 %v1418_v44, %v1930_v9  ;;  %v671_v55 = vpop.f32.mrb[15].mxu1  ;;  %v1171_v3 = vmul.f32 %v970_v24, %v970_v24 }
 0x111   :  { %1032 = vst [vmem:[%s2405_s5 + $0x60] sm:$0xff] %v968_v28  ;;  %v1096_v38 = vadd.f32 %v1095_v29, %v968_v28  ;;  %v1169_v41 = vmul.f32 %v968_v28, %v968_v28  ;;  %v1231_v42 = vadd.f32 %v1230_v27, %v1168_v26  ;;  %v969_v43 = vadd.f32 %v1930_v9, %v543_v33 }
 0x112   :  { %1035 = vst [vmem:[%s2405_s5 + $0x78] sm:$0xff] %v971_v32  ;;  %v2100_v1 = vadd.f32 %v1930_v9, %v671_v55  ;;  %1064 = vst [vmem:[%s2405_s5 + $0x160] sm:$0xff] %v2091_v49  ;;  %v1172_v13 = vmul.f32 %v971_v32, %v971_v32 }
 0x113   :  { %v1232_v56 = vadd.f32 %v1231_v42, %v1169_v41  ;;  %1033 = vst [vmem:[%s2405_s5 + $0x68] sm:$0xff] %v969_v43  ;;  %v1097_v60 = vadd.f32 %v1096_v38, %v969_v43  ;;  %v1170_v61 = vmul.f32 %v969_v43, %v969_v43  ;;  %1067 = vst [vmem:[%s2405_s5 + $0x178] sm:$0xff] %v2094_v50 }
 0x114   :  { %1065 = vst [vmem:[%s2405_s5 + $0x168] sm:$0xff] %v2100_v1 }
 0x115   :  { %v1098_v7 = vadd.f32 %v1097_v60, %v970_v24  ;;  %v1233_v8 = vadd.f32 %v1232_v56, %v1170_v61  ;;  %v1389_v10 = vpop.f32.mrb[16].mxu0  ;;  %v1421_v17 = vpop.f32.mrb[16].mxu1 }
 0x116   :  { %v974_v11 = vadd.f32 %v1389_v10, %v1930_v9  ;;  %v556_v12 = vpop.f32.mrb[17].mxu0  ;;  %v2121_v53 = vadd.f32 %v1421_v17, %v1930_v9  ;;  %v684_v58 = vpop.f32.mrb[17].mxu1 }
 0x117   :  { %v1234_v14 = vadd.f32 %v1233_v8, %v1171_v3  ;;  %v972_v15 = vadd.f32 %v1930_v9, %v556_v12  ;;  %v1099_v6 = vadd.f32 %v1098_v7, %v971_v32  ;;  %v1390_v16 = vpop.f32.mrb[18].mxu0  ;;  %v1422_v37 = vpop.f32.mrb[18].mxu1  ;;  %v2135_v40 = vadd.f32 %v1930_v9, %v684_v58 }
 0x118   :  { %1038 = vst [vmem:[%s2405_s5 + $0x90] sm:$0xff] %v974_v11  ;;  %v975_v19 = vadd.f32 %v1390_v16, %v1930_v9  ;;  %v559_v52 = vpop.f32.mrb[19].mxu0  ;;  %1070 = vst [vmem:[%s2405_s5 + $0x190] sm:$0xff] %v2121_v53  ;;  %v2138_v48 = vadd.f32 %v1422_v37, %v1930_v9  ;;  %v687_v57 = vpop.f32.mrb[19].mxu1  ;;  %v1175_v25 = vmul.f32 %v974_v11, %v974_v11 }
 0x119   :  { %1036 = vst [vmem:[%s2405_s5 + $0x80] sm:$0xff] %v972_v15  ;;  %v1100_v59 = vadd.f32 %v1099_v6, %v972_v15  ;;  %v1173_v63 = vmul.f32 %v972_v15, %v972_v15  ;;  %v1235_v0 = vadd.f32 %v1234_v14, %v1172_v13  ;;  %v973_v18 = vadd.f32 %v1930_v9, %v559_v52 }
 0x11a   :  { %1039 = vst [vmem:[%s2405_s5 + $0x98] sm:$0xff] %v975_v19  ;;  %v2144_v24 = vadd.f32 %v1930_v9, %v687_v57  ;;  %1068 = vst [vmem:[%s2405_s5 + $0x180] sm:$0xff] %v2135_v40  ;;  %v1176_v31 = vmul.f32 %v975_v19, %v975_v19 }
 0x11b   :  { %v1236_v2 = vadd.f32 %v1235_v0, %v1173_v63  ;;  %1037 = vst [vmem:[%s2405_s5 + $0x88] sm:$0xff] %v973_v18  ;;  %v1101_v21 = vadd.f32 %v1100_v59, %v973_v18  ;;  %v1174_v23 = vmul.f32 %v973_v18, %v973_v18  ;;  %1071 = vst [vmem:[%s2405_s5 + $0x198] sm:$0xff] %v2138_v48 }
 0x11c   :  { %1069 = vst [vmem:[%s2405_s5 + $0x188] sm:$0xff] %v2144_v24 }
 0x11d   :  { %v1102_v26 = vadd.f32 %v1101_v21, %v974_v11  ;;  %v1237_v27 = vadd.f32 %v1236_v2, %v1174_v23  ;;  %v1393_v28 = vpop.f32.mrb[20].mxu0  ;;  %v1425_v41 = vpop.f32.mrb[20].mxu1 }
 0x11e   :  { %v978_v29 = vadd.f32 %v1393_v28, %v1930_v9  ;;  %v572_v30 = vpop.f32.mrb[21].mxu0  ;;  %v2165_v44 = vadd.f32 %v1425_v41, %v1930_v9  ;;  %v700_v55 = vpop.f32.mrb[21].mxu1 }
 0x11f   :  { %v1238_v32 = vadd.f32 %v1237_v27, %v1175_v25  ;;  %v976_v33 = vadd.f32 %v1930_v9, %v572_v30  ;;  %v1103_v35 = vadd.f32 %v1102_v26, %v975_v19  ;;  %v1394_v38 = vpop.f32.mrb[22].mxu0  ;;  %v1426_v7 = vpop.f32.mrb[22].mxu1  ;;  %v2179_v8 = vadd.f32 %v1930_v9, %v700_v55 }
 0x120   :  { %1042 = vst [vmem:[%s2405_s5 + $0xb0] sm:$0xff] %v978_v29  ;;  %v979_v42 = vadd.f32 %v1394_v38, %v1930_v9  ;;  %v575_v43 = vpop.f32.mrb[23].mxu0  ;;  %1074 = vst [vmem:[%s2405_s5 + $0x1b0] sm:$0xff] %v2165_v44  ;;  %v2182_v10 = vadd.f32 %v1426_v7, %v1930_v9  ;;  %v703_v11 = vpop.f32.mrb[23].mxu1  ;;  %v1179_v6 = vmul.f32 %v978_v29, %v978_v29 }
 0x121   :  { %1040 = vst [vmem:[%s2405_s5 + $0xa0] sm:$0xff] %v976_v33  ;;  %v1104_v56 = vadd.f32 %v1103_v35, %v976_v33  ;;  %v1177_v60 = vmul.f32 %v976_v33, %v976_v33  ;;  %v1239_v61 = vadd.f32 %v1238_v32, %v1176_v31  ;;  %v977_v3 = vadd.f32 %v1930_v9, %v575_v43 }
 0x122   :  { %1043 = vst [vmem:[%s2405_s5 + $0xb8] sm:$0xff] %v979_v42  ;;  %v2188_v15 = vadd.f32 %v1930_v9, %v703_v11  ;;  %1072 = vst [vmem:[%s2405_s5 + $0x1a0] sm:$0xff] %v2179_v8  ;;  %v1180_v59 = vmul.f32 %v979_v42, %v979_v42 }
 0x123   :  { %v1240_v12 = vadd.f32 %v1239_v61, %v1177_v60  ;;  %1041 = vst [vmem:[%s2405_s5 + $0xa8] sm:$0xff] %v977_v3  ;;  %v1105_v13 = vadd.f32 %v1104_v56, %v977_v3  ;;  %v1178_v14 = vmul.f32 %v977_v3, %v977_v3  ;;  %1075 = vst [vmem:[%s2405_s5 + $0x1b8] sm:$0xff] %v2182_v10 }
 0x124   :  { %1073 = vst [vmem:[%s2405_s5 + $0x1a8] sm:$0xff] %v2188_v15 }
 0x125   :  { %v1106_v16 = vadd.f32 %v1105_v13, %v978_v29  ;;  %v1241_v17 = vadd.f32 %v1240_v12, %v1178_v14  ;;  %v1397_v19 = vpop.f32.mrb[24].mxu0  ;;  %v1429_v57 = vpop.f32.mrb[24].mxu1 }
 0x126   :  { %v982_v52 = vadd.f32 %v1397_v19, %v1930_v9  ;;  %v588_v58 = vpop.f32.mrb[25].mxu0  ;;  %v2209_v23 = vadd.f32 %v1429_v57, %v1930_v9  ;;  %v716_v25 = vpop.f32.mrb[25].mxu1 }
 0x127   :  { %v1242_v63 = vadd.f32 %v1241_v17, %v1179_v6  ;;  %v980_v0 = vadd.f32 %v1930_v9, %v588_v58  ;;  %v1107_v18 = vadd.f32 %v1106_v16, %v979_v42  ;;  %v1398_v37 = vpop.f32.mrb[26].mxu0  ;;  %v1430_v30 = vpop.f32.mrb[26].mxu1  ;;  %v2223_v31 = vadd.f32 %v1930_v9, %v716_v25 }
 0x128   :  { %1046 = vst [vmem:[%s2405_s5 + $0xd0] sm:$0xff] %v982_v52  ;;  %v983_v2 = vadd.f32 %v1398_v37, %v1930_v9  ;;  %v591_v21 = vpop.f32.mrb[27].mxu0  ;;  %1078 = vst [vmem:[%s2405_s5 + $0x1d0] sm:$0xff] %v2209_v23  ;;  %v2226_v32 = vadd.f32 %v1430_v30, %v1930_v9  ;;  %v719_v33 = vpop.f32.mrb[27].mxu1  ;;  %v1183_v43 = vmul.f32 %v982_v52, %v982_v52 }
 0x129   :  { %1044 = vst [vmem:[%s2405_s5 + $0xc0] sm:$0xff] %v980_v0  ;;  %v1108_v26 = vadd.f32 %v1107_v18, %v980_v0  ;;  %v1181_v27 = vmul.f32 %v980_v0, %v980_v0  ;;  %v1243_v28 = vadd.f32 %v1242_v63, %v1180_v59  ;;  %v981_v29 = vadd.f32 %v1930_v9, %v591_v21 }
 0x12a   :  { %1047 = vst [vmem:[%s2405_s5 + $0xd8] sm:$0xff] %v983_v2  ;;  %v2232_v42 = vadd.f32 %v1930_v9, %v719_v33  ;;  %1076 = vst [vmem:[%s2405_s5 + $0x1c0] sm:$0xff] %v2223_v31  ;;  %v1184_v7 = vmul.f32 %v983_v2, %v983_v2 }
 0x12b   :  { %v1244_v35 = vadd.f32 %v1243_v28, %v1181_v27  ;;  %1045 = vst [vmem:[%s2405_s5 + $0xc8] sm:$0xff] %v981_v29  ;;  %v1109_v38 = vadd.f32 %v1108_v26, %v981_v29  ;;  %v1182_v41 = vmul.f32 %v981_v29, %v981_v29  ;;  %1079 = vst [vmem:[%s2405_s5 + $0x1d8] sm:$0xff] %v2226_v32 }
 0x12c   :  { %1077 = vst [vmem:[%s2405_s5 + $0x1c8] sm:$0xff] %v2232_v42 }
 0x12d   :  { %v1110_v55 = vadd.f32 %v1109_v38, %v982_v52  ;;  %v1245_v56 = vadd.f32 %v1244_v35, %v1182_v41  ;;  %v1401_v60 = vpop.f32.mrb[28].mxu0  ;;  %v1433_v6 = vpop.f32.mrb[28].mxu1  ;;  %v1189_v38 = vmul.f32 %v1952_v47, %v1952_v47 }
 0x12e   :  { %v986_v61 = vadd.f32 %v1401_v60, %v1930_v9  ;;  %v604_v3 = vpop.f32.mrb[29].mxu0  ;;  %v2253_v19 = vadd.f32 %v1433_v6, %v1930_v9  ;;  %v732_v52 = vpop.f32.mrb[29].mxu1  ;;  %v1190_v60 = vmul.f32 %v1972_v22, %v1972_v22 }
 0x12f   :  { %v1246_v11 = vadd.f32 %v1245_v56, %v1183_v43  ;;  %v984_v12 = vadd.f32 %v1930_v9, %v604_v3  ;;  %v1111_v13 = vadd.f32 %v1110_v55, %v983_v2  ;;  %v1402_v14 = vpop.f32.mrb[30].mxu0  ;;  %v1434_v18 = vpop.f32.mrb[30].mxu1  ;;  %v2267_v37 = vadd.f32 %v1930_v9, %v732_v52 }
 0x130   :  { %1050 = vst [vmem:[%s2405_s5 + $0xf0] sm:$0xff] %v986_v61  ;;  %v987_v16 = vadd.f32 %v1402_v14, %v1930_v9  ;;  %v607_v17 = vpop.f32.mrb[31].mxu0  ;;  %1082 = vst [vmem:[%s2405_s5 + $0x1f0] sm:$0xff] %v2253_v19  ;;  %v2270_v57 = vadd.f32 %v1434_v18, %v1930_v9  ;;  %v735_v2 = vpop.f32.mrb[31].mxu1  ;;  %v1187_v28 = vmul.f32 %v986_v61, %v986_v61 }
 0x131   :  { %1048 = vst [vmem:[%s2405_s5 + $0xe0] sm:$0xff] %v984_v12  ;;  %v1112_v58 = vadd.f32 %v1111_v13, %v984_v12  ;;  %v1185_v59 = vmul.f32 %v984_v12, %v984_v12  ;;  %v1247_v63 = vadd.f32 %v1246_v11, %v1184_v7  ;;  %v985_v0 = vadd.f32 %v1930_v9, %v607_v17 }
 0x132   :  { %1051 = vst [vmem:[%s2405_s5 + $0xf8] sm:$0xff] %v987_v16  ;;  %v2276_v27 = vadd.f32 %v1930_v9, %v735_v2  ;;  %1080 = vst [vmem:[%s2405_s5 + $0x1e0] sm:$0xff] %v2267_v37  ;;  %v1188_v9 = vmul.f32 %v987_v16, %v987_v16  ;;  %v1192_v11 = vmul.f32 %v1962_v51, %v1962_v51 }
 0x133   :  { %v1248_v21 = vadd.f32 %v1247_v63, %v1185_v59  ;;  %1049 = vst [vmem:[%s2405_s5 + $0xe8] sm:$0xff] %v985_v0  ;;  %v1113_v25 = vadd.f32 %v1112_v58, %v985_v0  ;;  %v1186_v26 = vmul.f32 %v985_v0, %v985_v0  ;;  %1083 = vst [vmem:[%s2405_s5 + $0x1f8] sm:$0xff] %v2270_v57 }
 0x134   :  { %1081 = vst [vmem:[%s2405_s5 + $0x1e8] sm:$0xff] %v2276_v27  ;;  %v1194_v17 = vmul.f32 %v2012_v62, %v2012_v62 }
 0x135   :  { %v1114_v29 = vadd.f32 %v1113_v25, %v986_v61  ;;  %v1249_v30 = vadd.f32 %v1248_v21, %v1186_v26  ;;  %v1191_v61 = vmul.f32 %v1945_v36, %v1945_v36  ;;  %v1198_v21 = vmul.f32 %v2056_v54, %v2056_v54 }
 0x137   :  { %v1250_v33 = vadd.f32 %v1249_v30, %v1187_v28  ;;  %v1115_v35 = vadd.f32 %v1114_v29, %v987_v16 }
 0x139   :  { %v1116_v41 = vadd.f32 %v1115_v35, %v1952_v47  ;;  %v1251_v43 = vadd.f32 %v1250_v33, %v1188_v9  ;;  %v1193_v47 = vmul.f32 %v2003_v45, %v2003_v45  ;;  %v1202_v35 = vmul.f32 %v2100_v1, %v2100_v1 }
 0x13b   :  { %v1252_v55 = vadd.f32 %v1251_v43, %v1189_v38  ;;  %v1117_v56 = vadd.f32 %v1116_v41, %v1972_v22 }
 0x13d   :  { %v1118_v3 = vadd.f32 %v1117_v56, %v1945_v36  ;;  %v1253_v7 = vadd.f32 %v1252_v55, %v1190_v60  ;;  %v1195_v36 = vmul.f32 %v1989_v39, %v1989_v39 }
 0x13f   :  { %v1254_v12 = vadd.f32 %v1253_v7, %v1191_v61  ;;  %v1119_v13 = vadd.f32 %v1118_v3, %v1962_v51  ;;  %v1196_v51 = vmul.f32 %v2006_v46, %v2006_v46  ;;  %v1206_v3 = vmul.f32 %v2144_v24, %v2144_v24 }
 0x141   :  { %v1120_v14 = vadd.f32 %v1119_v13, %v2003_v45  ;;  %v1255_v6 = vadd.f32 %v1254_v12, %v1192_v11  ;;  %v1197_v45 = vmul.f32 %v2047_v4, %v2047_v4 }
 0x143   :  { %v1256_v16 = vadd.f32 %v1255_v6, %v1193_v47  ;;  %v1121_v22 = vadd.f32 %v1120_v14, %v2012_v62 }
 0x145   :  { %v1122_v52 = vadd.f32 %v1121_v22, %v1989_v39  ;;  %v1257_v58 = vadd.f32 %v1256_v16, %v1194_v17  ;;  %v1199_v39 = vmul.f32 %v2033_v20, %v2033_v20  ;;  %v1210_v16 = vmul.f32 %v2188_v15, %v2188_v15 }
 0x147   :  { %v1258_v59 = vadd.f32 %v1257_v58, %v1195_v36  ;;  %v1123_v63 = vadd.f32 %v1122_v52, %v2006_v46  ;;  %v1200_v46 = vmul.f32 %v2050_v5, %v2050_v5 }
 0x149   :  { %v1124_v0 = vadd.f32 %v1123_v63, %v2047_v4  ;;  %v1259_v18 = vadd.f32 %v1258_v59, %v1196_v51  ;;  %v1201_v4 = vmul.f32 %v2091_v49, %v2091_v49  ;;  %v1214_v63 = vmul.f32 %v2232_v42, %v2232_v42 }
 0x14b   :  { %v1260_v2 = vadd.f32 %v1259_v18, %v1197_v45  ;;  %v1125_v62 = vadd.f32 %v1124_v0, %v2056_v54 }
 0x14d   :  { %v1126_v25 = vadd.f32 %v1125_v62, %v2033_v20  ;;  %v1261_v26 = vadd.f32 %v1260_v2, %v1198_v21  ;;  %v1203_v20 = vmul.f32 %v2077_v34, %v2077_v34 }
 0x14f   :  { %v1262_v28 = vadd.f32 %v1261_v26, %v1199_v39  ;;  %v1127_v29 = vadd.f32 %v1126_v25, %v2050_v5  ;;  %v1204_v5 = vmul.f32 %v2094_v50, %v2094_v50  ;;  %v1218_v25 = vmul.f32 %v2276_v27, %v2276_v27 }
 0x151   :  { %v1128_v30 = vadd.f32 %v1127_v29, %v2091_v49  ;;  %v1263_v9 = vadd.f32 %v1262_v28, %v1200_v46  ;;  %v1205_v49 = vmul.f32 %v2135_v40, %v2135_v40 }
 0x153   :  { %v1264_v33 = vadd.f32 %v1263_v9, %v1201_v4  ;;  %v1129_v54 = vadd.f32 %v1128_v30, %v2100_v1 }
 0x155   :  { %v1130_v38 = vadd.f32 %v1129_v54, %v2077_v34  ;;  %v1265_v41 = vadd.f32 %v1264_v33, %v1202_v35  ;;  %v1207_v34 = vmul.f32 %v2121_v53, %v2121_v53 }
 0x157   :  { %v1266_v43 = vadd.f32 %v1265_v41, %v1203_v20  ;;  %v1131_v55 = vadd.f32 %v1130_v38, %v2094_v50  ;;  %v1208_v50 = vmul.f32 %v2138_v48, %v2138_v48 }
 0x159   :  { %v1132_v56 = vadd.f32 %v1131_v55, %v2135_v40  ;;  %v1267_v60 = vadd.f32 %v1266_v43, %v1204_v5  ;;  %v1209_v40 = vmul.f32 %v2179_v8, %v2179_v8 }
 0x15b   :  { %v1268_v61 = vadd.f32 %v1267_v60, %v1205_v49  ;;  %v1133_v1 = vadd.f32 %v1132_v56, %v2144_v24 }
 0x15d   :  { %v1134_v7 = vadd.f32 %v1133_v1, %v2121_v53  ;;  %v1269_v11 = vadd.f32 %v1268_v61, %v1206_v3  ;;  %v1211_v53 = vmul.f32 %v2165_v44, %v2165_v44 }
 0x15f   :  { %v1270_v12 = vadd.f32 %v1269_v11, %v1207_v34  ;;  %v1135_v13 = vadd.f32 %v1134_v7, %v2138_v48  ;;  %v1212_v48 = vmul.f32 %v2182_v10, %v2182_v10 }
 0x161   :  { %v1136_v47 = vadd.f32 %v1135_v13, %v2179_v8  ;;  %v1271_v14 = vadd.f32 %v1270_v12, %v1208_v50  ;;  %v1213_v8 = vmul.f32 %v2223_v31, %v2223_v31 }
 0x163   :  { %v1272_v6 = vadd.f32 %v1271_v14, %v1209_v40  ;;  %v1137_v24 = vadd.f32 %v1136_v47, %v2188_v15 }
 0x165   :  { %v1138_v22 = vadd.f32 %v1137_v24, %v2165_v44  ;;  %v1273_v17 = vadd.f32 %v1272_v6, %v1210_v16  ;;  %v1215_v44 = vmul.f32 %v2209_v23, %v2209_v23 }
 0x167   :  { %v1274_v36 = vadd.f32 %v1273_v17, %v1211_v53  ;;  %v1139_v52 = vadd.f32 %v1138_v22, %v2182_v10  ;;  %v1216_v10 = vmul.f32 %v2226_v32, %v2226_v32 }
 0x169   :  { %v1140_v58 = vadd.f32 %v1139_v52, %v2223_v31  ;;  %v1275_v51 = vadd.f32 %v1274_v36, %v1212_v48  ;;  %v1217_v31 = vmul.f32 %v2267_v37, %v2267_v37 }
 0x16b   :  { %v1276_v59 = vadd.f32 %v1275_v51, %v1213_v8  ;;  %v1141_v15 = vadd.f32 %v1140_v58, %v2232_v42 }
 0x16d   :  { %v1142_v45 = vadd.f32 %v1141_v15, %v2209_v23  ;;  %v1277_v0 = vadd.f32 %v1276_v59, %v1214_v63  ;;  %v1219_v23 = vmul.f32 %v2253_v19, %v2253_v19 }
 0x16f   :  { %v1278_v18 = vadd.f32 %v1277_v0, %v1215_v44  ;;  %v1143_v2 = vadd.f32 %v1142_v45, %v2226_v32  ;;  %v1220_v32 = vmul.f32 %v2270_v57, %v2270_v57 }
 0x171   :  { %v1144_v62 = vadd.f32 %v1143_v2, %v2267_v37  ;;  %v1279_v21 = vadd.f32 %v1278_v18, %v1216_v10 }
 0x173   :  { %v1280_v39 = vadd.f32 %v1279_v21, %v1217_v31  ;;  %v1145_v42 = vadd.f32 %v1144_v62, %v2276_v27 }
 0x175   :  { %v1146_v26 = vadd.f32 %v1145_v42, %v2253_v19  ;;  %v1281_v46 = vadd.f32 %v1280_v39, %v1218_v25  ;;  %v1084_v19 = vld [vmem:[%s2403_s6] sm:$0x1] }
 0x177   :  { %v1147_v28 = vadd.f32 %v1146_v26, %v2270_v57  ;;  %v1282_v29 = vadd.f32 %v1281_v46, %v1219_v23  ;;  %v1156_v57 = vld [vmem:[%s2404_s7] sm:$0x1] }
 0x179   :  { %v1148_v37 = vrot.slane %v1147_v28, 4  ;;  %v1283_v4 = vadd.f32 %v1282_v29, %v1220_v32 }
 0x17b   :  { %v1149_v30 = vadd.f32 %v1148_v37, %v1147_v28  ;;  %v1284_v9 = vrot.slane %v1283_v4, 4 }
 0x17d   :  { %v1150_v33 = vrot.slane %v1149_v30, 2  ;;  %v1285_v54 = vadd.f32 %v1284_v9, %v1283_v4 }
 0x17f   :  { %v1151_v35 = vadd.f32 %v1150_v33, %v1149_v30  ;;  %v1286_v27 = vrot.slane %v1285_v54, 2 }
 0x181   :  { %v1152_v20 = vrot.slane %v1151_v35, 1  ;;  %v1287_v38 = vadd.f32 %v1286_v27, %v1285_v54 }
 0x183   :  { %v1153_v41 = vadd.f32 %v1152_v20, %v1151_v35  ;;  %v1288_v5 = vrot.slane %v1287_v38, 1 }
 0x185   :  { %v1154_v43 = vadd.f32 %v1153_v41, %v1084_v19  ;;  %v1289_v55 = vadd.f32 %v1288_v5, %v1287_v38 }
 0x187   :  { %1155 = vst [vmem:[%s2403_s6] sm:$0x1] %v1154_v43  ;;  %v1290_v49 = vadd.f32 %v1289_v55, %v1156_v57 }
 0x189   :  { %1291 = vst [vmem:[%s2404_s7] sm:$0x1] %v1290_v49 }

</bundles_post_ra>
